<compile_context>
chip_gen: v6e
topology: v6e:2x2x1
jax: 0.10.0
libtpu: 0.0.40
codegen_flags: <defaults>
</compile_context>

<pallas_src>
import functools

import jax
import jax.numpy as jnp
from jax.experimental import pallas as pl
from jax.experimental.pallas import tpu as pltpu


# ----------------------------- kernel ---------------------------------------


def _layernorm(v, w, b, eps=1e-5):
    mu = jnp.mean(v, axis=-1, keepdims=True)
    var = jnp.mean((v - mu) ** 2, axis=-1, keepdims=True)
    return (v - mu) * jax.lax.rsqrt(var + eps) * w + b


def fused_encoder_kernel(idx_ref,                       # scalar prefetch: (B,) last-token row idx
                         mask_ref, x_ref,
                         ln1w_ref, ln1b_ref, wqkv_ref, bqkv_ref, wo_ref, bo_ref,
                         ln2w_ref, ln2b_ref, w1_ref, b1_ref, w2_ref, b2_ref,
                         lnw_ref, lnb_ref, wout_ref, bout_ref,
                         o_ref,
                         x_scr, *, n_head):
    g = pl.program_id(0)
    bt, seq, d_model = x_ref.shape
    dh = d_model // n_head
    n_layers = wqkv_ref.shape[0]
    rows2d = bt * seq

    # Additive key-padding bias, broadcast ONCE (hoisted out of head/layer loops).
    mask_b = jnp.broadcast_to(mask_ref[...], (bt, seq, seq))      # (Bt, S, S), f32

    # Residual stream for the Bt-sequence tile, stacked along the M axis: (Bt*S, D).
    x2d = x_ref[...].reshape(rows2d, d_model)

    def layer_body(l, x2d):
        # --- sublayer 1: pre-norm multi-head self-attention + residual ----------
        x_ln = _layernorm(x2d, ln1w_ref[l], ln1b_ref[l])
        # One lane-dense fused QKV matmul (bf16 MXU inputs, f32 accumulate).
        qkv = jnp.dot(x_ln.astype(jnp.bfloat16), wqkv_ref[l],
                      preferred_element_type=jnp.float32) + bqkv_ref[l]     # (Bt*S, 3D)
        q = qkv[:, :d_model].reshape(bt, seq, d_model)
        k = qkv[:, d_model:2 * d_model].reshape(bt, seq, d_model)
        v = qkv[:, 2 * d_model:].reshape(bt, seq, d_model)

        heads = []
        for h in range(n_head):            # per-head loop only for score / PV stage
            qh = q[:, :, h * dh:(h + 1) * dh].astype(jnp.bfloat16)
            kh = k[:, :, h * dh:(h + 1) * dh].astype(jnp.bfloat16)
            vh = v[:, :, h * dh:(h + 1) * dh].astype(jnp.bfloat16)
            # qh already carries the 1/sqrt(dh) scale via the wq/bq fold.
            s = jnp.einsum('bqd,bkd->bqk', qh, kh,
                           preferred_element_type=jnp.float32) + mask_b     # (Bt, S, S)
            m = jnp.max(s, axis=-1, keepdims=True)
            e = jnp.exp(s - m)
            p = e * pl.reciprocal(jnp.sum(e, axis=-1, keepdims=True), approx=True)
            heads.append(jnp.einsum('bqk,bkd->bqd', p.astype(jnp.bfloat16), vh,
                                    preferred_element_type=jnp.float32))    # (Bt, S, dh)
        # Single WO matmul with heads stacked on the contraction dim.
        o_cat = jnp.concatenate(heads, axis=-1).reshape(rows2d, d_model)
        attn = jnp.dot(o_cat.astype(jnp.bfloat16), wo_ref[l],
                       preferred_element_type=jnp.float32) + bo_ref[l]
        x2d = x2d + attn

        # --- sublayer 2: pre-norm feed-forward + residual ------------------------
        x_ln2 = _layernorm(x2d, ln2w_ref[l], ln2b_ref[l])
        hid = jnp.dot(x_ln2.astype(jnp.bfloat16), w1_ref[l],
                      preferred_element_type=jnp.float32) + b1_ref[l]
        hid = jnp.maximum(hid, 0.0)
        x2d = x2d + jnp.dot(hid.astype(jnp.bfloat16), w2_ref[l],
                            preferred_element_type=jnp.float32) + b2_ref[l]
        return x2d

    x2d = jax.lax.fori_loop(0, n_layers, layer_body, x2d, unroll=True)

    # --- final stage: LN + last-token gather + output projection -----------------
    x_scr[...] = x2d                                    # VMEM-resident carry for the gather
    rows = []
    for b in range(bt):
        # row index was precomputed host-side as (src_lens - 1) % S (PyTorch -1 wrap).
        r_idx = idx_ref[g * bt + b]
        rows.append(x_scr[pl.ds(b * seq + r_idx, 1), :])           # (1, D)
    rows = jnp.concatenate(rows, axis=0)                            # (Bt, D)
    rows = _layernorm(rows, lnw_ref[...], lnb_ref[...])
    out = jnp.dot(rows.astype(jnp.bfloat16), wout_ref[...],
                  preferred_element_type=jnp.float32) + bout_ref[...]   # lane-dense (Bt, 128)
    o_ref[0] = out.astype(o_ref.dtype)


# --------------------------- pallas wrapper ----------------------------------


def _vmem_limit_bytes():
    cap = 128 * 1024 * 1024
    try:
        info = pltpu.get_tpu_info()
        cap = int(getattr(info, "vmem_capacity_bytes", cap))
    except Exception:
        pass
    # <= ~56 MiB on v7x (64 MiB physical), ~100 MiB on v5e/v6e (128 MiB physical).
    return int(min(cap - 8 * 1024 * 1024, 100 * 1024 * 1024))


def fused_forward_call(row_idx, mask_bias, x, fp, n_head, batch_tile):
    B, S, D = x.shape
    lp = fp['layers']
    n_out_pad = fp['out_w'].shape[1]
    assert B % batch_tile == 0, "batch must be divisible by batch_tile"
    Bt = batch_tile
    T = B // Bt
    L = lp['w_qkv'].shape[0]

    weights = [lp['ln1w'], lp['ln1b'], lp['w_qkv'], lp['b_qkv'], lp['w_o'], lp['b_o'],
               lp['ln2w'], lp['ln2b'], lp['w1'], lp['b1'], lp['w2'], lp['b2'],
               fp['lnw'], fp['lnb'], fp['out_w'], fp['out_b']]

    def shared_spec(arr):          # constant index map -> DMA'd once, kept VMEM-resident
        nd = arr.ndim
        return pl.BlockSpec(arr.shape, lambda g, idx, _nd=nd: (0,) * _nd)

    in_specs = ([pl.BlockSpec((Bt, 1, S), lambda g, idx: (g, 0, 0)),      # mask bias
                 pl.BlockSpec((Bt, S, D), lambda g, idx: (g, 0, 0))]      # embedded input
                + [shared_spec(w) for w in weights])

    grid_spec = pltpu.PrefetchScalarGridSpec(
        num_scalar_prefetch=1,
        grid=(T,),
        in_specs=in_specs,
        out_specs=pl.BlockSpec((1, Bt, n_out_pad), lambda g, idx: (g, 0, 0)),
        scratch_shapes=[pltpu.VMEM((Bt * S, D), jnp.float32)],            # carry for gather
    )

    # Advisory cost estimate: weights fetched once, activations once, exp count.
    flops = int(B * L * (S * 24 * D * D + 4 * S * S * D) + 2 * B * D * n_out_pad)
    bytes_accessed = int(sum(int(w.size) * w.dtype.itemsize for w in weights)
                         + x.size * 4 + mask_bias.size * 4 + row_idx.size * 4
                         + B * n_out_pad * 4)
    cost = pl.CostEstimate(flops=flops,
                           transcendentals=int(B * L * n_head * S * S),
                           bytes_accessed=bytes_accessed)

    out = pl.pallas_call(
        functools.partial(fused_encoder_kernel, n_head=n_head),
        grid_spec=grid_spec,
        out_shape=jax.ShapeDtypeStruct((T, Bt, n_out_pad), jnp.float32),
        compiler_params=pltpu.CompilerParams(
            dimension_semantics=("parallel",),          # batch tiles across TCs (megacore)
            vmem_limit_bytes=_vmem_limit_bytes()),
        cost_estimate=cost,
    )(row_idx, mask_bias, x, *weights)
    return out.reshape(B, n_out_pad)


def transformer_encoder_forward(src_tokens, fp, *, padding_idx, d_model, n_head,
                                batch_tile=2):
    B, S = src_tokens.shape
    dh = d_model // n_head
    src_mask = (src_tokens == padding_idx)
    src_lens = jnp.sum(jnp.logical_not(src_mask), axis=-1).astype(jnp.int32)
    # embedding gather + positional encoding: plain-JAX glue (tiny, no Pallas win here)
    x = (fp['emb'][src_tokens] * (d_model ** 0.5) + fp['pe'][:S][None, :, :]).astype(jnp.float32)
    # additive key mask, pre-multiplied by the score scale (scale itself folded into wq/bq)
    mask_bias = jnp.where(src_mask, -1e9 / (dh ** 0.5), 0.0).astype(jnp.float32).reshape(B, 1, S)
    # last valid token per batch row; % S reproduces PyTorch's -1 wrap for all-padding rows
    row_idx = jnp.mod(src_lens - 1, S).astype(jnp.int32)
    out = fused_forward_call(row_idx, mask_bias, x, fp, n_head, batch_tile)
    return out[:, :fp['n_labels']]                                          # (B, n_labels)


# ----------------------------- params ----------------------------------------


def init_params(key, n_labels, padding_idx, n_head, d_model, n_layers, max_seq_len):
    def dense(k, fan_in, fan_out):
        k1, k2 = jax.random.split(k)
        w = jax.random.normal(k1, (fan_in, fan_out), jnp.float32) * 0.05   # (in, out)
        b = jax.random.normal(k2, (1, fan_out), jnp.float32) * 0.05
        return w, b

    keys = jax.random.split(key, n_layers + 2)
    emb = jax.random.normal(keys[0], (n_labels + 1, d_model), jnp.float32) * 0.05
    emb = emb.at[padding_idx].set(0.0)                          # padding_idx row is zero

    layers = []
    for li in range(n_layers):
        lk = jax.random.split(keys[1 + li], 6)
        wq, bq = dense(lk[0], d_model, d_model)
        wk, bk = dense(lk[1], d_model, d_model)
        wv, bv = dense(lk[2], d_model, d_model)
        wo, bo = dense(lk[3], d_model, d_model)
        w1, b1 = dense(lk[4], d_model, 4 * d_model)
        w2, b2 = dense(lk[5], 4 * d_model, d_model)
        layers.append(dict(
            ln1w=jnp.ones((1, d_model), jnp.float32), ln1b=jnp.zeros((1, d_model), jnp.float32),
            wq=wq, bq=bq, wk=wk, bk=bk, wv=wv, bv=bv, wo=wo, bo=bo,
            ln2w=jnp.ones((1, d_model), jnp.float32), ln2b=jnp.zeros((1, d_model), jnp.float32),
            w1=w1, b1=b1, w2=w2, b2=b2))

    out_w, out_b = dense(keys[-1], d_model, n_labels)
    lnw = jnp.ones((1, d_model), jnp.float32)
    lnb = jnp.zeros((1, d_model), jnp.float32)

    pos = jnp.arange(max_seq_len, dtype=jnp.float32)[:, None]
    i = jnp.arange(d_model, dtype=jnp.float32)[None, :]
    angle = pos / jnp.power(10000.0, (2.0 * jnp.floor(i / 2.0)) / d_model)
    pe = jnp.where((jnp.arange(d_model) % 2 == 0)[None, :], jnp.sin(angle), jnp.cos(angle))

    return dict(emb=emb, layers=layers, lnw=lnw, lnb=lnb,
                out_w=out_w, out_b=out_b, pe=pe)


def prepare_fused_params(params, n_head):
    """One-time host-side restructure: stack layers on a leading L axis, fuse Q/K/V into
    one lane-dense (D, 3D) slab with 1/sqrt(dh) folded into the Q columns, store matmul
    weights in bf16 (biases/LN params stay f32), and pad the output head to 128 lanes."""
    d_model = params['emb'].shape[1]
    dh = d_model // n_head
    scale = 1.0 / (dh ** 0.5)
    n_labels = params['out_w'].shape[1]
    n_out_pad = max(128, ((n_labels + 127) // 128) * 128)

    def stack(fn, dtype):
        return jnp.stack([fn(lp) for lp in params['layers']], axis=0).astype(dtype)

    layers = dict(
        ln1w=stack(lambda lp: lp['ln1w'], jnp.float32),                         # (L, 1, D)
        ln1b=stack(lambda lp: lp['ln1b'], jnp.float32),
        w_qkv=stack(lambda lp: jnp.concatenate(
            [lp['wq'] * scale, lp['wk'], lp['wv']], axis=-1), jnp.bfloat16),    # (L, D, 3D)
        b_qkv=stack(lambda lp: jnp.concatenate(
            [lp['bq'] * scale, lp['bk'], lp['bv']], axis=-1), jnp.float32),     # (L, 1, 3D)
        w_o=stack(lambda lp: lp['wo'], jnp.bfloat16),                           # (L, D, D)
        b_o=stack(lambda lp: lp['bo'], jnp.float32),                            # (L, 1, D)
        ln2w=stack(lambda lp: lp['ln2w'], jnp.float32),
        ln2b=stack(lambda lp: lp['ln2b'], jnp.float32),
        w1=stack(lambda lp: lp['w1'], jnp.bfloat16),                            # (L, D, 4D)
        b1=stack(lambda lp: lp['b1'], jnp.float32),
        w2=stack(lambda lp: lp['w2'], jnp.bfloat16),                            # (L, 4D, D)
        b2=stack(lambda lp: lp['b2'], jnp.float32))

    out_w_pad = jnp.zeros((d_model, n_out_pad), jnp.float32).at[:, :n_labels].set(params['out_w'])
    out_b_pad = jnp.zeros((1, n_out_pad), jnp.float32).at[:, :n_labels].set(params['out_b'])

    return dict(emb=params['emb'], pe=params['pe'],
                lnw=params['lnw'], lnb=params['lnb'],
                out_w=out_w_pad.astype(jnp.bfloat16), out_b=out_b_pad,
                layers=layers, n_labels=n_labels)


# ------------------------- pure-JAX reference --------------------------------


def reference_forward(src_tokens, params, *, padding_idx, d_model, n_head):
    B, S = src_tokens.shape
    dh = d_model // n_head
    src_mask = (src_tokens == padding_idx)
    src_lens = jnp.sum(~src_mask, axis=-1)
    x = params['emb'][src_tokens] * (d_model ** 0.5)
    x = x + params['pe'][:S][None]
    for lp in params['layers']:
        x_ln = _layernorm(x, lp['ln1w'], lp['ln1b'])
        q = x_ln @ lp['wq'] + lp['bq']
        k = x_ln @ lp['wk'] + lp['bk']
        v = x_ln @ lp['wv'] + lp['bv']
        qh = q.reshape(B, S, n_head, dh).transpose(0, 2, 1, 3)
        kh = k.reshape(B, S, n_head, dh).transpose(0, 2, 1, 3)
        vh = v.reshape(B, S, n_head, dh).transpose(0, 2, 1, 3)
        s = jnp.einsum('bhqd,bhkd->bhqk', qh, kh)
        s = jnp.where(src_mask[:, None, None, :], -1e9, s)
        p = jax.nn.softmax(s / dh ** 0.5, axis=-1)
        o = jnp.einsum('bhqk,bhkd->bhqd', p, vh).transpose(0, 2, 1, 3).reshape(B, S, d_model)
        x = x + (o @ lp['wo'] + lp['bo'])
        x_ln2 = _layernorm(x, lp['ln2w'], lp['ln2b'])
        h = jax.nn.relu(x_ln2 @ lp['w1'] + lp['b1'])
        x = x + (h @ lp['w2'] + lp['b2'])
    x = _layernorm(x, params['lnw'], params['lnb'])
    rows = x[jnp.arange(B), src_lens - 1]          # (B, D)
    return rows @ params['out_w'] + params['out_b'][0]


# --------------------------------- main --------------------------------------


if __name__ == "__main__":
    n_labels, padding_idx, n_head, d_model, n_layers = 6, 0, 4, 32, 2
    max_seq_len, B, S, Bt = 10, 4, 8, 2

    key = jax.random.PRNGKey(0)
    pkey, tkey = jax.random.split(key)
    params = init_params(pkey, n_labels, padding_idx, n_head, d_model, n_layers, max_seq_len)
    fused_params = prepare_fused_params(params, n_head)

    tokens = jax.random.randint(tkey, (B, S), 1, n_labels + 1, dtype=jnp.int32)
    tokens = tokens.at[1, 6:].set(padding_idx)      # padding in batch row 1
    tokens = tokens.at[3, 5:].set(padding_idx)      # padding in batch row 3

    out = transformer_encoder_forward(tokens, fused_params, padding_idx=padding_idx,
                                      d_model=d_model, n_head=n_head, batch_tile=Bt)
    out = jax.block_until_ready(out)

    ref = reference_forward(tokens, params, padding_idx=padding_idx,
                            d_model=d_model, n_head=n_head)
    assert out.shape == (B, n_labels), out.shape
    # bf16 MXU inputs + approx reciprocal vs f32 reference -> ~1e-2 level tolerance
    assert jnp.allclose(out, ref, atol=2e-2, rtol=2e-2), (out, ref)
    print("KERNEL_OK")
</pallas_src>

<mosaic_0001>
module attributes {stable_mosaic.version = 11 : i64} {
  func.func @fused_encoder_kernel(%arg0: i32, %arg1: memref<4xi32, #tpu.memory_space<smem>>, %arg2: memref<2x1x8xf32, #tpu.memory_space<vmem>>, %arg3: memref<2x8x32xf32, #tpu.memory_space<vmem>>, %arg4: memref<2x1x32xf32, #tpu.memory_space<vmem>>, %arg5: memref<2x1x32xf32, #tpu.memory_space<vmem>>, %arg6: memref<2x32x96xbf16, #tpu.memory_space<vmem>>, %arg7: memref<2x1x96xf32, #tpu.memory_space<vmem>>, %arg8: memref<2x32x32xbf16, #tpu.memory_space<vmem>>, %arg9: memref<2x1x32xf32, #tpu.memory_space<vmem>>, %arg10: memref<2x1x32xf32, #tpu.memory_space<vmem>>, %arg11: memref<2x1x32xf32, #tpu.memory_space<vmem>>, %arg12: memref<2x32x128xbf16, #tpu.memory_space<vmem>>, %arg13: memref<2x1x128xf32, #tpu.memory_space<vmem>>, %arg14: memref<2x128x32xbf16, #tpu.memory_space<vmem>>, %arg15: memref<2x1x32xf32, #tpu.memory_space<vmem>>, %arg16: memref<1x32xf32, #tpu.memory_space<vmem>>, %arg17: memref<1x32xf32, #tpu.memory_space<vmem>>, %arg18: memref<32x128xbf16, #tpu.memory_space<vmem>>, %arg19: memref<1x128xf32, #tpu.memory_space<vmem>>, %arg20: memref<1x2x128xf32, #tpu.memory_space<vmem>>, %arg21: memref<16x32xf32, #tpu.memory_space<vmem>>) attributes {dimension_semantics = [#tpu.dimension_semantics<parallel>], iteration_bounds = array<i64: 2>, scalar_prefetch = 1 : i64, scratch_operands = 1 : i64, tpu.core_type = #tpu.core_type<tc>, window_params = [{transform_indices = @transform_0, window_bounds = array<i64: 2, 1, 8>}, {transform_indices = @transform_1, window_bounds = array<i64: 2, 8, 32>}, {pipeline_mode = #tpu.pipeline_mode<synchronous>, transform_indices = @transform_2, window_bounds = array<i64: 2, 1, 32>}, {pipeline_mode = #tpu.pipeline_mode<synchronous>, transform_indices = @transform_3, window_bounds = array<i64: 2, 1, 32>}, {pipeline_mode = #tpu.pipeline_mode<synchronous>, transform_indices = @transform_4, window_bounds = array<i64: 2, 32, 96>}, {pipeline_mode = #tpu.pipeline_mode<synchronous>, transform_indices = @transform_5, window_bounds = array<i64: 2, 1, 96>}, {pipeline_mode = #tpu.pipeline_mode<synchronous>, transform_indices = @transform_6, window_bounds = array<i64: 2, 32, 32>}, {pipeline_mode = #tpu.pipeline_mode<synchronous>, transform_indices = @transform_7, window_bounds = array<i64: 2, 1, 32>}, {pipeline_mode = #tpu.pipeline_mode<synchronous>, transform_indices = @transform_8, window_bounds = array<i64: 2, 1, 32>}, {pipeline_mode = #tpu.pipeline_mode<synchronous>, transform_indices = @transform_9, window_bounds = array<i64: 2, 1, 32>}, {pipeline_mode = #tpu.pipeline_mode<synchronous>, transform_indices = @transform_10, window_bounds = array<i64: 2, 32, 128>}, {pipeline_mode = #tpu.pipeline_mode<synchronous>, transform_indices = @transform_11, window_bounds = array<i64: 2, 1, 128>}, {pipeline_mode = #tpu.pipeline_mode<synchronous>, transform_indices = @transform_12, window_bounds = array<i64: 2, 128, 32>}, {pipeline_mode = #tpu.pipeline_mode<synchronous>, transform_indices = @transform_13, window_bounds = array<i64: 2, 1, 32>}, {pipeline_mode = #tpu.pipeline_mode<synchronous>, transform_indices = @transform_14, window_bounds = array<i64: 1, 32>}, {pipeline_mode = #tpu.pipeline_mode<synchronous>, transform_indices = @transform_15, window_bounds = array<i64: 1, 32>}, {pipeline_mode = #tpu.pipeline_mode<synchronous>, transform_indices = @transform_16, window_bounds = array<i64: 32, 128>}, {pipeline_mode = #tpu.pipeline_mode<synchronous>, transform_indices = @transform_17, window_bounds = array<i64: 1, 128>}, {transform_indices = @transform_18, window_bounds = array<i64: 1, 2, 128>}]} {
    %c0 = arith.constant 0 : index
    %c0_0 = arith.constant 0 : index
    %c0_1 = arith.constant 0 : index
    %0 = vector.load %arg2[%c0, %c0_0, %c0_1] : memref<2x1x8xf32, #tpu.memory_space<vmem>>, vector<2x1x8xf32>
    %1 = vector.shape_cast %0 : vector<2x1x8xf32> to vector<2x1x8xf32>
    %2 = vector.broadcast %1 : vector<2x1x8xf32> to vector<2x8x8xf32>
    %c0_2 = arith.constant 0 : index
    %c0_3 = arith.constant 0 : index
    %c0_4 = arith.constant 0 : index
    %3 = vector.load %arg3[%c0_2, %c0_3, %c0_4] : memref<2x8x32xf32, #tpu.memory_space<vmem>>, vector<2x8x32xf32>
    %4 = vector.shape_cast %3 : vector<2x8x32xf32> to vector<16x32xf32>
    %c0_i32 = arith.constant 0 : i32
    %5 = arith.index_cast %c0_i32 : i32 to index
    %c0_5 = arith.constant 0 : index
    %c0_6 = arith.constant 0 : index
    %6 = vector.load %arg4[%5, %c0_5, %c0_6] : memref<2x1x32xf32, #tpu.memory_space<vmem>>, vector<1x1x32xf32>
    %7 = vector.shape_cast %6 : vector<1x1x32xf32> to vector<1x32xf32>
    %8 = arith.index_cast %c0_i32 : i32 to index
    %c0_7 = arith.constant 0 : index
    %c0_8 = arith.constant 0 : index
    %9 = vector.load %arg5[%8, %c0_7, %c0_8] : memref<2x1x32xf32, #tpu.memory_space<vmem>>, vector<1x1x32xf32>
    %10 = vector.shape_cast %9 : vector<1x1x32xf32> to vector<1x32xf32>
    %cst = arith.constant dense<0.000000e+00> : vector<16xf32>
    %11 = vector.multi_reduction <add>, %4, %cst [1] : vector<16x32xf32> to vector<16xf32>
    %12 = vector.shape_cast %11 : vector<16xf32> to vector<16x1xf32>
    %cst_9 = arith.constant 3.200000e+01 : f32
    %13 = vector.broadcast %cst_9 : f32 to vector<16x1xf32>
    %14 = arith.divf %12, %13 : vector<16x1xf32>
    %15 = vector.broadcast %14 : vector<16x1xf32> to vector<16x32xf32>
    %16 = arith.subf %4, %15 : vector<16x32xf32>
    %17 = arith.mulf %16, %16 : vector<16x32xf32>
    %cst_10 = arith.constant dense<0.000000e+00> : vector<16xf32>
    %18 = vector.multi_reduction <add>, %17, %cst_10 [1] : vector<16x32xf32> to vector<16xf32>
    %19 = vector.shape_cast %18 : vector<16xf32> to vector<16x1xf32>
    %cst_11 = arith.constant 3.200000e+01 : f32
    %20 = vector.broadcast %cst_11 : f32 to vector<16x1xf32>
    %21 = arith.divf %19, %20 : vector<16x1xf32>
    %22 = vector.broadcast %14 : vector<16x1xf32> to vector<16x32xf32>
    %23 = arith.subf %4, %22 : vector<16x32xf32>
    %cst_12 = arith.constant 9.99999974E-6 : f32
    %24 = vector.broadcast %cst_12 : f32 to vector<16x1xf32>
    %25 = arith.addf %21, %24 : vector<16x1xf32>
    %26 = math.rsqrt %25 : vector<16x1xf32>
    %27 = vector.broadcast %26 : vector<16x1xf32> to vector<16x32xf32>
    %28 = arith.mulf %23, %27 : vector<16x32xf32>
    %29 = vector.broadcast %7 : vector<1x32xf32> to vector<16x32xf32>
    %30 = arith.mulf %28, %29 : vector<16x32xf32>
    %31 = vector.broadcast %10 : vector<1x32xf32> to vector<16x32xf32>
    %32 = arith.addf %30, %31 : vector<16x32xf32>
    %33 = arith.truncf %32 : vector<16x32xf32> to vector<16x32xbf16>
    %34 = arith.index_cast %c0_i32 : i32 to index
    %c0_13 = arith.constant 0 : index
    %c0_14 = arith.constant 0 : index
    %35 = vector.load %arg6[%34, %c0_13, %c0_14] : memref<2x32x96xbf16, #tpu.memory_space<vmem>>, vector<1x32x96xbf16>
    %36 = vector.shape_cast %35 : vector<1x32x96xbf16> to vector<32x96xbf16>
    %cst_15 = arith.constant dense<0.000000e+00> : vector<16x96xf32>
    %37 = tpu.matmul %33, %36, %cst_15 {dimension_numbers = #tpu.dot_dimension_numbers<[1], [0], [0], [1], [0, 0, 1, 1], [], []>} : vector<16x32xbf16>, vector<32x96xbf16>, vector<16x96xf32> -> vector<16x96xf32>
    %38 = arith.index_cast %c0_i32 : i32 to index
    %c0_16 = arith.constant 0 : index
    %c0_17 = arith.constant 0 : index
    %39 = vector.load %arg7[%38, %c0_16, %c0_17] : memref<2x1x96xf32, #tpu.memory_space<vmem>>, vector<1x1x96xf32>
    %40 = vector.shape_cast %39 : vector<1x1x96xf32> to vector<1x96xf32>
    %41 = vector.broadcast %40 : vector<1x96xf32> to vector<16x96xf32>
    %42 = arith.addf %37, %41 : vector<16x96xf32>
    %43 = vector.extract_strided_slice %42 {offsets = [0, 0], sizes = [16, 32], strides = [1, 1]} : vector<16x96xf32> to vector<16x32xf32>
    %44 = vector.shape_cast %43 : vector<16x32xf32> to vector<2x8x32xf32>
    %45 = vector.extract_strided_slice %42 {offsets = [0, 32], sizes = [16, 32], strides = [1, 1]} : vector<16x96xf32> to vector<16x32xf32>
    %46 = vector.shape_cast %45 : vector<16x32xf32> to vector<2x8x32xf32>
    %47 = vector.extract_strided_slice %42 {offsets = [0, 64], sizes = [16, 32], strides = [1, 1]} : vector<16x96xf32> to vector<16x32xf32>
    %48 = vector.shape_cast %47 : vector<16x32xf32> to vector<2x8x32xf32>
    %49 = vector.extract_strided_slice %44 {offsets = [0, 0, 0], sizes = [2, 8, 8], strides = [1, 1, 1]} : vector<2x8x32xf32> to vector<2x8x8xf32>
    %50 = arith.truncf %49 : vector<2x8x8xf32> to vector<2x8x8xbf16>
    %51 = vector.extract_strided_slice %46 {offsets = [0, 0, 0], sizes = [2, 8, 8], strides = [1, 1, 1]} : vector<2x8x32xf32> to vector<2x8x8xf32>
    %52 = arith.truncf %51 : vector<2x8x8xf32> to vector<2x8x8xbf16>
    %53 = vector.extract_strided_slice %48 {offsets = [0, 0, 0], sizes = [2, 8, 8], strides = [1, 1, 1]} : vector<2x8x32xf32> to vector<2x8x8xf32>
    %54 = arith.truncf %53 : vector<2x8x8xf32> to vector<2x8x8xbf16>
    "tpu.trace_start"() <{level = 10 : i32, message = "bqd,bkd->bqk"}> : () -> ()
    %cst_18 = arith.constant dense<0.000000e+00> : vector<2x8x8xf32>
    %55 = tpu.matmul %50, %52, %cst_18 {dimension_numbers = #tpu.dot_dimension_numbers<[2], [2], [1], [1], [0, 0, 0, 1, 1, 1], [0], [0]>} : vector<2x8x8xbf16>, vector<2x8x8xbf16>, vector<2x8x8xf32> -> vector<2x8x8xf32>
    "tpu.trace_stop"() : () -> ()
    %56 = arith.addf %55, %2 : vector<2x8x8xf32>
    %cst_19 = arith.constant dense<0xFF800000> : vector<2x8xf32>
    %57 = vector.multi_reduction <maximumf>, %56, %cst_19 [2] : vector<2x8x8xf32> to vector<2x8xf32>
    %58 = vector.shape_cast %57 : vector<2x8xf32> to vector<2x8x1xf32>
    %59 = vector.broadcast %58 : vector<2x8x1xf32> to vector<2x8x8xf32>
    %60 = arith.subf %56, %59 : vector<2x8x8xf32>
    %61 = math.exp %60 : vector<2x8x8xf32>
    %cst_20 = arith.constant dense<0.000000e+00> : vector<2x8xf32>
    %62 = vector.multi_reduction <add>, %61, %cst_20 [2] : vector<2x8x8xf32> to vector<2x8xf32>
    %63 = vector.shape_cast %62 : vector<2x8xf32> to vector<2x8x1xf32>
    %64 = tpu.reciprocal %63 {approx = true} : vector<2x8x1xf32> -> vector<2x8x1xf32>
    %65 = vector.broadcast %64 : vector<2x8x1xf32> to vector<2x8x8xf32>
    %66 = arith.mulf %61, %65 : vector<2x8x8xf32>
    %67 = arith.truncf %66 : vector<2x8x8xf32> to vector<2x8x8xbf16>
    "tpu.trace_start"() <{level = 10 : i32, message = "bqk,bkd->bqd"}> : () -> ()
    %cst_21 = arith.constant dense<0.000000e+00> : vector<2x8x8xf32>
    %68 = tpu.matmul %67, %54, %cst_21 {dimension_numbers = #tpu.dot_dimension_numbers<[2], [1], [1], [2], [0, 0, 0, 1, 1, 2], [0], [0]>} : vector<2x8x8xbf16>, vector<2x8x8xbf16>, vector<2x8x8xf32> -> vector<2x8x8xf32>
    "tpu.trace_stop"() : () -> ()
    %69 = vector.extract_strided_slice %44 {offsets = [0, 0, 8], sizes = [2, 8, 8], strides = [1, 1, 1]} : vector<2x8x32xf32> to vector<2x8x8xf32>
    %70 = arith.truncf %69 : vector<2x8x8xf32> to vector<2x8x8xbf16>
    %71 = vector.extract_strided_slice %46 {offsets = [0, 0, 8], sizes = [2, 8, 8], strides = [1, 1, 1]} : vector<2x8x32xf32> to vector<2x8x8xf32>
    %72 = arith.truncf %71 : vector<2x8x8xf32> to vector<2x8x8xbf16>
    %73 = vector.extract_strided_slice %48 {offsets = [0, 0, 8], sizes = [2, 8, 8], strides = [1, 1, 1]} : vector<2x8x32xf32> to vector<2x8x8xf32>
    %74 = arith.truncf %73 : vector<2x8x8xf32> to vector<2x8x8xbf16>
    "tpu.trace_start"() <{level = 10 : i32, message = "bqd,bkd->bqk"}> : () -> ()
    %cst_22 = arith.constant dense<0.000000e+00> : vector<2x8x8xf32>
    %75 = tpu.matmul %70, %72, %cst_22 {dimension_numbers = #tpu.dot_dimension_numbers<[2], [2], [1], [1], [0, 0, 0, 1, 1, 1], [0], [0]>} : vector<2x8x8xbf16>, vector<2x8x8xbf16>, vector<2x8x8xf32> -> vector<2x8x8xf32>
    "tpu.trace_stop"() : () -> ()
    %76 = arith.addf %75, %2 : vector<2x8x8xf32>
    %cst_23 = arith.constant dense<0xFF800000> : vector<2x8xf32>
    %77 = vector.multi_reduction <maximumf>, %76, %cst_23 [2] : vector<2x8x8xf32> to vector<2x8xf32>
    %78 = vector.shape_cast %77 : vector<2x8xf32> to vector<2x8x1xf32>
    %79 = vector.broadcast %78 : vector<2x8x1xf32> to vector<2x8x8xf32>
    %80 = arith.subf %76, %79 : vector<2x8x8xf32>
    %81 = math.exp %80 : vector<2x8x8xf32>
    %cst_24 = arith.constant dense<0.000000e+00> : vector<2x8xf32>
    %82 = vector.multi_reduction <add>, %81, %cst_24 [2] : vector<2x8x8xf32> to vector<2x8xf32>
    %83 = vector.shape_cast %82 : vector<2x8xf32> to vector<2x8x1xf32>
    %84 = tpu.reciprocal %83 {approx = true} : vector<2x8x1xf32> -> vector<2x8x1xf32>
    %85 = vector.broadcast %84 : vector<2x8x1xf32> to vector<2x8x8xf32>
    %86 = arith.mulf %81, %85 : vector<2x8x8xf32>
    %87 = arith.truncf %86 : vector<2x8x8xf32> to vector<2x8x8xbf16>
    "tpu.trace_start"() <{level = 10 : i32, message = "bqk,bkd->bqd"}> : () -> ()
    %cst_25 = arith.constant dense<0.000000e+00> : vector<2x8x8xf32>
    %88 = tpu.matmul %87, %74, %cst_25 {dimension_numbers = #tpu.dot_dimension_numbers<[2], [1], [1], [2], [0, 0, 0, 1, 1, 2], [0], [0]>} : vector<2x8x8xbf16>, vector<2x8x8xbf16>, vector<2x8x8xf32> -> vector<2x8x8xf32>
    "tpu.trace_stop"() : () -> ()
    %89 = vector.extract_strided_slice %44 {offsets = [0, 0, 16], sizes = [2, 8, 8], strides = [1, 1, 1]} : vector<2x8x32xf32> to vector<2x8x8xf32>
    %90 = arith.truncf %89 : vector<2x8x8xf32> to vector<2x8x8xbf16>
    %91 = vector.extract_strided_slice %46 {offsets = [0, 0, 16], sizes = [2, 8, 8], strides = [1, 1, 1]} : vector<2x8x32xf32> to vector<2x8x8xf32>
    %92 = arith.truncf %91 : vector<2x8x8xf32> to vector<2x8x8xbf16>
    %93 = vector.extract_strided_slice %48 {offsets = [0, 0, 16], sizes = [2, 8, 8], strides = [1, 1, 1]} : vector<2x8x32xf32> to vector<2x8x8xf32>
    %94 = arith.truncf %93 : vector<2x8x8xf32> to vector<2x8x8xbf16>
    "tpu.trace_start"() <{level = 10 : i32, message = "bqd,bkd->bqk"}> : () -> ()
    %cst_26 = arith.constant dense<0.000000e+00> : vector<2x8x8xf32>
    %95 = tpu.matmul %90, %92, %cst_26 {dimension_numbers = #tpu.dot_dimension_numbers<[2], [2], [1], [1], [0, 0, 0, 1, 1, 1], [0], [0]>} : vector<2x8x8xbf16>, vector<2x8x8xbf16>, vector<2x8x8xf32> -> vector<2x8x8xf32>
    "tpu.trace_stop"() : () -> ()
    %96 = arith.addf %95, %2 : vector<2x8x8xf32>
    %cst_27 = arith.constant dense<0xFF800000> : vector<2x8xf32>
    %97 = vector.multi_reduction <maximumf>, %96, %cst_27 [2] : vector<2x8x8xf32> to vector<2x8xf32>
    %98 = vector.shape_cast %97 : vector<2x8xf32> to vector<2x8x1xf32>
    %99 = vector.broadcast %98 : vector<2x8x1xf32> to vector<2x8x8xf32>
    %100 = arith.subf %96, %99 : vector<2x8x8xf32>
    %101 = math.exp %100 : vector<2x8x8xf32>
    %cst_28 = arith.constant dense<0.000000e+00> : vector<2x8xf32>
    %102 = vector.multi_reduction <add>, %101, %cst_28 [2] : vector<2x8x8xf32> to vector<2x8xf32>
    %103 = vector.shape_cast %102 : vector<2x8xf32> to vector<2x8x1xf32>
    %104 = tpu.reciprocal %103 {approx = true} : vector<2x8x1xf32> -> vector<2x8x1xf32>
    %105 = vector.broadcast %104 : vector<2x8x1xf32> to vector<2x8x8xf32>
    %106 = arith.mulf %101, %105 : vector<2x8x8xf32>
    %107 = arith.truncf %106 : vector<2x8x8xf32> to vector<2x8x8xbf16>
    "tpu.trace_start"() <{level = 10 : i32, message = "bqk,bkd->bqd"}> : () -> ()
    %cst_29 = arith.constant dense<0.000000e+00> : vector<2x8x8xf32>
    %108 = tpu.matmul %107, %94, %cst_29 {dimension_numbers = #tpu.dot_dimension_numbers<[2], [1], [1], [2], [0, 0, 0, 1, 1, 2], [0], [0]>} : vector<2x8x8xbf16>, vector<2x8x8xbf16>, vector<2x8x8xf32> -> vector<2x8x8xf32>
    "tpu.trace_stop"() : () -> ()
    %109 = vector.extract_strided_slice %44 {offsets = [0, 0, 24], sizes = [2, 8, 8], strides = [1, 1, 1]} : vector<2x8x32xf32> to vector<2x8x8xf32>
    %110 = arith.truncf %109 : vector<2x8x8xf32> to vector<2x8x8xbf16>
    %111 = vector.extract_strided_slice %46 {offsets = [0, 0, 24], sizes = [2, 8, 8], strides = [1, 1, 1]} : vector<2x8x32xf32> to vector<2x8x8xf32>
    %112 = arith.truncf %111 : vector<2x8x8xf32> to vector<2x8x8xbf16>
    %113 = vector.extract_strided_slice %48 {offsets = [0, 0, 24], sizes = [2, 8, 8], strides = [1, 1, 1]} : vector<2x8x32xf32> to vector<2x8x8xf32>
    %114 = arith.truncf %113 : vector<2x8x8xf32> to vector<2x8x8xbf16>
    "tpu.trace_start"() <{level = 10 : i32, message = "bqd,bkd->bqk"}> : () -> ()
    %cst_30 = arith.constant dense<0.000000e+00> : vector<2x8x8xf32>
    %115 = tpu.matmul %110, %112, %cst_30 {dimension_numbers = #tpu.dot_dimension_numbers<[2], [2], [1], [1], [0, 0, 0, 1, 1, 1], [0], [0]>} : vector<2x8x8xbf16>, vector<2x8x8xbf16>, vector<2x8x8xf32> -> vector<2x8x8xf32>
    "tpu.trace_stop"() : () -> ()
    %116 = arith.addf %115, %2 : vector<2x8x8xf32>
    %cst_31 = arith.constant dense<0xFF800000> : vector<2x8xf32>
    %117 = vector.multi_reduction <maximumf>, %116, %cst_31 [2] : vector<2x8x8xf32> to vector<2x8xf32>
    %118 = vector.shape_cast %117 : vector<2x8xf32> to vector<2x8x1xf32>
    %119 = vector.broadcast %118 : vector<2x8x1xf32> to vector<2x8x8xf32>
    %120 = arith.subf %116, %119 : vector<2x8x8xf32>
    %121 = math.exp %120 : vector<2x8x8xf32>
    %cst_32 = arith.constant dense<0.000000e+00> : vector<2x8xf32>
    %122 = vector.multi_reduction <add>, %121, %cst_32 [2] : vector<2x8x8xf32> to vector<2x8xf32>
    %123 = vector.shape_cast %122 : vector<2x8xf32> to vector<2x8x1xf32>
    %124 = tpu.reciprocal %123 {approx = true} : vector<2x8x1xf32> -> vector<2x8x1xf32>
    %125 = vector.broadcast %124 : vector<2x8x1xf32> to vector<2x8x8xf32>
    %126 = arith.mulf %121, %125 : vector<2x8x8xf32>
    %127 = arith.truncf %126 : vector<2x8x8xf32> to vector<2x8x8xbf16>
    "tpu.trace_start"() <{level = 10 : i32, message = "bqk,bkd->bqd"}> : () -> ()
    %cst_33 = arith.constant dense<0.000000e+00> : vector<2x8x8xf32>
    %128 = tpu.matmul %127, %114, %cst_33 {dimension_numbers = #tpu.dot_dimension_numbers<[2], [1], [1], [2], [0, 0, 0, 1, 1, 2], [0], [0]>} : vector<2x8x8xbf16>, vector<2x8x8xbf16>, vector<2x8x8xf32> -> vector<2x8x8xf32>
    "tpu.trace_stop"() : () -> ()
    %129 = tpu.concatenate %68, %88, %108, %128 in 2 : vector<2x8x8xf32>, vector<2x8x8xf32>, vector<2x8x8xf32>, vector<2x8x8xf32> -> vector<2x8x32xf32>
    %130 = vector.shape_cast %129 : vector<2x8x32xf32> to vector<16x32xf32>
    %131 = arith.truncf %130 : vector<16x32xf32> to vector<16x32xbf16>
    %132 = arith.index_cast %c0_i32 : i32 to index
    %c0_34 = arith.constant 0 : index
    %c0_35 = arith.constant 0 : index
    %133 = vector.load %arg8[%132, %c0_34, %c0_35] : memref<2x32x32xbf16, #tpu.memory_space<vmem>>, vector<1x32x32xbf16>
    %134 = vector.shape_cast %133 : vector<1x32x32xbf16> to vector<32x32xbf16>
    %cst_36 = arith.constant dense<0.000000e+00> : vector<16x32xf32>
    %135 = tpu.matmul %131, %134, %cst_36 {dimension_numbers = #tpu.dot_dimension_numbers<[1], [0], [0], [1], [0, 0, 1, 1], [], []>} : vector<16x32xbf16>, vector<32x32xbf16>, vector<16x32xf32> -> vector<16x32xf32>
    %136 = arith.index_cast %c0_i32 : i32 to index
    %c0_37 = arith.constant 0 : index
    %c0_38 = arith.constant 0 : index
    %137 = vector.load %arg9[%136, %c0_37, %c0_38] : memref<2x1x32xf32, #tpu.memory_space<vmem>>, vector<1x1x32xf32>
    %138 = vector.shape_cast %137 : vector<1x1x32xf32> to vector<1x32xf32>
    %139 = vector.broadcast %138 : vector<1x32xf32> to vector<16x32xf32>
    %140 = arith.addf %135, %139 : vector<16x32xf32>
    %141 = arith.addf %4, %140 : vector<16x32xf32>
    %142 = arith.index_cast %c0_i32 : i32 to index
    %c0_39 = arith.constant 0 : index
    %c0_40 = arith.constant 0 : index
    %143 = vector.load %arg10[%142, %c0_39, %c0_40] : memref<2x1x32xf32, #tpu.memory_space<vmem>>, vector<1x1x32xf32>
    %144 = vector.shape_cast %143 : vector<1x1x32xf32> to vector<1x32xf32>
    %145 = arith.index_cast %c0_i32 : i32 to index
    %c0_41 = arith.constant 0 : index
    %c0_42 = arith.constant 0 : index
    %146 = vector.load %arg11[%145, %c0_41, %c0_42] : memref<2x1x32xf32, #tpu.memory_space<vmem>>, vector<1x1x32xf32>
    %147 = vector.shape_cast %146 : vector<1x1x32xf32> to vector<1x32xf32>
    %cst_43 = arith.constant dense<0.000000e+00> : vector<16xf32>
    %148 = vector.multi_reduction <add>, %141, %cst_43 [1] : vector<16x32xf32> to vector<16xf32>
    %149 = vector.shape_cast %148 : vector<16xf32> to vector<16x1xf32>
    %cst_44 = arith.constant 3.200000e+01 : f32
    %150 = vector.broadcast %cst_44 : f32 to vector<16x1xf32>
    %151 = arith.divf %149, %150 : vector<16x1xf32>
    %152 = vector.broadcast %151 : vector<16x1xf32> to vector<16x32xf32>
    %153 = arith.subf %141, %152 : vector<16x32xf32>
    %154 = arith.mulf %153, %153 : vector<16x32xf32>
    %cst_45 = arith.constant dense<0.000000e+00> : vector<16xf32>
    %155 = vector.multi_reduction <add>, %154, %cst_45 [1] : vector<16x32xf32> to vector<16xf32>
    %156 = vector.shape_cast %155 : vector<16xf32> to vector<16x1xf32>
    %cst_46 = arith.constant 3.200000e+01 : f32
    %157 = vector.broadcast %cst_46 : f32 to vector<16x1xf32>
    %158 = arith.divf %156, %157 : vector<16x1xf32>
    %159 = vector.broadcast %151 : vector<16x1xf32> to vector<16x32xf32>
    %160 = arith.subf %141, %159 : vector<16x32xf32>
    %cst_47 = arith.constant 9.99999974E-6 : f32
    %161 = vector.broadcast %cst_47 : f32 to vector<16x1xf32>
    %162 = arith.addf %158, %161 : vector<16x1xf32>
    %163 = math.rsqrt %162 : vector<16x1xf32>
    %164 = vector.broadcast %163 : vector<16x1xf32> to vector<16x32xf32>
    %165 = arith.mulf %160, %164 : vector<16x32xf32>
    %166 = vector.broadcast %144 : vector<1x32xf32> to vector<16x32xf32>
    %167 = arith.mulf %165, %166 : vector<16x32xf32>
    %168 = vector.broadcast %147 : vector<1x32xf32> to vector<16x32xf32>
    %169 = arith.addf %167, %168 : vector<16x32xf32>
    %170 = arith.truncf %169 : vector<16x32xf32> to vector<16x32xbf16>
    %171 = arith.index_cast %c0_i32 : i32 to index
    %c0_48 = arith.constant 0 : index
    %c0_49 = arith.constant 0 : index
    %172 = vector.load %arg12[%171, %c0_48, %c0_49] : memref<2x32x128xbf16, #tpu.memory_space<vmem>>, vector<1x32x128xbf16>
    %173 = vector.shape_cast %172 : vector<1x32x128xbf16> to vector<32x128xbf16>
    %cst_50 = arith.constant dense<0.000000e+00> : vector<16x128xf32>
    %174 = tpu.matmul %170, %173, %cst_50 {dimension_numbers = #tpu.dot_dimension_numbers<[1], [0], [0], [1], [0, 0, 1, 1], [], []>} : vector<16x32xbf16>, vector<32x128xbf16>, vector<16x128xf32> -> vector<16x128xf32>
    %175 = arith.index_cast %c0_i32 : i32 to index
    %c0_51 = arith.constant 0 : index
    %c0_52 = arith.constant 0 : index
    %176 = vector.load %arg13[%175, %c0_51, %c0_52] : memref<2x1x128xf32, #tpu.memory_space<vmem>>, vector<1x1x128xf32>
    %177 = vector.shape_cast %176 : vector<1x1x128xf32> to vector<1x128xf32>
    %178 = vector.broadcast %177 : vector<1x128xf32> to vector<16x128xf32>
    %179 = arith.addf %174, %178 : vector<16x128xf32>
    %cst_53 = arith.constant 0.000000e+00 : f32
    %180 = vector.broadcast %cst_53 : f32 to vector<16x128xf32>
    %181 = arith.maximumf %179, %180 : vector<16x128xf32>
    %182 = arith.truncf %181 : vector<16x128xf32> to vector<16x128xbf16>
    %183 = arith.index_cast %c0_i32 : i32 to index
    %c0_54 = arith.constant 0 : index
    %c0_55 = arith.constant 0 : index
    %184 = vector.load %arg14[%183, %c0_54, %c0_55] : memref<2x128x32xbf16, #tpu.memory_space<vmem>>, vector<1x128x32xbf16>
    %185 = vector.shape_cast %184 : vector<1x128x32xbf16> to vector<128x32xbf16>
    %cst_56 = arith.constant dense<0.000000e+00> : vector<16x32xf32>
    %186 = tpu.matmul %182, %185, %cst_56 {dimension_numbers = #tpu.dot_dimension_numbers<[1], [0], [0], [1], [0, 0, 1, 1], [], []>} : vector<16x128xbf16>, vector<128x32xbf16>, vector<16x32xf32> -> vector<16x32xf32>
    %187 = arith.addf %141, %186 : vector<16x32xf32>
    %188 = arith.index_cast %c0_i32 : i32 to index
    %c0_57 = arith.constant 0 : index
    %c0_58 = arith.constant 0 : index
    %189 = vector.load %arg15[%188, %c0_57, %c0_58] : memref<2x1x32xf32, #tpu.memory_space<vmem>>, vector<1x1x32xf32>
    %190 = vector.shape_cast %189 : vector<1x1x32xf32> to vector<1x32xf32>
    %191 = vector.broadcast %190 : vector<1x32xf32> to vector<16x32xf32>
    %192 = arith.addf %187, %191 : vector<16x32xf32>
    %c1_i32 = arith.constant 1 : i32
    %193 = arith.index_cast %c1_i32 : i32 to index
    %c0_59 = arith.constant 0 : index
    %c0_60 = arith.constant 0 : index
    %194 = vector.load %arg4[%193, %c0_59, %c0_60] : memref<2x1x32xf32, #tpu.memory_space<vmem>>, vector<1x1x32xf32>
    %195 = vector.shape_cast %194 : vector<1x1x32xf32> to vector<1x32xf32>
    %196 = arith.index_cast %c1_i32 : i32 to index
    %c0_61 = arith.constant 0 : index
    %c0_62 = arith.constant 0 : index
    %197 = vector.load %arg5[%196, %c0_61, %c0_62] : memref<2x1x32xf32, #tpu.memory_space<vmem>>, vector<1x1x32xf32>
    %198 = vector.shape_cast %197 : vector<1x1x32xf32> to vector<1x32xf32>
    %cst_63 = arith.constant dense<0.000000e+00> : vector<16xf32>
    %199 = vector.multi_reduction <add>, %192, %cst_63 [1] : vector<16x32xf32> to vector<16xf32>
    %200 = vector.shape_cast %199 : vector<16xf32> to vector<16x1xf32>
    %cst_64 = arith.constant 3.200000e+01 : f32
    %201 = vector.broadcast %cst_64 : f32 to vector<16x1xf32>
    %202 = arith.divf %200, %201 : vector<16x1xf32>
    %203 = vector.broadcast %202 : vector<16x1xf32> to vector<16x32xf32>
    %204 = arith.subf %192, %203 : vector<16x32xf32>
    %205 = arith.mulf %204, %204 : vector<16x32xf32>
    %cst_65 = arith.constant dense<0.000000e+00> : vector<16xf32>
    %206 = vector.multi_reduction <add>, %205, %cst_65 [1] : vector<16x32xf32> to vector<16xf32>
    %207 = vector.shape_cast %206 : vector<16xf32> to vector<16x1xf32>
    %cst_66 = arith.constant 3.200000e+01 : f32
    %208 = vector.broadcast %cst_66 : f32 to vector<16x1xf32>
    %209 = arith.divf %207, %208 : vector<16x1xf32>
    %210 = vector.broadcast %202 : vector<16x1xf32> to vector<16x32xf32>
    %211 = arith.subf %192, %210 : vector<16x32xf32>
    %cst_67 = arith.constant 9.99999974E-6 : f32
    %212 = vector.broadcast %cst_67 : f32 to vector<16x1xf32>
    %213 = arith.addf %209, %212 : vector<16x1xf32>
    %214 = math.rsqrt %213 : vector<16x1xf32>
    %215 = vector.broadcast %214 : vector<16x1xf32> to vector<16x32xf32>
    %216 = arith.mulf %211, %215 : vector<16x32xf32>
    %217 = vector.broadcast %195 : vector<1x32xf32> to vector<16x32xf32>
    %218 = arith.mulf %216, %217 : vector<16x32xf32>
    %219 = vector.broadcast %198 : vector<1x32xf32> to vector<16x32xf32>
    %220 = arith.addf %218, %219 : vector<16x32xf32>
    %221 = arith.truncf %220 : vector<16x32xf32> to vector<16x32xbf16>
    %222 = arith.index_cast %c1_i32 : i32 to index
    %c0_68 = arith.constant 0 : index
    %c0_69 = arith.constant 0 : index
    %223 = vector.load %arg6[%222, %c0_68, %c0_69] : memref<2x32x96xbf16, #tpu.memory_space<vmem>>, vector<1x32x96xbf16>
    %224 = vector.shape_cast %223 : vector<1x32x96xbf16> to vector<32x96xbf16>
    %cst_70 = arith.constant dense<0.000000e+00> : vector<16x96xf32>
    %225 = tpu.matmul %221, %224, %cst_70 {dimension_numbers = #tpu.dot_dimension_numbers<[1], [0], [0], [1], [0, 0, 1, 1], [], []>} : vector<16x32xbf16>, vector<32x96xbf16>, vector<16x96xf32> -> vector<16x96xf32>
    %226 = arith.index_cast %c1_i32 : i32 to index
    %c0_71 = arith.constant 0 : index
    %c0_72 = arith.constant 0 : index
    %227 = vector.load %arg7[%226, %c0_71, %c0_72] : memref<2x1x96xf32, #tpu.memory_space<vmem>>, vector<1x1x96xf32>
    %228 = vector.shape_cast %227 : vector<1x1x96xf32> to vector<1x96xf32>
    %229 = vector.broadcast %228 : vector<1x96xf32> to vector<16x96xf32>
    %230 = arith.addf %225, %229 : vector<16x96xf32>
    %231 = vector.extract_strided_slice %230 {offsets = [0, 0], sizes = [16, 32], strides = [1, 1]} : vector<16x96xf32> to vector<16x32xf32>
    %232 = vector.shape_cast %231 : vector<16x32xf32> to vector<2x8x32xf32>
    %233 = vector.extract_strided_slice %230 {offsets = [0, 32], sizes = [16, 32], strides = [1, 1]} : vector<16x96xf32> to vector<16x32xf32>
    %234 = vector.shape_cast %233 : vector<16x32xf32> to vector<2x8x32xf32>
    %235 = vector.extract_strided_slice %230 {offsets = [0, 64], sizes = [16, 32], strides = [1, 1]} : vector<16x96xf32> to vector<16x32xf32>
    %236 = vector.shape_cast %235 : vector<16x32xf32> to vector<2x8x32xf32>
    %237 = vector.extract_strided_slice %232 {offsets = [0, 0, 0], sizes = [2, 8, 8], strides = [1, 1, 1]} : vector<2x8x32xf32> to vector<2x8x8xf32>
    %238 = arith.truncf %237 : vector<2x8x8xf32> to vector<2x8x8xbf16>
    %239 = vector.extract_strided_slice %234 {offsets = [0, 0, 0], sizes = [2, 8, 8], strides = [1, 1, 1]} : vector<2x8x32xf32> to vector<2x8x8xf32>
    %240 = arith.truncf %239 : vector<2x8x8xf32> to vector<2x8x8xbf16>
    %241 = vector.extract_strided_slice %236 {offsets = [0, 0, 0], sizes = [2, 8, 8], strides = [1, 1, 1]} : vector<2x8x32xf32> to vector<2x8x8xf32>
    %242 = arith.truncf %241 : vector<2x8x8xf32> to vector<2x8x8xbf16>
    "tpu.trace_start"() <{level = 10 : i32, message = "bqd,bkd->bqk"}> : () -> ()
    %cst_73 = arith.constant dense<0.000000e+00> : vector<2x8x8xf32>
    %243 = tpu.matmul %238, %240, %cst_73 {dimension_numbers = #tpu.dot_dimension_numbers<[2], [2], [1], [1], [0, 0, 0, 1, 1, 1], [0], [0]>} : vector<2x8x8xbf16>, vector<2x8x8xbf16>, vector<2x8x8xf32> -> vector<2x8x8xf32>
    "tpu.trace_stop"() : () -> ()
    %244 = arith.addf %243, %2 : vector<2x8x8xf32>
    %cst_74 = arith.constant dense<0xFF800000> : vector<2x8xf32>
    %245 = vector.multi_reduction <maximumf>, %244, %cst_74 [2] : vector<2x8x8xf32> to vector<2x8xf32>
    %246 = vector.shape_cast %245 : vector<2x8xf32> to vector<2x8x1xf32>
    %247 = vector.broadcast %246 : vector<2x8x1xf32> to vector<2x8x8xf32>
    %248 = arith.subf %244, %247 : vector<2x8x8xf32>
    %249 = math.exp %248 : vector<2x8x8xf32>
    %cst_75 = arith.constant dense<0.000000e+00> : vector<2x8xf32>
    %250 = vector.multi_reduction <add>, %249, %cst_75 [2] : vector<2x8x8xf32> to vector<2x8xf32>
    %251 = vector.shape_cast %250 : vector<2x8xf32> to vector<2x8x1xf32>
    %252 = tpu.reciprocal %251 {approx = true} : vector<2x8x1xf32> -> vector<2x8x1xf32>
    %253 = vector.broadcast %252 : vector<2x8x1xf32> to vector<2x8x8xf32>
    %254 = arith.mulf %249, %253 : vector<2x8x8xf32>
    %255 = arith.truncf %254 : vector<2x8x8xf32> to vector<2x8x8xbf16>
    "tpu.trace_start"() <{level = 10 : i32, message = "bqk,bkd->bqd"}> : () -> ()
    %cst_76 = arith.constant dense<0.000000e+00> : vector<2x8x8xf32>
    %256 = tpu.matmul %255, %242, %cst_76 {dimension_numbers = #tpu.dot_dimension_numbers<[2], [1], [1], [2], [0, 0, 0, 1, 1, 2], [0], [0]>} : vector<2x8x8xbf16>, vector<2x8x8xbf16>, vector<2x8x8xf32> -> vector<2x8x8xf32>
    "tpu.trace_stop"() : () -> ()
    %257 = vector.extract_strided_slice %232 {offsets = [0, 0, 8], sizes = [2, 8, 8], strides = [1, 1, 1]} : vector<2x8x32xf32> to vector<2x8x8xf32>
    %258 = arith.truncf %257 : vector<2x8x8xf32> to vector<2x8x8xbf16>
    %259 = vector.extract_strided_slice %234 {offsets = [0, 0, 8], sizes = [2, 8, 8], strides = [1, 1, 1]} : vector<2x8x32xf32> to vector<2x8x8xf32>
    %260 = arith.truncf %259 : vector<2x8x8xf32> to vector<2x8x8xbf16>
    %261 = vector.extract_strided_slice %236 {offsets = [0, 0, 8], sizes = [2, 8, 8], strides = [1, 1, 1]} : vector<2x8x32xf32> to vector<2x8x8xf32>
    %262 = arith.truncf %261 : vector<2x8x8xf32> to vector<2x8x8xbf16>
    "tpu.trace_start"() <{level = 10 : i32, message = "bqd,bkd->bqk"}> : () -> ()
    %cst_77 = arith.constant dense<0.000000e+00> : vector<2x8x8xf32>
    %263 = tpu.matmul %258, %260, %cst_77 {dimension_numbers = #tpu.dot_dimension_numbers<[2], [2], [1], [1], [0, 0, 0, 1, 1, 1], [0], [0]>} : vector<2x8x8xbf16>, vector<2x8x8xbf16>, vector<2x8x8xf32> -> vector<2x8x8xf32>
    "tpu.trace_stop"() : () -> ()
    %264 = arith.addf %263, %2 : vector<2x8x8xf32>
    %cst_78 = arith.constant dense<0xFF800000> : vector<2x8xf32>
    %265 = vector.multi_reduction <maximumf>, %264, %cst_78 [2] : vector<2x8x8xf32> to vector<2x8xf32>
    %266 = vector.shape_cast %265 : vector<2x8xf32> to vector<2x8x1xf32>
    %267 = vector.broadcast %266 : vector<2x8x1xf32> to vector<2x8x8xf32>
    %268 = arith.subf %264, %267 : vector<2x8x8xf32>
    %269 = math.exp %268 : vector<2x8x8xf32>
    %cst_79 = arith.constant dense<0.000000e+00> : vector<2x8xf32>
    %270 = vector.multi_reduction <add>, %269, %cst_79 [2] : vector<2x8x8xf32> to vector<2x8xf32>
    %271 = vector.shape_cast %270 : vector<2x8xf32> to vector<2x8x1xf32>
    %272 = tpu.reciprocal %271 {approx = true} : vector<2x8x1xf32> -> vector<2x8x1xf32>
    %273 = vector.broadcast %272 : vector<2x8x1xf32> to vector<2x8x8xf32>
    %274 = arith.mulf %269, %273 : vector<2x8x8xf32>
    %275 = arith.truncf %274 : vector<2x8x8xf32> to vector<2x8x8xbf16>
    "tpu.trace_start"() <{level = 10 : i32, message = "bqk,bkd->bqd"}> : () -> ()
    %cst_80 = arith.constant dense<0.000000e+00> : vector<2x8x8xf32>
    %276 = tpu.matmul %275, %262, %cst_80 {dimension_numbers = #tpu.dot_dimension_numbers<[2], [1], [1], [2], [0, 0, 0, 1, 1, 2], [0], [0]>} : vector<2x8x8xbf16>, vector<2x8x8xbf16>, vector<2x8x8xf32> -> vector<2x8x8xf32>
    "tpu.trace_stop"() : () -> ()
    %277 = vector.extract_strided_slice %232 {offsets = [0, 0, 16], sizes = [2, 8, 8], strides = [1, 1, 1]} : vector<2x8x32xf32> to vector<2x8x8xf32>
    %278 = arith.truncf %277 : vector<2x8x8xf32> to vector<2x8x8xbf16>
    %279 = vector.extract_strided_slice %234 {offsets = [0, 0, 16], sizes = [2, 8, 8], strides = [1, 1, 1]} : vector<2x8x32xf32> to vector<2x8x8xf32>
    %280 = arith.truncf %279 : vector<2x8x8xf32> to vector<2x8x8xbf16>
    %281 = vector.extract_strided_slice %236 {offsets = [0, 0, 16], sizes = [2, 8, 8], strides = [1, 1, 1]} : vector<2x8x32xf32> to vector<2x8x8xf32>
    %282 = arith.truncf %281 : vector<2x8x8xf32> to vector<2x8x8xbf16>
    "tpu.trace_start"() <{level = 10 : i32, message = "bqd,bkd->bqk"}> : () -> ()
    %cst_81 = arith.constant dense<0.000000e+00> : vector<2x8x8xf32>
    %283 = tpu.matmul %278, %280, %cst_81 {dimension_numbers = #tpu.dot_dimension_numbers<[2], [2], [1], [1], [0, 0, 0, 1, 1, 1], [0], [0]>} : vector<2x8x8xbf16>, vector<2x8x8xbf16>, vector<2x8x8xf32> -> vector<2x8x8xf32>
    "tpu.trace_stop"() : () -> ()
    %284 = arith.addf %283, %2 : vector<2x8x8xf32>
    %cst_82 = arith.constant dense<0xFF800000> : vector<2x8xf32>
    %285 = vector.multi_reduction <maximumf>, %284, %cst_82 [2] : vector<2x8x8xf32> to vector<2x8xf32>
    %286 = vector.shape_cast %285 : vector<2x8xf32> to vector<2x8x1xf32>
    %287 = vector.broadcast %286 : vector<2x8x1xf32> to vector<2x8x8xf32>
    %288 = arith.subf %284, %287 : vector<2x8x8xf32>
    %289 = math.exp %288 : vector<2x8x8xf32>
    %cst_83 = arith.constant dense<0.000000e+00> : vector<2x8xf32>
    %290 = vector.multi_reduction <add>, %289, %cst_83 [2] : vector<2x8x8xf32> to vector<2x8xf32>
    %291 = vector.shape_cast %290 : vector<2x8xf32> to vector<2x8x1xf32>
    %292 = tpu.reciprocal %291 {approx = true} : vector<2x8x1xf32> -> vector<2x8x1xf32>
    %293 = vector.broadcast %292 : vector<2x8x1xf32> to vector<2x8x8xf32>
    %294 = arith.mulf %289, %293 : vector<2x8x8xf32>
    %295 = arith.truncf %294 : vector<2x8x8xf32> to vector<2x8x8xbf16>
    "tpu.trace_start"() <{level = 10 : i32, message = "bqk,bkd->bqd"}> : () -> ()
    %cst_84 = arith.constant dense<0.000000e+00> : vector<2x8x8xf32>
    %296 = tpu.matmul %295, %282, %cst_84 {dimension_numbers = #tpu.dot_dimension_numbers<[2], [1], [1], [2], [0, 0, 0, 1, 1, 2], [0], [0]>} : vector<2x8x8xbf16>, vector<2x8x8xbf16>, vector<2x8x8xf32> -> vector<2x8x8xf32>
    "tpu.trace_stop"() : () -> ()
    %297 = vector.extract_strided_slice %232 {offsets = [0, 0, 24], sizes = [2, 8, 8], strides = [1, 1, 1]} : vector<2x8x32xf32> to vector<2x8x8xf32>
    %298 = arith.truncf %297 : vector<2x8x8xf32> to vector<2x8x8xbf16>
    %299 = vector.extract_strided_slice %234 {offsets = [0, 0, 24], sizes = [2, 8, 8], strides = [1, 1, 1]} : vector<2x8x32xf32> to vector<2x8x8xf32>
    %300 = arith.truncf %299 : vector<2x8x8xf32> to vector<2x8x8xbf16>
    %301 = vector.extract_strided_slice %236 {offsets = [0, 0, 24], sizes = [2, 8, 8], strides = [1, 1, 1]} : vector<2x8x32xf32> to vector<2x8x8xf32>
    %302 = arith.truncf %301 : vector<2x8x8xf32> to vector<2x8x8xbf16>
    "tpu.trace_start"() <{level = 10 : i32, message = "bqd,bkd->bqk"}> : () -> ()
    %cst_85 = arith.constant dense<0.000000e+00> : vector<2x8x8xf32>
    %303 = tpu.matmul %298, %300, %cst_85 {dimension_numbers = #tpu.dot_dimension_numbers<[2], [2], [1], [1], [0, 0, 0, 1, 1, 1], [0], [0]>} : vector<2x8x8xbf16>, vector<2x8x8xbf16>, vector<2x8x8xf32> -> vector<2x8x8xf32>
    "tpu.trace_stop"() : () -> ()
    %304 = arith.addf %303, %2 : vector<2x8x8xf32>
    %cst_86 = arith.constant dense<0xFF800000> : vector<2x8xf32>
    %305 = vector.multi_reduction <maximumf>, %304, %cst_86 [2] : vector<2x8x8xf32> to vector<2x8xf32>
    %306 = vector.shape_cast %305 : vector<2x8xf32> to vector<2x8x1xf32>
    %307 = vector.broadcast %306 : vector<2x8x1xf32> to vector<2x8x8xf32>
    %308 = arith.subf %304, %307 : vector<2x8x8xf32>
    %309 = math.exp %308 : vector<2x8x8xf32>
    %cst_87 = arith.constant dense<0.000000e+00> : vector<2x8xf32>
    %310 = vector.multi_reduction <add>, %309, %cst_87 [2] : vector<2x8x8xf32> to vector<2x8xf32>
    %311 = vector.shape_cast %310 : vector<2x8xf32> to vector<2x8x1xf32>
    %312 = tpu.reciprocal %311 {approx = true} : vector<2x8x1xf32> -> vector<2x8x1xf32>
    %313 = vector.broadcast %312 : vector<2x8x1xf32> to vector<2x8x8xf32>
    %314 = arith.mulf %309, %313 : vector<2x8x8xf32>
    %315 = arith.truncf %314 : vector<2x8x8xf32> to vector<2x8x8xbf16>
    "tpu.trace_start"() <{level = 10 : i32, message = "bqk,bkd->bqd"}> : () -> ()
    %cst_88 = arith.constant dense<0.000000e+00> : vector<2x8x8xf32>
    %316 = tpu.matmul %315, %302, %cst_88 {dimension_numbers = #tpu.dot_dimension_numbers<[2], [1], [1], [2], [0, 0, 0, 1, 1, 2], [0], [0]>} : vector<2x8x8xbf16>, vector<2x8x8xbf16>, vector<2x8x8xf32> -> vector<2x8x8xf32>
    "tpu.trace_stop"() : () -> ()
    %317 = tpu.concatenate %256, %276, %296, %316 in 2 : vector<2x8x8xf32>, vector<2x8x8xf32>, vector<2x8x8xf32>, vector<2x8x8xf32> -> vector<2x8x32xf32>
    %318 = vector.shape_cast %317 : vector<2x8x32xf32> to vector<16x32xf32>
    %319 = arith.truncf %318 : vector<16x32xf32> to vector<16x32xbf16>
    %320 = arith.index_cast %c1_i32 : i32 to index
    %c0_89 = arith.constant 0 : index
    %c0_90 = arith.constant 0 : index
    %321 = vector.load %arg8[%320, %c0_89, %c0_90] : memref<2x32x32xbf16, #tpu.memory_space<vmem>>, vector<1x32x32xbf16>
    %322 = vector.shape_cast %321 : vector<1x32x32xbf16> to vector<32x32xbf16>
    %cst_91 = arith.constant dense<0.000000e+00> : vector<16x32xf32>
    %323 = tpu.matmul %319, %322, %cst_91 {dimension_numbers = #tpu.dot_dimension_numbers<[1], [0], [0], [1], [0, 0, 1, 1], [], []>} : vector<16x32xbf16>, vector<32x32xbf16>, vector<16x32xf32> -> vector<16x32xf32>
    %324 = arith.index_cast %c1_i32 : i32 to index
    %c0_92 = arith.constant 0 : index
    %c0_93 = arith.constant 0 : index
    %325 = vector.load %arg9[%324, %c0_92, %c0_93] : memref<2x1x32xf32, #tpu.memory_space<vmem>>, vector<1x1x32xf32>
    %326 = vector.shape_cast %325 : vector<1x1x32xf32> to vector<1x32xf32>
    %327 = vector.broadcast %326 : vector<1x32xf32> to vector<16x32xf32>
    %328 = arith.addf %323, %327 : vector<16x32xf32>
    %329 = arith.addf %192, %328 : vector<16x32xf32>
    %330 = arith.index_cast %c1_i32 : i32 to index
    %c0_94 = arith.constant 0 : index
    %c0_95 = arith.constant 0 : index
    %331 = vector.load %arg10[%330, %c0_94, %c0_95] : memref<2x1x32xf32, #tpu.memory_space<vmem>>, vector<1x1x32xf32>
    %332 = vector.shape_cast %331 : vector<1x1x32xf32> to vector<1x32xf32>
    %333 = arith.index_cast %c1_i32 : i32 to index
    %c0_96 = arith.constant 0 : index
    %c0_97 = arith.constant 0 : index
    %334 = vector.load %arg11[%333, %c0_96, %c0_97] : memref<2x1x32xf32, #tpu.memory_space<vmem>>, vector<1x1x32xf32>
    %335 = vector.shape_cast %334 : vector<1x1x32xf32> to vector<1x32xf32>
    %cst_98 = arith.constant dense<0.000000e+00> : vector<16xf32>
    %336 = vector.multi_reduction <add>, %329, %cst_98 [1] : vector<16x32xf32> to vector<16xf32>
    %337 = vector.shape_cast %336 : vector<16xf32> to vector<16x1xf32>
    %cst_99 = arith.constant 3.200000e+01 : f32
    %338 = vector.broadcast %cst_99 : f32 to vector<16x1xf32>
    %339 = arith.divf %337, %338 : vector<16x1xf32>
    %340 = vector.broadcast %339 : vector<16x1xf32> to vector<16x32xf32>
    %341 = arith.subf %329, %340 : vector<16x32xf32>
    %342 = arith.mulf %341, %341 : vector<16x32xf32>
    %cst_100 = arith.constant dense<0.000000e+00> : vector<16xf32>
    %343 = vector.multi_reduction <add>, %342, %cst_100 [1] : vector<16x32xf32> to vector<16xf32>
    %344 = vector.shape_cast %343 : vector<16xf32> to vector<16x1xf32>
    %cst_101 = arith.constant 3.200000e+01 : f32
    %345 = vector.broadcast %cst_101 : f32 to vector<16x1xf32>
    %346 = arith.divf %344, %345 : vector<16x1xf32>
    %347 = vector.broadcast %339 : vector<16x1xf32> to vector<16x32xf32>
    %348 = arith.subf %329, %347 : vector<16x32xf32>
    %cst_102 = arith.constant 9.99999974E-6 : f32
    %349 = vector.broadcast %cst_102 : f32 to vector<16x1xf32>
    %350 = arith.addf %346, %349 : vector<16x1xf32>
    %351 = math.rsqrt %350 : vector<16x1xf32>
    %352 = vector.broadcast %351 : vector<16x1xf32> to vector<16x32xf32>
    %353 = arith.mulf %348, %352 : vector<16x32xf32>
    %354 = vector.broadcast %332 : vector<1x32xf32> to vector<16x32xf32>
    %355 = arith.mulf %353, %354 : vector<16x32xf32>
    %356 = vector.broadcast %335 : vector<1x32xf32> to vector<16x32xf32>
    %357 = arith.addf %355, %356 : vector<16x32xf32>
    %358 = arith.truncf %357 : vector<16x32xf32> to vector<16x32xbf16>
    %359 = arith.index_cast %c1_i32 : i32 to index
    %c0_103 = arith.constant 0 : index
    %c0_104 = arith.constant 0 : index
    %360 = vector.load %arg12[%359, %c0_103, %c0_104] : memref<2x32x128xbf16, #tpu.memory_space<vmem>>, vector<1x32x128xbf16>
    %361 = vector.shape_cast %360 : vector<1x32x128xbf16> to vector<32x128xbf16>
    %cst_105 = arith.constant dense<0.000000e+00> : vector<16x128xf32>
    %362 = tpu.matmul %358, %361, %cst_105 {dimension_numbers = #tpu.dot_dimension_numbers<[1], [0], [0], [1], [0, 0, 1, 1], [], []>} : vector<16x32xbf16>, vector<32x128xbf16>, vector<16x128xf32> -> vector<16x128xf32>
    %363 = arith.index_cast %c1_i32 : i32 to index
    %c0_106 = arith.constant 0 : index
    %c0_107 = arith.constant 0 : index
    %364 = vector.load %arg13[%363, %c0_106, %c0_107] : memref<2x1x128xf32, #tpu.memory_space<vmem>>, vector<1x1x128xf32>
    %365 = vector.shape_cast %364 : vector<1x1x128xf32> to vector<1x128xf32>
    %366 = vector.broadcast %365 : vector<1x128xf32> to vector<16x128xf32>
    %367 = arith.addf %362, %366 : vector<16x128xf32>
    %cst_108 = arith.constant 0.000000e+00 : f32
    %368 = vector.broadcast %cst_108 : f32 to vector<16x128xf32>
    %369 = arith.maximumf %367, %368 : vector<16x128xf32>
    %370 = arith.truncf %369 : vector<16x128xf32> to vector<16x128xbf16>
    %371 = arith.index_cast %c1_i32 : i32 to index
    %c0_109 = arith.constant 0 : index
    %c0_110 = arith.constant 0 : index
    %372 = vector.load %arg14[%371, %c0_109, %c0_110] : memref<2x128x32xbf16, #tpu.memory_space<vmem>>, vector<1x128x32xbf16>
    %373 = vector.shape_cast %372 : vector<1x128x32xbf16> to vector<128x32xbf16>
    %cst_111 = arith.constant dense<0.000000e+00> : vector<16x32xf32>
    %374 = tpu.matmul %370, %373, %cst_111 {dimension_numbers = #tpu.dot_dimension_numbers<[1], [0], [0], [1], [0, 0, 1, 1], [], []>} : vector<16x128xbf16>, vector<128x32xbf16>, vector<16x32xf32> -> vector<16x32xf32>
    %375 = arith.addf %329, %374 : vector<16x32xf32>
    %376 = arith.index_cast %c1_i32 : i32 to index
    %c0_112 = arith.constant 0 : index
    %c0_113 = arith.constant 0 : index
    %377 = vector.load %arg15[%376, %c0_112, %c0_113] : memref<2x1x32xf32, #tpu.memory_space<vmem>>, vector<1x1x32xf32>
    %378 = vector.shape_cast %377 : vector<1x1x32xf32> to vector<1x32xf32>
    %379 = vector.broadcast %378 : vector<1x32xf32> to vector<16x32xf32>
    %380 = arith.addf %375, %379 : vector<16x32xf32>
    %c2_i32 = arith.constant 2 : i32
    %c0_114 = arith.constant 0 : index
    %c0_115 = arith.constant 0 : index
    %381 = vector.load %arg21[%c0_114, %c0_115] : memref<16x32xf32, #tpu.memory_space<vmem>>, vector<16x32xf32>
    tpu.vector_store %arg21[%c0_114, %c0_115], %380 {strides = array<i32>} : memref<16x32xf32, #tpu.memory_space<vmem>>, vector<16x32xf32>,
    %c2_i32_116 = arith.constant 2 : i32
    %382 = arith.muli %arg0, %c2_i32_116 : i32
    %c0_i32_117 = arith.constant 0 : i32
    %383 = arith.addi %382, %c0_i32_117 : i32
    %384 = arith.index_cast %383 : i32 to index
    %385 = memref.load %arg1[%384] : memref<4xi32, #tpu.memory_space<smem>>
    %c0_i32_118 = arith.constant 0 : i32
    %386 = arith.addi %c0_i32_118, %385 : i32
    %387 = arith.index_cast %386 : i32 to index
    %c0_119 = arith.constant 0 : index
    %388 = vector.load %arg21[%387, %c0_119] : memref<16x32xf32, #tpu.memory_space<vmem>>, vector<1x32xf32>
    %c2_i32_120 = arith.constant 2 : i32
    %389 = arith.muli %arg0, %c2_i32_120 : i32
    %c1_i32_121 = arith.constant 1 : i32
    %390 = arith.addi %389, %c1_i32_121 : i32
    %391 = arith.index_cast %390 : i32 to index
    %392 = memref.load %arg1[%391] : memref<4xi32, #tpu.memory_space<smem>>
    %c8_i32 = arith.constant 8 : i32
    %393 = arith.addi %c8_i32, %392 : i32
    %394 = arith.index_cast %393 : i32 to index
    %c0_122 = arith.constant 0 : index
    %395 = vector.load %arg21[%394, %c0_122] : memref<16x32xf32, #tpu.memory_space<vmem>>, vector<1x32xf32>
    %396 = tpu.concatenate %388, %395 in 0 : vector<1x32xf32>, vector<1x32xf32> -> vector<2x32xf32>
    %c0_123 = arith.constant 0 : index
    %c0_124 = arith.constant 0 : index
    %397 = vector.load %arg16[%c0_123, %c0_124] : memref<1x32xf32, #tpu.memory_space<vmem>>, vector<1x32xf32>
    %c0_125 = arith.constant 0 : index
    %c0_126 = arith.constant 0 : index
    %398 = vector.load %arg17[%c0_125, %c0_126] : memref<1x32xf32, #tpu.memory_space<vmem>>, vector<1x32xf32>
    %cst_127 = arith.constant dense<0.000000e+00> : vector<2xf32>
    %399 = vector.multi_reduction <add>, %396, %cst_127 [1] : vector<2x32xf32> to vector<2xf32>
    %400 = vector.shape_cast %399 : vector<2xf32> to vector<2x1xf32>
    %cst_128 = arith.constant 3.200000e+01 : f32
    %401 = vector.broadcast %cst_128 : f32 to vector<2x1xf32>
    %402 = arith.divf %400, %401 : vector<2x1xf32>
    %403 = vector.broadcast %402 : vector<2x1xf32> to vector<2x32xf32>
    %404 = arith.subf %396, %403 : vector<2x32xf32>
    %405 = arith.mulf %404, %404 : vector<2x32xf32>
    %cst_129 = arith.constant dense<0.000000e+00> : vector<2xf32>
    %406 = vector.multi_reduction <add>, %405, %cst_129 [1] : vector<2x32xf32> to vector<2xf32>
    %407 = vector.shape_cast %406 : vector<2xf32> to vector<2x1xf32>
    %cst_130 = arith.constant 3.200000e+01 : f32
    %408 = vector.broadcast %cst_130 : f32 to vector<2x1xf32>
    %409 = arith.divf %407, %408 : vector<2x1xf32>
    %410 = vector.broadcast %402 : vector<2x1xf32> to vector<2x32xf32>
    %411 = arith.subf %396, %410 : vector<2x32xf32>
    %cst_131 = arith.constant 9.99999974E-6 : f32
    %412 = vector.broadcast %cst_131 : f32 to vector<2x1xf32>
    %413 = arith.addf %409, %412 : vector<2x1xf32>
    %414 = math.rsqrt %413 : vector<2x1xf32>
    %415 = vector.broadcast %414 : vector<2x1xf32> to vector<2x32xf32>
    %416 = arith.mulf %411, %415 : vector<2x32xf32>
    %417 = vector.broadcast %397 : vector<1x32xf32> to vector<2x32xf32>
    %418 = arith.mulf %416, %417 : vector<2x32xf32>
    %419 = vector.broadcast %398 : vector<1x32xf32> to vector<2x32xf32>
    %420 = arith.addf %418, %419 : vector<2x32xf32>
    %421 = arith.truncf %420 : vector<2x32xf32> to vector<2x32xbf16>
    %c0_132 = arith.constant 0 : index
    %c0_133 = arith.constant 0 : index
    %422 = vector.load %arg18[%c0_132, %c0_133] : memref<32x128xbf16, #tpu.memory_space<vmem>>, vector<32x128xbf16>
    %cst_134 = arith.constant dense<0.000000e+00> : vector<2x128xf32>
    %423 = tpu.matmul %421, %422, %cst_134 {dimension_numbers = #tpu.dot_dimension_numbers<[1], [0], [0], [1], [0, 0, 1, 1], [], []>} : vector<2x32xbf16>, vector<32x128xbf16>, vector<2x128xf32> -> vector<2x128xf32>
    %c0_135 = arith.constant 0 : index
    %c0_136 = arith.constant 0 : index
    %424 = vector.load %arg19[%c0_135, %c0_136] : memref<1x128xf32, #tpu.memory_space<vmem>>, vector<1x128xf32>
    %425 = vector.broadcast %424 : vector<1x128xf32> to vector<2x128xf32>
    %426 = arith.addf %423, %425 : vector<2x128xf32>
    %c0_137 = arith.constant 0 : index
    %c0_138 = arith.constant 0 : index
    %c0_139 = arith.constant 0 : index
    %427 = vector.load %arg20[%c0_137, %c0_138, %c0_139] : memref<1x2x128xf32, #tpu.memory_space<vmem>>, vector<1x2x128xf32>
    %428 = vector.shape_cast %427 : vector<1x2x128xf32> to vector<2x128xf32>
    %429 = vector.shape_cast %426 : vector<2x128xf32> to vector<1x2x128xf32>
    tpu.vector_store %arg20[%c0_137, %c0_138, %c0_139], %429 {strides = array<i32>} : memref<1x2x128xf32, #tpu.memory_space<vmem>>, vector<1x2x128xf32>,
    return
  }
  func.func @transform_0(%arg0: i32, %arg1: memref<4xi32, #tpu.memory_space<smem>>) -> (i32, i32, i32) {
    %c0_i32 = arith.constant 0 : i32
    %c0_i32_0 = arith.constant 0 : i32
    %c0_i32_1 = arith.constant 0 : i32
    return %arg0, %c0_i32, %c0_i32_0 : i32, i32, i32
  }
  func.func @transform_1(%arg0: i32, %arg1: memref<4xi32, #tpu.memory_space<smem>>) -> (i32, i32, i32) {
    %c0_i32 = arith.constant 0 : i32
    %c0_i32_0 = arith.constant 0 : i32
    %c0_i32_1 = arith.constant 0 : i32
    return %arg0, %c0_i32, %c0_i32_0 : i32, i32, i32
  }
  func.func @transform_2(%arg0: i32, %arg1: memref<4xi32, #tpu.memory_space<smem>>) -> (i32, i32, i32) {
    %c0_i32 = arith.constant 0 : i32
    %c0_i32_0 = arith.constant 0 : i32
    %c0_i32_1 = arith.constant 0 : i32
    %c0_i32_2 = arith.constant 0 : i32
    return %c0_i32, %c0_i32_0, %c0_i32_1 : i32, i32, i32
  }
  func.func @transform_3(%arg0: i32, %arg1: memref<4xi32, #tpu.memory_space<smem>>) -> (i32, i32, i32) {
    %c0_i32 = arith.constant 0 : i32
    %c0_i32_0 = arith.constant 0 : i32
    %c0_i32_1 = arith.constant 0 : i32
    %c0_i32_2 = arith.constant 0 : i32
    return %c0_i32, %c0_i32_0, %c0_i32_1 : i32, i32, i32
  }
  func.func @transform_4(%arg0: i32, %arg1: memref<4xi32, #tpu.memory_space<smem>>) -> (i32, i32, i32) {
    %c0_i32 = arith.constant 0 : i32
    %c0_i32_0 = arith.constant 0 : i32
    %c0_i32_1 = arith.constant 0 : i32
    %c0_i32_2 = arith.constant 0 : i32
    return %c0_i32, %c0_i32_0, %c0_i32_1 : i32, i32, i32
  }
  func.func @transform_5(%arg0: i32, %arg1: memref<4xi32, #tpu.memory_space<smem>>) -> (i32, i32, i32) {
    %c0_i32 = arith.constant 0 : i32
    %c0_i32_0 = arith.constant 0 : i32
    %c0_i32_1 = arith.constant 0 : i32
    %c0_i32_2 = arith.constant 0 : i32
    return %c0_i32, %c0_i32_0, %c0_i32_1 : i32, i32, i32
  }
  func.func @transform_6(%arg0: i32, %arg1: memref<4xi32, #tpu.memory_space<smem>>) -> (i32, i32, i32) {
    %c0_i32 = arith.constant 0 : i32
    %c0_i32_0 = arith.constant 0 : i32
    %c0_i32_1 = arith.constant 0 : i32
    %c0_i32_2 = arith.constant 0 : i32
    return %c0_i32, %c0_i32_0, %c0_i32_1 : i32, i32, i32
  }
  func.func @transform_7(%arg0: i32, %arg1: memref<4xi32, #tpu.memory_space<smem>>) -> (i32, i32, i32) {
    %c0_i32 = arith.constant 0 : i32
    %c0_i32_0 = arith.constant 0 : i32
    %c0_i32_1 = arith.constant 0 : i32
    %c0_i32_2 = arith.constant 0 : i32
    return %c0_i32, %c0_i32_0, %c0_i32_1 : i32, i32, i32
  }
  func.func @transform_8(%arg0: i32, %arg1: memref<4xi32, #tpu.memory_space<smem>>) -> (i32, i32, i32) {
    %c0_i32 = arith.constant 0 : i32
    %c0_i32_0 = arith.constant 0 : i32
    %c0_i32_1 = arith.constant 0 : i32
    %c0_i32_2 = arith.constant 0 : i32
    return %c0_i32, %c0_i32_0, %c0_i32_1 : i32, i32, i32
  }
  func.func @transform_9(%arg0: i32, %arg1: memref<4xi32, #tpu.memory_space<smem>>) -> (i32, i32, i32) {
    %c0_i32 = arith.constant 0 : i32
    %c0_i32_0 = arith.constant 0 : i32
    %c0_i32_1 = arith.constant 0 : i32
    %c0_i32_2 = arith.constant 0 : i32
    return %c0_i32, %c0_i32_0, %c0_i32_1 : i32, i32, i32
  }
  func.func @transform_10(%arg0: i32, %arg1: memref<4xi32, #tpu.memory_space<smem>>) -> (i32, i32, i32) {
    %c0_i32 = arith.constant 0 : i32
    %c0_i32_0 = arith.constant 0 : i32
    %c0_i32_1 = arith.constant 0 : i32
    %c0_i32_2 = arith.constant 0 : i32
    return %c0_i32, %c0_i32_0, %c0_i32_1 : i32, i32, i32
  }
  func.func @transform_11(%arg0: i32, %arg1: memref<4xi32, #tpu.memory_space<smem>>) -> (i32, i32, i32) {
    %c0_i32 = arith.constant 0 : i32
    %c0_i32_0 = arith.constant 0 : i32
    %c0_i32_1 = arith.constant 0 : i32
    %c0_i32_2 = arith.constant 0 : i32
    return %c0_i32, %c0_i32_0, %c0_i32_1 : i32, i32, i32
  }
  func.func @transform_12(%arg0: i32, %arg1: memref<4xi32, #tpu.memory_space<smem>>) -> (i32, i32, i32) {
    %c0_i32 = arith.constant 0 : i32
    %c0_i32_0 = arith.constant 0 : i32
    %c0_i32_1 = arith.constant 0 : i32
    %c0_i32_2 = arith.constant 0 : i32
    return %c0_i32, %c0_i32_0, %c0_i32_1 : i32, i32, i32
  }
  func.func @transform_13(%arg0: i32, %arg1: memref<4xi32, #tpu.memory_space<smem>>) -> (i32, i32, i32) {
    %c0_i32 = arith.constant 0 : i32
    %c0_i32_0 = arith.constant 0 : i32
    %c0_i32_1 = arith.constant 0 : i32
    %c0_i32_2 = arith.constant 0 : i32
    return %c0_i32, %c0_i32_0, %c0_i32_1 : i32, i32, i32
  }
  func.func @transform_14(%arg0: i32, %arg1: memref<4xi32, #tpu.memory_space<smem>>) -> (i32, i32) {
    %c0_i32 = arith.constant 0 : i32
    %c0_i32_0 = arith.constant 0 : i32
    %c0_i32_1 = arith.constant 0 : i32
    return %c0_i32, %c0_i32_0 : i32, i32
  }
  func.func @transform_15(%arg0: i32, %arg1: memref<4xi32, #tpu.memory_space<smem>>) -> (i32, i32) {
    %c0_i32 = arith.constant 0 : i32
    %c0_i32_0 = arith.constant 0 : i32
    %c0_i32_1 = arith.constant 0 : i32
    return %c0_i32, %c0_i32_0 : i32, i32
  }
  func.func @transform_16(%arg0: i32, %arg1: memref<4xi32, #tpu.memory_space<smem>>) -> (i32, i32) {
    %c0_i32 = arith.constant 0 : i32
    %c0_i32_0 = arith.constant 0 : i32
    %c0_i32_1 = arith.constant 0 : i32
    return %c0_i32, %c0_i32_0 : i32, i32
  }
  func.func @transform_17(%arg0: i32, %arg1: memref<4xi32, #tpu.memory_space<smem>>) -> (i32, i32) {
    %c0_i32 = arith.constant 0 : i32
    %c0_i32_0 = arith.constant 0 : i32
    %c0_i32_1 = arith.constant 0 : i32
    return %c0_i32, %c0_i32_0 : i32, i32
  }
  func.func @transform_18(%arg0: i32, %arg1: memref<4xi32, #tpu.memory_space<smem>>) -> (i32, i32, i32) {
    %c0_i32 = arith.constant 0 : i32
    %c0_i32_0 = arith.constant 0 : i32
    %c0_i32_1 = arith.constant 0 : i32
    return %arg0, %c0_i32, %c0_i32_0 : i32, i32, i32
  }
}

</mosaic_0001>

<bundles_post_ra>
// kernel: tpu_custom_call.1
= control target key start
LH: loop header
LB: loop body
LE: loop exit
PB: predicated region body
PF: predicated region fallthrough
CT: control target
= control target key end

     0   :  { %s5145_s0 = inlined_call_operand.hbm [shape: s32[4], index: 0, kind: input, shape index: {}]   ;;  %s5146_s1 = inlined_call_operand.vmem [shape: f32[4,1,8], index: 1, kind: input, shape index: {}]   ;;  %s5147_s2 = inlined_call_operand.vmem [shape: f32[4,8,32], index: 2, kind: input, shape index: {}]   ;;  %s5148_s3 = inlined_call_operand.vmem [shape: f32[2,1,32], index: 3, kind: input, shape index: {}]   ;;  %s5149_s4 = inlined_call_operand.vmem [shape: f32[2,1,32], index: 4, kind: input, shape index: {}]   ;;  %s5150_s5 = inlined_call_operand.vmem [shape: bf16[2,32,96], index: 5, kind: input, shape index: {}]   ;;  %s5151_s6 = inlined_call_operand.vmem [shape: f32[2,1,96], index: 6, kind: input, shape index: {}]   ;;  %s5152_s7 = inlined_call_operand.vmem [shape: bf16[2,32,32], index: 7, kind: input, shape index: {}]   ;;  %s5153_s8 = inlined_call_operand.vmem [shape: f32[2,1,32], index: 8, kind: input, shape index: {}]   ;;  %s5154_s9 = inlined_call_operand.vmem [shape: f32[2,1,32], index: 9, kind: input, shape index: {}]   ;;  %s5155_s10 = inlined_call_operand.vmem [shape: f32[2,1,32], index: 10, kind: input, shape index: {}]   ;;  %s5156_s11 = inlined_call_operand.vmem [shape: bf16[2,32,128], index: 11, kind: input, shape index: {}]   ;;  %s5157_s12 = inlined_call_operand.vmem [shape: f32[2,1,128], index: 12, kind: input, shape index: {}]   ;;  %s5158_s13 = inlined_call_operand.vmem [shape: bf16[2,128,32], index: 13, kind: input, shape index: {}]   ;;  %s5159_s14 = inlined_call_operand.vmem [shape: f32[2,1,32], index: 14, kind: input, shape index: {}]   ;;  %s5160_s15 = inlined_call_operand.vmem [shape: f32[1,32], index: 15, kind: input, shape index: {}]   ;;  %s5161_s16 = inlined_call_operand.vmem [shape: f32[1,32], index: 16, kind: input, shape index: {}]   ;;  %s5162_s17 = inlined_call_operand.vmem [shape: bf16[32,128], index: 17, kind: input, shape index: {}]   ;;  %s5163_s18 = inlined_call_operand.vmem [shape: f32[1,128], index: 18, kind: input, shape index: {}]   ;;  %s5164_s19 = inlined_call_operand.hbm [shape: f32[2,2,128], index: 19, kind: output, shape index: {}]  }
   0x1   :  { %5196 = sst [smem:[#allocation13_spill]] %s5145_s0  ;;  %s4283_s0 = smov [#allocation4]  }
   0x2   :  { %5197 = sst [smem:[#allocation14_spill]] %s5146_s1 }
   0x3   :  { %5198 = sst [smem:[#allocation15_spill]] %s5147_s2 }
   0x4   :  { %5199 = sst [smem:[#allocation16_spill]] %s5148_s3 }
   0x5   :  { %5200 = sst [smem:[#allocation17_spill]] %s5149_s4 }
   0x6   :  { %5201 = sst [smem:[#allocation18_spill]] %s5150_s5 }
   0x7   :  { %5202 = sst [smem:[#allocation19_spill]] %s5157_s12 }
   0x8   :  { %s5203_s12 = sld [smem:[#allocation13_spill]] }
   0xe   :  { %25 = dma.hbm_to_smem %s5203_s12, 16, %s4283_s0, [#allocation3] }
   0xf   :  { %4261 = dma.done.wait [#allocation3], 16 }
  0x10   :  { %4262 = vsyncadd [#allocation3], 4294967280 }
  0x11   :  { %27 = sfence }
  0x12   :  { %28 = vsyncpa [#allocation6], 0 }
  0x13   :  { %30 = vsyncpa [#allocation6 + $0x1], 0  ;;  %s4404_s21 = smov 0   ;;  %s4406_s1 = smov 0  }
  0x14   :  { %s4408_s22 = smov 0   ;;  %s4410_s2 = smov 0  }
  0x15 LB: > { %5204 = sst [smem:[#allocation9_spill]] %s4277_s22  ;;  %s4425_s12 = sadd.s32 4294967295, %s4281_s2   ;;  %s4281_s2 = sphi %s4410_s2, %s5231_s2   ;;  %s4277_s22 = sphi %s4408_s22, %s5233_s22   ;;  %s4273_s1 = sphi %s4406_s1, %s5235_s1   ;;  %s4269_s21 = sphi %s4404_s21, %s5234_s21  }
  0x16   : > { %s3480_s23 = sadd.s32 4294967294, %s4281_s2   ;;  %s4429_s24 = sadd.s32 1, %s4281_s2  }
  0x17   : > { %5205 = sst [smem:[#allocation10_spill]] %s4429_s24  ;;  %s431_s25 = sadd.s32 1, %s4277_s22 }
  0x18   : > { %s428_s3 = ssub.s32 %s4281_s2, %s4429_s24  ;;  %p441_p0 = scmp.ne.s32.totalorder %s4277_s22, %s4273_s1 }
  0x19   : > { %p429_p1 = scmp.eq.s32.totalorder %s428_s3, 0  ;;  %p442_p2 = scmp.eq.s32.totalorder %s4425_s12, 1 }
  0x1a   : > { %p447_p3 = scmp.ne.s32.totalorder %s4273_s1, %s4269_s21  ;;  %p448_p4 = scmp.eq.s32.totalorder %s3480_s23, 1 }
  0x1b   : > { %s4440_s26 = scalar_select %p429_p1, %s4277_s22, %s431_s25  }
  0x1c   : > { %p4442_p5 = por %p442_p2, %p441_p0  ;;  %p4446_p6 = por %p448_p4, %p447_p3 }
  0x1d   : > { %5206 = sst [smem:[#allocation11_spill]] %s4440_s26  ;;  %p3483_p7 = scmp.ge.s32.totalorder %s4281_s2, 1 }
  0x1e   : > { %s5208_s28 = scalar_select %p4446_p6, 1, 0 }
  0x1f   : > { %p531_p8 = scmp.lt.s32.totalorder %s4281_s2, 3 }
  0x20   : > { %5209 = sst [smem:[#allocation12_spill]] %s5208_s28 }
  0x21   : > { %p532_p9 = pnand %p3483_p7, %p531_p8 }
  0x22   : > { %s4453_s29 = sshll.u32 (!%p532_p9), %s4425_s12, 1  ;;  %s5210_s25 = sld [smem:[#allocation15_spill]] (!%p532_p9) }
  0x23   : > { %535 = sbr.rel (%p532_p9) target bundleno = 8431 (0x20ef), region = 92  ;;  %p590_p10 = scmp.lt.s32.totalorder (!%p532_p9), %s4453_s29, 3 }
  0x24   : > { %s5211_s5 = sld [smem:[#allocation18_spill]] (!%p532_p9)  ;;  %s5168_s22 = smov (!%p532_p9), 120  }
  0x25   : > { %s5212_s20 = sld [smem:[#allocation16_spill]] (!%p532_p9)  ;;  %s5174_s26 = smov (!%p532_p9), 56  }
  0x26   : > { %s5213_s4 = sld [smem:[#allocation17_spill]] (!%p532_p9)  ;;  %s5220_s24 = smov (!%p532_p9), 56  }
  0x27   : > { %s5221_s28 = smov (!%p532_p9), 80  }
  0x28   : > { %s4457_s0 = scalar_select %p590_p10, %s4453_s29, 3  ;;  %vm619_vm0 = vcmask 261120   ;;  %v4284_v15 = vmov 0.0   ;;  %vm4285_vm1 = vmmov 0   ;;  %v3492_v34 = vld [vmem:[%s5151_s6] ss:$0 sm:$0xff] }
  0x29   : > { %3723 = vmatprep.subr.bf16.mxu1 %v4284_v15  ;;  %3727 = vmatprep.mubr.msk.bf16.mxu1 %vm4285_vm1, %v4284_v15  ;;  %vm736_vm2 = vcmask 64512   ;;  %vm861_vm3 = vcmask 1043456   ;;  %vm1639_vm4 = vcmask 130048   ;;  %vm1642_vm5 = vcmask 195584  }
  0x2a   : > { %s3487_s30 = sshll.u32 %s4457_s0, 3  ;;  %v4097_v14 = vld [vmem:[%s5211_s5 + $0x8] sm:$0xff]   ;;  %v4098_v16 = vld [vmem:[%s5211_s5] sm:$0xff]   ;;  %3737 = vmatprep.subr.bf16.mxu0 %v4284_v15  ;;  %3739 = vmatprep.mubr.msk.bf16.mxu0 %vm4285_vm1, %v4284_v15  ;;  %vm3295_vm6 = vcmask 1040384   ;;  %vm3299_vm7 = vcmask 254976  }
  0x2b   : > { %s598_s3 = scalar_lea.vmem %s5210_s25, %s3487_s30  ;;  %3724 = vmatpush3.bf16.msra.mxu1 %v4097_v14  ;;  %v3490_v25 = vld [vmem:[%s5212_s20] ss:$0 sm:$0xff]  ;;  %s5214_s30 = sld [smem:[#allocation14_spill]] }
  0x2c   : > { %v4463_v0 = vld [vmem:[%s598_s3] sm:$0xff]  ;;  %v4465_v1 = vld [vmem:[%s598_s3 + $0x8] sm:$0xff]  ;;  %3725 = vmatprep.subr.bf16.mxu1 %v4284_v15  ;;  %s5191_s3 = smov 96   ;;  %s5186_s25 = smov 88  }
  0x2d   : > { %v620_v2 = vsel %vm619_vm0, %v4463_v0, 0.0  ;;  %v623_v3 = vsel %vm619_vm0, %v4465_v1, 0.0  ;;  %v3491_v29 = vld [vmem:[%s5213_s4] ss:$0 sm:$0xff] }
  0x2e   : > { %621 = vadd.xlane.f32.xlu0 %v620_v2 }
  0x2f   : > { %3726 = vmatpush3.bf16.msra.mxu1 %v4098_v16 }
  0x30   : > { %3731 = vmatprep.subr.bf16.mxu1 %v4284_v15 }
  0x31   : > { %s4525_s23 = scalar_lea.vmem %s5214_s30, %s4457_s0  ;;  %s5188_s0 = smov 64  }
  0x32   : > { %624 = vadd.xlane.f32.xlu0 %v623_v3  ;;  %v4528_v47 = vld [vmem:[%s4525_s23] ss:$0 sm:$0xff]  ;;  %v4532_v50 = vld [vmem:[%s4525_s23 + $0x1] ss:$0 sm:$0xff]  ;;  %s5172_s30 = smov 80  }
  0xb7   : > { %v622_v4 = vpop.xlane.xlu0 %621 }
  0xb8   : > { %v627_v5 = vmul.f32 0.03125, %v622_v4 }
  0xba   : > { %v629_v6 = vsub.f32 %v4463_v0, %v627_v5 }
  0xbb   : > { %v625_v7 = vpop.xlane.xlu0 %624 }
  0xbc   : > { %v628_v8 = vmul.f32 0.03125, %v625_v7  ;;  %v631_v9 = vmul.f32 %v629_v6, %v629_v6 }
  0xbe   : > { %v630_v10 = vsub.f32 %v4465_v1, %v628_v8  ;;  %v633_v11 = vsel %vm619_vm0, %v631_v9, 0.0 }
  0xbf   : > { %634 = vadd.xlane.f32.xlu1 %v633_v11 }
  0xc0   : > { %v632_v12 = vmul.f32 %v630_v10, %v630_v10 }
  0xc2   : > { %v636_v13 = vsel %vm619_vm0, %v632_v12, 0.0 }
  0xc3   : > { %637 = vadd.xlane.f32.xlu1 %v636_v13 }
 0x148   : > { %v635_v17 = vpop.xlane.xlu1 %634 }
 0x149   : > { %v639_v18 = vmul.f32 0.03125, %v635_v17 }
 0x14b   : > { %v641_v19 = vadd.f32 1e-05, %v639_v18 }
 0x14c   : > { %v638_v20 = vpop.xlane.xlu1 %637 }
 0x14d   : > { %4127 = vrsqrt.f32 %v641_v19  ;;  %v640_v21 = vmul.f32 0.03125, %v638_v20 }
 0x14f   : > { %v642_v22 = vadd.f32 1e-05, %v640_v21 }
 0x151   : > { %4129 = vrsqrt.f32 %v642_v22 }
 0x15a   : > { %v4128_v23 = vpop.eup %4127 }
 0x15b   : > { %v645_v24 = vmul.f32 %v4128_v23, %v629_v6 }
 0x15d   : > { %v653_v28 = vmul.f32 %v3490_v25, %v645_v24 }
 0x15e   : > { %v4130_v26 = vpop.eup %4129 }
 0x15f   : > { %v646_v27 = vmul.f32 %v4130_v26, %v630_v10  ;;  %v661_v31 = vadd.f32 %v3491_v29, %v653_v28 }
 0x161   : > { %v654_v30 = vmul.f32 %v3490_v25, %v646_v27 }
 0x163   : > { %v662_v32 = vadd.f32 %v3491_v29, %v654_v30 }
 0x165   : > { %v663_v33 = vpack.c.bf16 %v662_v32, %v661_v31 }
 0x167   : > { %3728 = vmatmul.mubr.msk.bf16.vlgmr.msra.gmra.mxu1 %vm619_vm0, %v663_v33 }
 0x168   : > { %3733 = vmatprep.mubr.msk.bf16.mxu1 %vm4285_vm1, %v4284_v15 }
 0x227   : > { %v724_v35 = vpop.f32.mrf.mxu1 }
 0x228   : > { %v725_v36 = vadd.f32 %v3492_v34, %v724_v35 }
 0x229   : > { %v3729_v37 = vpop.f32.mrf.mxu1 }
 0x22a   : > { %v4501_v38 = vpack.c.bf16 %v725_v36, %v725_v36 }
 0x22b   : > { %v727_v39 = vpop.f32.mrf.mxu1 }
 0x22c   : > { %v728_v40 = vadd.f32 %v3492_v34, %v727_v39  ;;  %734 = vrot.lane.b32.xlu0 %v4501_v38, %s5191_s3 }
 0x22d   : > { %v3730_v41 = vpop.f32.mrf.mxu1 }
 0x22e   : > { %v4505_v42 = vpack.c.bf16 %v728_v40, %v728_v40 }
 0x230   : > { %784 = vrot.lane.b32.xlu1 %v4505_v42, %s5191_s3  ;;  %s5219_s3 = smov 120  }
 0x29e   : > { %v735_v43 = vpop.permute.xlu0 %734 }
 0x29f   : > { %v741_v44 = vsel %vm736_vm2, %v735_v43, 0 }
 0x2a0   : > { %3732 = vmatpush3.bf16.xpose.msra.mxu1 %v741_v44 }
 0x2a1   : > { %3743 = vmatprep.subr.bf16.mxu1 %v4284_v15 }
 0x2a2   : > { %v785_v45 = vpop.permute.xlu1 %784 }
 0x2a3   : > { %v790_v46 = vsel %vm736_vm2, %v785_v45, 0 }
 0x2a4   : > { %3738 = vmatpush3.bf16.xpose.msra.mxu0 %v790_v46 }
 0x2a5   : > { %3749 = vmatprep.subr.bf16.mxu0 %v4284_v15 }
 0x2a7   : > { %3734 = vmatmul.mubr.msk.bf16.vlgmr.msra.gmra.mxu1 %vm736_vm2, %v4501_v38 }
 0x2a8   : > { %3745 = vmatprep.mubr.msk.bf16.mxu1 %vm4285_vm1, %v4284_v15 }
 0x2ab   : > { %3740 = vmatmul.mubr.msk.bf16.vlgmr.msra.gmra.mxu0 %vm736_vm2, %v4505_v42 }
 0x2ac   : > { %3751 = vmatprep.mubr.msk.bf16.mxu0 %vm4285_vm1, %v4284_v15 }
 0x367   : > { %v777_v48 = vpop.f32.mrf.mxu1 }
 0x368   : > { %v778_v49 = vadd.f32 %v4528_v47, %v777_v48 }
 0x369   : > { %v3735_v51 = vpop.f32.mrf.mxu1 }
 0x36a   : > { %v832_v52 = vsel %vm736_vm2, %v778_v49, -inf }
 0x36b   : > { %v780_v53 = vpop.f32.mrf.mxu1  ;;  %v826_v54 = vpop.f32.mrf.mxu0  ;;  %833 = vmax.xlane.f32.xlu1 %v832_v52 }
 0x36c   : > { %v827_v55 = vadd.f32 %v4532_v50, %v826_v54 }
 0x36d   : > { %v3736_v56 = vpop.f32.mrf.mxu1  ;;  %v3741_v57 = vpop.f32.mrf.mxu0 }
 0x36e   : > { %v835_v58 = vsel %vm736_vm2, %v827_v55, -inf }
 0x36f   : > { %v829_v59 = vpop.f32.mrf.mxu0  ;;  %836 = vmax.xlane.f32.xlu0 %v835_v58 }
 0x371   : > { %v3742_v60 = vpop.f32.mrf.mxu0 }
 0x37c   : > { %905 = vrot.lane.b32.xlu1 %v4505_v42, %s5188_s0 }
 0x380   : > { %955 = vrot.lane.b32.xlu1 %v4501_v38, %s5186_s25 }
 0x3f4   : > { %v834_v61 = vpop.xlane.xlu1 %833 }
 0x3f5   : > { %v838_v62 = vsub.f32 %v778_v49, %v834_v61 }
 0x3f7   : > { %v840_v63 = vmul.f32 1.442695, %v838_v62 }
 0x3f8   : > { %v837_v2 = vpop.xlane.xlu0 %836  ;;  %v906_v3 = vpop.permute.xlu1 %905 }
 0x3f9   : > { %4131 = vpow2.f32 %v840_v63  ;;  %v839_v4 = vsub.f32 %v827_v55, %v837_v2  ;;  %v911_v5 = vsel %vm861_vm3, %v906_v3, 0 }
 0x3fa   : > { %3750 = vmatpush3.bf16.msra.mxu0 %v911_v5 }
 0x3fb   : > { %v842_v6 = vmul.f32 1.442695, %v839_v4  ;;  %3761 = vmatprep.subr.bf16.mxu0 %v4284_v15 }
 0x3fc   : > { %v956_v11 = vpop.permute.xlu1 %955 }
 0x3fd   : > { %4133 = vpow2.f32 %v842_v6  ;;  %v961_v21 = vsel %vm736_vm2, %v956_v11, 0 }
 0x406   : > { %v4132_v7 = vpop.eup %4131 }
 0x407   : > { %v844_v8 = vsel %vm736_vm2, %v4132_v7, 0.0 }
 0x408   : > { %845 = vadd.xlane.f32.xlu0 %v844_v8 }
 0x40a   : > { %v4134_v9 = vpop.eup %4133 }
 0x40b   : > { %v847_v10 = vsel %vm736_vm2, %v4134_v9, 0.0 }
 0x40c   : > { %848 = vadd.xlane.f32.xlu1 %v847_v10 }
 0x41d   : > { %1005 = vrot.lane.b32.xlu1 %v4505_v42, %s5186_s25  ;;  %s5215_s25 = sld [smem:[#allocation19_spill]] }
 0x41e   : > { %856 = vrot.lane.b32.xlu0 %v4501_v38, %s5188_s0  ;;  %s5190_s0 = smov 24  }
 0x421   : > { %1003 = vrot.lane.b32.xlu1 %v4505_v42, %s5168_s22 }
 0x422   : > { %953 = vrot.lane.b32.xlu0 %v4501_v38, %s5168_s22  ;;  %s5170_s22 = smov 112  }
 0x491   : > { %v846_v12 = vpop.xlane.xlu0 %845 }
 0x492   : > { %4135 = vrcp.f32 %v846_v12 }
 0x495   : > { %v857_v13 = vpop.permute.xlu0 %856  ;;  %v849_v14 = vpop.xlane.xlu1 %848 }
 0x496   : > { %v863_v16 = vsel %vm861_vm3, %v857_v13, 0  ;;  %4137 = vrcp.f32 %v849_v14 }
 0x497   : > { %3744 = vmatpush3.bf16.msra.mxu1 %v863_v16 }
 0x498   : > { %3755 = vmatprep.subr.bf16.mxu1 %v4284_v15 }
 0x499   : > { %v1006_v23 = vpop.permute.xlu1 %1005  ;;  %v954_v26 = vpop.permute.xlu0 %953 }
 0x49a   : > { %v1011_v25 = vsel %vm736_vm2, %v1006_v23, 0 }
 0x49d   : > { %v1004_v27 = vpop.permute.xlu1 %1003 }
 0x49f   : > { %v4136_v17 = vpop.eup %4135 }
 0x4a0   : > { %v852_v18 = vmul.f32 %v4136_v17, %v4132_v7 }
 0x4a2   : > { %v854_v19 = vpack.c.bf16 %v852_v18, %v852_v18 }
 0x4a3   : > { %v4138_v20 = vpop.eup %4137 }
 0x4a4   : > { %3746 = vmatmul.mubr.msk.bf16.vlgmr.msra.gmra.mxu1 %vm736_vm2, %v854_v19  ;;  %v853_v22 = vmul.f32 %v4138_v20, %v4134_v9 }
 0x4a5   : > { %3756 = vmatpush3.bf16.xpose.msra.mxu1 %v961_v21  ;;  %3757 = vmatprep.mubr.msk.bf16.mxu1 %vm4285_vm1, %v4284_v15 }
 0x4a6   : > { %v855_v24 = vpack.c.bf16 %v853_v22, %v853_v22  ;;  %3767 = vmatprep.subr.bf16.mxu1 %v4284_v15 }
 0x4a8   : > { %3752 = vmatmul.mubr.msk.bf16.vlgmr.msra.gmra.mxu0 %vm736_vm2, %v855_v24 }
 0x4a9   : > { %3762 = vmatpush3.bf16.xpose.msra.mxu0 %v1011_v25  ;;  %3763 = vmatprep.mubr.msk.bf16.mxu0 %vm4285_vm1, %v4284_v15 }
 0x4aa   : > { %3773 = vmatprep.subr.bf16.mxu0 %v4284_v15 }
 0x4ac   : > { %3758 = vmatmul.mubr.msk.bf16.vlgmr.msra.gmra.mxu1 %vm736_vm2, %v954_v26 }
 0x4ad   : > { %3769 = vmatprep.mubr.msk.bf16.mxu1 %vm4285_vm1, %v4284_v15 }
 0x4b0   : > { %3764 = vmatmul.mubr.msk.bf16.vlgmr.msra.gmra.mxu0 %vm736_vm2, %v1004_v27 }
 0x4b1   : > { %3775 = vmatprep.mubr.msk.bf16.mxu0 %vm4285_vm1, %v4284_v15 }
 0x564   : > { %v4571_v28 = vpop.f32.mrf.mxu1 }
 0x566   : > { %v3747_v29 = vpop.f32.mrf.mxu1 }
 0x568   : > { %v902_v30 = vpop.f32.mrf.mxu1  ;;  %v4573_v31 = vpop.f32.mrf.mxu0 }
 0x56a   : > { %v3748_v32 = vpop.f32.mrf.mxu1  ;;  %v3753_v33 = vpop.f32.mrf.mxu0 }
 0x56c   : > { %v950_v34 = vpop.f32.mrf.mxu0  ;;  %v997_v35 = vpop.f32.mrf.mxu1 }
 0x56d   : > { %v998_v36 = vadd.f32 %v4528_v47, %v997_v35 }
 0x56e   : > { %v3754_v37 = vpop.f32.mrf.mxu0  ;;  %v3759_v39 = vpop.f32.mrf.mxu1 }
 0x56f   : > { %v1053_v40 = vsel %vm736_vm2, %v998_v36, -inf }
 0x570   : > { %1054 = vmax.xlane.f32.xlu0 %v1053_v40  ;;  %v1000_v41 = vpop.f32.mrf.mxu1  ;;  %v1047_v43 = vpop.f32.mrf.mxu0 }
 0x571   : > { %v1048_v44 = vadd.f32 %v4532_v50, %v1047_v43 }
 0x572   : > { %v3760_v45 = vpop.f32.mrf.mxu1  ;;  %v3765_v46 = vpop.f32.mrf.mxu0 }
 0x573   : > { %v1056_v48 = vsel %vm736_vm2, %v1048_v44, -inf }
 0x574   : > { %1057 = vmax.xlane.f32.xlu1 %v1056_v48  ;;  %v1050_v49 = vpop.f32.mrf.mxu0 }
 0x576   : > { %v3766_v51 = vpop.f32.mrf.mxu0 }
 0x585   : > { %1125 = vrot.lane.b32.xlu1 %v4505_v42, %s5174_s26 }
 0x589   : > { %1175 = vrot.lane.b32.xlu1 %v4501_v38, %s5172_s30 }
 0x58d   : > { %1225 = vrot.lane.b32.xlu1 %v4505_v42, %s5172_s30  ;;  %s5178_s30 = smov 72  }
 0x591   : > { %1223 = vrot.lane.b32.xlu1 %v4505_v42, %s5170_s22 }
 0x5f9   : > { %v1055_v52 = vpop.xlane.xlu0 %1054 }
 0x5fa   : > { %v1059_v53 = vsub.f32 %v998_v36, %v1055_v52 }
 0x5fc   : > { %v1061_v54 = vmul.f32 1.442695, %v1059_v53 }
 0x5fd   : > { %v1058_v55 = vpop.xlane.xlu1 %1057 }
 0x5fe   : > { %4139 = vpow2.f32 %v1061_v54  ;;  %v1060_v56 = vsub.f32 %v1048_v44, %v1058_v55 }
 0x600   : > { %v1063_v57 = vmul.f32 1.442695, %v1060_v56 }
 0x601   : > { %v1126_v58 = vpop.permute.xlu1 %1125 }
 0x602   : > { %4141 = vpow2.f32 %v1063_v57  ;;  %v1131_v59 = vsel %vm861_vm3, %v1126_v58, 0 }
 0x603   : > { %3774 = vmatpush3.bf16.msra.mxu0 %v1131_v59 }
 0x604   : > { %3785 = vmatprep.subr.bf16.mxu0 %v4284_v15 }
 0x605   : > { %v1176_v7 = vpop.permute.xlu1 %1175 }
 0x606   : > { %v1181_v11 = vsel %vm736_vm2, %v1176_v7, 0 }
 0x609   : > { %v1226_v13 = vpop.permute.xlu1 %1225 }
 0x60a   : > { %v1231_v16 = vsel %vm736_vm2, %v1226_v13, 0 }
 0x60b   : > { %v4140_v60 = vpop.eup %4139 }
 0x60c   : > { %v1065_v61 = vsel %vm736_vm2, %v4140_v60, 0.0 }
 0x60d   : > { %1066 = vadd.xlane.f32.xlu0 %v1065_v61  ;;  %v1224_v18 = vpop.permute.xlu1 %1223 }
 0x60f   : > { %v4142_v62 = vpop.eup %4141 }
 0x610   : > { %v1068_v63 = vsel %vm736_vm2, %v4142_v62, 0.0 }
 0x611   : > { %1069 = vadd.xlane.f32.xlu0 %v1068_v63 }
 0x627   : > { %1077 = vrot.lane.b32.xlu0 %v4501_v38, %s5174_s26  ;;  %s5176_s26 = smov 104  }
 0x62b   : > { %1173 = vrot.lane.b32.xlu0 %v4501_v38, %s5170_s22  ;;  %s5180_s22 = smov 48  }
 0x696   : > { %v1067_v2 = vpop.xlane.xlu0 %1066 }
 0x697   : > { %4143 = vrcp.f32 %v1067_v2 }
 0x69a   : > { %v1070_v3 = vpop.xlane.xlu0 %1069 }
 0x69b   : > { %4145 = vrcp.f32 %v1070_v3 }
 0x69e   : > { %v1078_v4 = vpop.permute.xlu0 %1077 }
 0x69f   : > { %v1083_v5 = vsel %vm861_vm3, %v1078_v4, 0 }
 0x6a0   : > { %3768 = vmatpush3.bf16.msra.mxu1 %v1083_v5 }
 0x6a1   : > { %3779 = vmatprep.subr.bf16.mxu1 %v4284_v15 }
 0x6a2   : > { %v1174_v17 = vpop.permute.xlu0 %1173 }
 0x6a4   : > { %v4144_v6 = vpop.eup %4143 }
 0x6a5   : > { %v1073_v8 = vmul.f32 %v4144_v6, %v4140_v60 }
 0x6a7   : > { %v1075_v9 = vpack.c.bf16 %v1073_v8, %v1073_v8 }
 0x6a8   : > { %v4146_v10 = vpop.eup %4145 }
 0x6a9   : > { %3770 = vmatmul.mubr.msk.bf16.vlgmr.msra.gmra.mxu1 %vm736_vm2, %v1075_v9  ;;  %v1074_v12 = vmul.f32 %v4146_v10, %v4142_v62 }
 0x6aa   : > { %3780 = vmatpush3.bf16.xpose.msra.mxu1 %v1181_v11  ;;  %3781 = vmatprep.mubr.msk.bf16.mxu1 %vm4285_vm1, %v4284_v15 }
 0x6ab   : > { %v1076_v14 = vpack.c.bf16 %v1074_v12, %v1074_v12  ;;  %3791 = vmatprep.subr.bf16.mxu1 %v4284_v15 }
 0x6ad   : > { %3776 = vmatmul.mubr.msk.bf16.vlgmr.msra.gmra.mxu0 %vm736_vm2, %v1076_v14 }
 0x6ae   : > { %3786 = vmatpush3.bf16.xpose.msra.mxu0 %v1231_v16  ;;  %3787 = vmatprep.mubr.msk.bf16.mxu0 %vm4285_vm1, %v4284_v15 }
 0x6af   : > { %3797 = vmatprep.subr.bf16.mxu0 %v4284_v15 }
 0x6b1   : > { %3782 = vmatmul.mubr.msk.bf16.vlgmr.msra.gmra.mxu1 %vm736_vm2, %v1174_v17 }
 0x6b2   : > { %3793 = vmatprep.mubr.msk.bf16.mxu1 %vm4285_vm1, %v4284_v15 }
 0x6b5   : > { %3788 = vmatmul.mubr.msk.bf16.vlgmr.msra.gmra.mxu0 %vm736_vm2, %v1224_v18 }
 0x6b6   : > { %3799 = vmatprep.mubr.msk.bf16.mxu0 %vm4285_vm1, %v4284_v15 }
 0x769   : > { %v4613_v19 = vpop.f32.mrf.mxu1 }
 0x76b   : > { %v3771_v20 = vpop.f32.mrf.mxu1 }
 0x76d   : > { %v1122_v21 = vpop.f32.mrf.mxu1  ;;  %v4615_v22 = vpop.f32.mrf.mxu0 }
 0x76e   : > { %v4067_v23 = vpack.i.bf16 %v4615_v22, %v4613_v19 }
 0x76f   : > { %v3772_v24 = vpop.f32.mrf.mxu1  ;;  %v3777_v25 = vpop.f32.mrf.mxu0 }
 0x771   : > { %v1170_v26 = vpop.f32.mrf.mxu0  ;;  %v1217_v27 = vpop.f32.mrf.mxu1 }
 0x772   : > { %v1218_v29 = vadd.f32 %v4528_v47, %v1217_v27 }
 0x773   : > { %v3778_v30 = vpop.f32.mrf.mxu0  ;;  %v3783_v32 = vpop.f32.mrf.mxu1 }
 0x774   : > { %v1273_v33 = vsel %vm736_vm2, %v1218_v29, -inf }
 0x775   : > { %1274 = vmax.xlane.f32.xlu0 %v1273_v33  ;;  %v1220_v34 = vpop.f32.mrf.mxu1  ;;  %v1267_v35 = vpop.f32.mrf.mxu0 }
 0x776   : > { %v1268_v36 = vadd.f32 %v4532_v50, %v1267_v35 }
 0x777   : > { %v3784_v37 = vpop.f32.mrf.mxu1  ;;  %v3789_v39 = vpop.f32.mrf.mxu0 }
 0x778   : > { %v1276_v40 = vsel %vm736_vm2, %v1268_v36, -inf }
 0x779   : > { %1277 = vmax.xlane.f32.xlu1 %v1276_v40  ;;  %v1270_v41 = vpop.f32.mrf.mxu0 }
 0x77b   : > { %v3790_v43 = vpop.f32.mrf.mxu0 }
 0x78a   : > { %1345 = vrot.lane.b32.xlu1 %v4505_v42, %s5180_s22 }
 0x78e   : > { %1395 = vrot.lane.b32.xlu1 %v4501_v38, %s5178_s30 }
 0x792   : > { %1445 = vrot.lane.b32.xlu1 %v4505_v42, %s5178_s30  ;;  %s5183_s30 = smov 8  }
 0x796   : > { %1443 = vrot.lane.b32.xlu1 %v4505_v42, %s5176_s26 }
 0x7fe   : > { %v1275_v44 = vpop.xlane.xlu0 %1274 }
 0x7ff   : > { %v1279_v45 = vsub.f32 %v1218_v29, %v1275_v44 }
 0x801   : > { %v1281_v46 = vmul.f32 1.442695, %v1279_v45 }
 0x802   : > { %v1278_v48 = vpop.xlane.xlu1 %1277 }
 0x803   : > { %4147 = vpow2.f32 %v1281_v46  ;;  %v1280_v49 = vsub.f32 %v1268_v36, %v1278_v48 }
 0x805   : > { %v1283_v51 = vmul.f32 1.442695, %v1280_v49 }
 0x806   : > { %v1346_v52 = vpop.permute.xlu1 %1345 }
 0x807   : > { %4149 = vpow2.f32 %v1283_v51  ;;  %v1351_v53 = vsel %vm861_vm3, %v1346_v52, 0 }
 0x808   : > { %3798 = vmatpush3.bf16.msra.mxu0 %v1351_v53 }
 0x809   : > { %3809 = vmatprep.subr.bf16.mxu0 %v4284_v15 }
 0x80a   : > { %v1396_v63 = vpop.permute.xlu1 %1395 }
 0x80b   : > { %v1401_v5 = vsel %vm736_vm2, %v1396_v63, 0 }
 0x80e   : > { %v1446_v7 = vpop.permute.xlu1 %1445 }
 0x80f   : > { %v1451_v9 = vsel %vm736_vm2, %v1446_v7, 0 }
 0x810   : > { %v4148_v54 = vpop.eup %4147 }
 0x811   : > { %v1285_v55 = vsel %vm736_vm2, %v4148_v54, 0.0 }
 0x812   : > { %1286 = vadd.xlane.f32.xlu0 %v1285_v55  ;;  %v1444_v11 = vpop.permute.xlu1 %1443 }
 0x814   : > { %v4150_v56 = vpop.eup %4149 }
 0x815   : > { %v1288_v57 = vsel %vm736_vm2, %v4150_v56, 0.0 }
 0x816   : > { %1289 = vadd.xlane.f32.xlu0 %v1288_v57 }
 0x82c   : > { %1297 = vrot.lane.b32.xlu0 %v4501_v38, %s5180_s22  ;;  %s5182_s22 = smov 16  }
 0x830   : > { %1393 = vrot.lane.b32.xlu0 %v4501_v38, %s5176_s26  ;;  %s5184_s26 = smov 40  }
 0x89b   : > { %v1287_v58 = vpop.xlane.xlu0 %1286 }
 0x89c   : > { %4151 = vrcp.f32 %v1287_v58 }
 0x89f   : > { %v1290_v59 = vpop.xlane.xlu0 %1289 }
 0x8a0   : > { %4153 = vrcp.f32 %v1290_v59 }
 0x8a3   : > { %v1298_v60 = vpop.permute.xlu0 %1297 }
 0x8a4   : > { %v1303_v61 = vsel %vm861_vm3, %v1298_v60, 0  ;;  %v4099_v60 = vld [vmem:[%s5152_s7 + $0x8] sm:$0xff]  }
 0x8a5   : > { %3792 = vmatpush3.bf16.msra.mxu1 %v1303_v61  ;;  %v4100_v61 = vld [vmem:[%s5152_s7] sm:$0xff]  }
 0x8a6   : > { %3803 = vmatprep.subr.bf16.mxu1 %v4284_v15 }
 0x8a7   : > { %v1394_v10 = vpop.permute.xlu0 %1393 }
 0x8a9   : > { %v4152_v62 = vpop.eup %4151 }
 0x8aa   : > { %v1293_v2 = vmul.f32 %v4152_v62, %v4148_v54 }
 0x8ac   : > { %v1295_v3 = vpack.c.bf16 %v1293_v2, %v1293_v2 }
 0x8ad   : > { %v4154_v4 = vpop.eup %4153 }
 0x8ae   : > { %3794 = vmatmul.mubr.msk.bf16.vlgmr.msra.gmra.mxu1 %vm736_vm2, %v1295_v3  ;;  %v1294_v6 = vmul.f32 %v4154_v4, %v4150_v56 }
 0x8af   : > { %3804 = vmatpush3.bf16.xpose.msra.mxu1 %v1401_v5  ;;  %3805 = vmatprep.mubr.msk.bf16.mxu1 %vm4285_vm1, %v4284_v15 }
 0x8b0   : > { %v1296_v8 = vpack.c.bf16 %v1294_v6, %v1294_v6  ;;  %3815 = vmatprep.subr.bf16.mxu1 %v4284_v15 }
 0x8b2   : > { %3800 = vmatmul.mubr.msk.bf16.vlgmr.msra.gmra.mxu0 %vm736_vm2, %v1296_v8 }
 0x8b3   : > { %3810 = vmatpush3.bf16.xpose.msra.mxu0 %v1451_v9  ;;  %3811 = vmatprep.mubr.msk.bf16.mxu0 %vm4285_vm1, %v4284_v15 }
 0x8b4   : > { %3821 = vmatprep.subr.bf16.mxu0 %v4284_v15 }
 0x8b6   : > { %3806 = vmatmul.mubr.msk.bf16.vlgmr.msra.gmra.mxu1 %vm736_vm2, %v1394_v10 }
 0x8b7   : > { %3817 = vmatprep.mubr.msk.bf16.mxu1 %vm4285_vm1, %v4284_v15 }
 0x8ba   : > { %3812 = vmatmul.mubr.msk.bf16.vlgmr.msra.gmra.mxu0 %vm736_vm2, %v1444_v11 }
 0x8bb   : > { %3823 = vmatprep.mubr.msk.bf16.mxu0 %vm4285_vm1, %v4284_v15 }
 0x96e   : > { %v1339_v12 = vpop.f32.mrf.mxu1 }
 0x970   : > { %v3795_v13 = vpop.f32.mrf.mxu1 }
 0x972   : > { %v1342_v14 = vpop.f32.mrf.mxu1  ;;  %v1387_v16 = vpop.f32.mrf.mxu0 }
 0x973   : > { %v4072_v39 = vpack.i.bf16 %v1387_v16, %v1339_v12 }
 0x974   : > { %v3796_v17 = vpop.f32.mrf.mxu1  ;;  %v3801_v18 = vpop.f32.mrf.mxu0 }
 0x976   : > { %v1390_v20 = vpop.f32.mrf.mxu0  ;;  %v1437_v21 = vpop.f32.mrf.mxu1 }
 0x977   : > { %v1438_v24 = vadd.f32 %v4528_v47, %v1437_v21 }
 0x978   : > { %v3802_v25 = vpop.f32.mrf.mxu0  ;;  %v3807_v26 = vpop.f32.mrf.mxu1 }
 0x979   : > { %v1493_v27 = vsel %vm736_vm2, %v1438_v24, -inf }
 0x97a   : > { %1494 = vmax.xlane.f32.xlu0 %v1493_v27  ;;  %v1440_v29 = vpop.f32.mrf.mxu1  ;;  %v1487_v30 = vpop.f32.mrf.mxu0 }
 0x97b   : > { %v1488_v32 = vadd.f32 %v4532_v50, %v1487_v30 }
 0x97c   : > { %v3808_v33 = vpop.f32.mrf.mxu1  ;;  %v3813_v34 = vpop.f32.mrf.mxu0 }
 0x97d   : > { %v1496_v35 = vsel %vm736_vm2, %v1488_v32, -inf }
 0x97e   : > { %1497 = vmax.xlane.f32.xlu1 %v1496_v35  ;;  %v1490_v36 = vpop.f32.mrf.mxu0 }
 0x980   : > { %v3814_v37 = vpop.f32.mrf.mxu0 }
 0x98f   : > { %1565 = vrot.lane.b32.xlu1 %v4505_v42, %s5184_s26 }
 0x993   : > { %4068 = vrot.lane.b32.xlu1 %v4067_v23, %s5183_s30  ;;  %s5217_s30 = smov 64  }
 0x997   : > { %4073 = vrot.lane.b32.xlu1 %v4072_v39, %s5182_s22  ;;  %s5218_s22 = smov 88  }
 0xa03   : > { %v1495_v40 = vpop.xlane.xlu0 %1494 }
 0xa04   : > { %v1499_v41 = vsub.f32 %v1438_v24, %v1495_v40 }
 0xa06   : > { %v1501_v43 = vmul.f32 1.442695, %v1499_v41 }
 0xa07   : > { %v1498_v44 = vpop.xlane.xlu1 %1497 }
 0xa08   : > { %4155 = vpow2.f32 %v1501_v43  ;;  %v1500_v45 = vsub.f32 %v1488_v32, %v1498_v44 }
 0xa0a   : > { %v1503_v46 = vmul.f32 1.442695, %v1500_v45 }
 0xa0b   : > { %v1566_v48 = vpop.permute.xlu1 %1565 }
 0xa0c   : > { %4157 = vpow2.f32 %v1503_v46  ;;  %v1571_v42 = vsel %vm861_vm3, %v1566_v48, 0 }
 0xa0d   : > { %3822 = vmatpush3.bf16.msra.mxu0 %v1571_v42 }
 0xa0e   : > { %3835 = vmatprep.subr.bf16.mxu0 %v4284_v15 }
 0xa0f   : > { %v4069_v9 = vpop.permute.xlu1 %4068 }
 0xa10   : > { %v4071_v11 = vunpack.i.h.bf16 %v4069_v9  ;;  %v4070_v12 = vunpack.i.l.bf16 %v4069_v9  ;;  %v4108_v9 = vld [vmem:[%s5158_s13 + $0x10] sm:$0xff]  }
 0xa12   : > { %v1638_v17 = vsel %vm736_vm2, %v4573_v31, %v4071_v11  ;;  %v1637_v18 = vsel %vm736_vm2, %v4571_v28, %v4070_v12  ;;  %v3512_v28 = vld [vmem:[%s5153_s8] ss:$0 sm:$0xff] }
 0xa13   : > { %v4074_v10 = vpop.permute.xlu1 %4073  ;;  %v4110_v11 = vld [vmem:[%s5158_s13] sm:$0xff]  }
 0xa14   : > { %v4076_v13 = vunpack.i.h.bf16 %v4074_v10  ;;  %v4075_v14 = vunpack.i.l.bf16 %v4074_v10  ;;  %v4109_v10 = vld [vmem:[%s5158_s13 + $0x8] sm:$0xff]   ;;  %v3518_v12 = vld [vmem:[%s5215_s25] ss:$0 sm:$0xff] }
 0xa15   : > { %v4156_v19 = vpop.eup %4155 }
 0xa16   : > { %v1505_v22 = vsel %vm736_vm2, %v4156_v19, 0.0  ;;  %v1640_v24 = vsel %vm1639_vm4, %v1637_v18, %v4075_v14  ;;  %v1641_v25 = vsel %vm1639_vm4, %v1638_v17, %v4076_v13 }
 0xa17   : > { %1506 = vadd.xlane.f32.xlu0 %v1505_v22  ;;  %v4101_v22 = vld [vmem:[%s5156_s11 + $0x8] sm:$0xff]  }
 0xa19   : > { %v4158_v23 = vpop.eup %4157 }
 0xa1a   : > { %v1508_v49 = vsel %vm736_vm2, %v4158_v23, 0.0 }
 0xa1b   : > { %1509 = vadd.xlane.f32.xlu0 %v1508_v49  ;;  %v4103_v49 = vld [vmem:[%s5158_s13 + $0x38] sm:$0xff]  }
 0xa31   : > { %1517 = vrot.lane.b32.xlu0 %v4501_v38, %s5184_s26  ;;  %s5216_s26 = smov 96  }
 0xaa0   : > { %v1507_v51 = vpop.xlane.xlu0 %1506 }
 0xaa1   : > { %4159 = vrcp.f32 %v1507_v51  ;;  %v4104_v51 = vld [vmem:[%s5158_s13 + $0x30] sm:$0xff]  }
 0xaa4   : > { %v1510_v52 = vpop.xlane.xlu0 %1509 }
 0xaa5   : > { %4161 = vrcp.f32 %v1510_v52  ;;  %v4105_v52 = vld [vmem:[%s5158_s13 + $0x28] sm:$0xff]  }
 0xaa8   : > { %v1518_v53 = vpop.permute.xlu0 %1517 }
 0xaa9   : > { %v1523_v54 = vsel %vm861_vm3, %v1518_v53, 0  ;;  %v4106_v53 = vld [vmem:[%s5158_s13 + $0x20] sm:$0xff]  }
 0xaaa   : > { %3816 = vmatpush3.bf16.msra.mxu1 %v1523_v54  ;;  %v4107_v54 = vld [vmem:[%s5158_s13 + $0x18] sm:$0xff]  }
 0xaab   : > { %3827 = vmatprep.subr.bf16.mxu1 %v4284_v15 }
 0xaae   : > { %v4160_v55 = vpop.eup %4159 }
 0xaaf   : > { %v1513_v56 = vmul.f32 %v4160_v55, %v4156_v19 }
 0xab1   : > { %v1515_v57 = vpack.c.bf16 %v1513_v56, %v1513_v56 }
 0xab2   : > { %v4162_v58 = vpop.eup %4161 }
 0xab3   : > { %3818 = vmatmul.mubr.msk.bf16.vlgmr.msra.gmra.mxu1 %vm736_vm2, %v1515_v57  ;;  %v1514_v59 = vmul.f32 %v4162_v58, %v4158_v23  ;;  %v4102_v23 = vld [vmem:[%s5156_s11] sm:$0xff]  }
 0xab4   : > { %3831 = vmatprep.mubr.msk.bf16.mxu1 %vm4285_vm1, %v4284_v15  ;;  %3828 = vmatpush3.bf16.msra.mxu1 %v4099_v60 }
 0xab5   : > { %v1516_v38 = vpack.c.bf16 %v1514_v59, %v1514_v59  ;;  %3829 = vmatprep.subr.bf16.mxu1 %v4284_v15 }
 0xab7   : > { %3824 = vmatmul.mubr.msk.bf16.vlgmr.msra.gmra.mxu0 %vm736_vm2, %v1516_v38 }
 0xab8   : > { %3839 = vmatprep.mubr.msk.bf16.mxu0 %vm4285_vm1, %v4284_v15  ;;  %3830 = vmatpush3.bf16.msra.mxu1 %v4100_v61 }
 0xab9   : > { %3843 = vmatprep.subr.bf16.mxu1 %v4284_v15  ;;  %3836 = vmatpush3.bf16.msra.mxu0 %v4101_v22 }
 0xaba   : > { %3837 = vmatprep.subr.bf16.mxu0 %v4284_v15 }
 0xabd   : > { %3838 = vmatpush3.bf16.msra.mxu0 %v4102_v23 }
 0xabe   : > { %3863 = vmatprep.subr.bf16.mxu0 %v4284_v15 }
 0xb73   : > { %v1559_v62 = vpop.f32.mrf.mxu1 }
 0xb75   : > { %v3819_v63 = vpop.f32.mrf.mxu1 }
 0xb77   : > { %v1562_v2 = vpop.f32.mrf.mxu1  ;;  %v1607_v3 = vpop.f32.mrf.mxu0 }
 0xb78   : > { %v4077_v4 = vpack.i.bf16 %v1607_v3, %v1559_v62  ;;  %v3516_v62 = vld [vmem:[%s5154_s9] ss:$0 sm:$0xff] }
 0xb79   : > { %v3820_v5 = vpop.f32.mrf.mxu1  ;;  %v3825_v6 = vpop.f32.mrf.mxu0 }
 0xb7a   : > { %4078 = vrot.lane.b32.xlu0 %v4077_v4, %s5190_s0  ;;  %v3517_v4 = vld [vmem:[%s5155_s10] ss:$0 sm:$0xff]  ;;  %s5222_s0 = smov 112  }
 0xb7b   : > { %v1610_v7 = vpop.f32.mrf.mxu0 }
 0xb7d   : > { %v3826_v8 = vpop.f32.mrf.mxu0 }
 0xbec   : > { %v4079_v16 = vpop.permute.xlu0 %4078 }
 0xbed   : > { %v4081_v20 = vunpack.i.h.bf16 %v4079_v16  ;;  %v4080_v21 = vunpack.i.l.bf16 %v4079_v16 }
 0xbef   : > { %v1644_v26 = vsel %vm1642_vm5, %v1641_v25, %v4081_v20  ;;  %v1643_v27 = vsel %vm1642_vm5, %v1640_v24, %v4080_v21 }
 0xbf0   : > { %v1645_v29 = vpack.c.bf16 %v1644_v26, %v1643_v27  ;;  %v3530_v27 = vld [vmem:[%s5159_s14] ss:$0 sm:$0xff] }
 0xbf2   : > { %3832 = vmatmul.mubr.msk.bf16.vlgmr.msra.gmra.mxu1 %vm619_vm0, %v1645_v29 }
 0xbf3   : > { %3859 = vmatprep.mubr.msk.bf16.mxu1 %vm4285_vm1, %v4284_v15  ;;  %3844 = vmatpush3.bf16.msra.mxu1 %v4103_v49 }
 0xbf4   : > { %3845 = vmatprep.subr.bf16.mxu1 %v4284_v15 }
 0xbf7   : > { %3846 = vmatpush3.bf16.msra.mxu1 %v4104_v51 }
 0xbf8   : > { %3847 = vmatprep.subr.bf16.mxu1 %v4284_v15 }
 0xbfb   : > { %3848 = vmatpush3.bf16.msra.mxu1 %v4105_v52 }
 0xbfc   : > { %3849 = vmatprep.subr.bf16.mxu1 %v4284_v15 }
 0xbff   : > { %3850 = vmatpush3.bf16.msra.mxu1 %v4106_v53 }
 0xc00   : > { %3851 = vmatprep.subr.bf16.mxu1 %v4284_v15 }
 0xc03   : > { %3852 = vmatpush3.bf16.msra.mxu1 %v4107_v54 }
 0xc04   : > { %3853 = vmatprep.subr.bf16.mxu1 %v4284_v15 }
 0xc07   : > { %3854 = vmatpush3.bf16.msra.mxu1 %v4108_v9 }
 0xc08   : > { %3855 = vmatprep.subr.bf16.mxu1 %v4284_v15 }
 0xc0b   : > { %3856 = vmatpush3.bf16.msra.mxu1 %v4109_v10 }
 0xc0c   : > { %3857 = vmatprep.subr.bf16.mxu1 %v4284_v15 }
 0xc0f   : > { %3858 = vmatpush3.bf16.msra.mxu1 %v4110_v11 }
 0xc10   : > { %3889 = vmatprep.subr.bf16.mxu1 %v4284_v15 }
 0xcb2   : > { %v1706_v31 = vpop.f32.mrf.mxu1 }
 0xcb3   : > { %v1707_v30 = vadd.f32 %v3512_v28, %v1706_v31 }
 0xcb4   : > { %v3833_v32 = vpop.f32.mrf.mxu1 }
 0xcb5   : > { %v4706_v33 = vadd.f32 %v1707_v30, %v4463_v0 }
 0xcb6   : > { %v1709_v34 = vpop.f32.mrf.mxu1 }
 0xcb7   : > { %v1710_v35 = vadd.f32 %v3512_v28, %v1709_v34  ;;  %v1717_v36 = vsel %vm619_vm0, %v4706_v33, 0.0 }
 0xcb8   : > { %1718 = vadd.xlane.f32.xlu1 %v1717_v36  ;;  %v3834_v37 = vpop.f32.mrf.mxu1 }
 0xcb9   : > { %v4711_v39 = vadd.f32 %v1710_v35, %v4465_v1 }
 0xcbb   : > { %v1720_v40 = vsel %vm619_vm0, %v4711_v39, 0.0 }
 0xcbc   : > { %1721 = vadd.xlane.f32.xlu0 %v1720_v40 }
 0xd41   : > { %v1719_v41 = vpop.xlane.xlu1 %1718 }
 0xd42   : > { %v1723_v43 = vmul.f32 0.03125, %v1719_v41 }
 0xd44   : > { %v1725_v44 = vsub.f32 %v4706_v33, %v1723_v43 }
 0xd45   : > { %v1722_v0 = vpop.xlane.xlu0 %1721 }
 0xd46   : > { %v1724_v45 = vmul.f32 0.03125, %v1722_v0  ;;  %v1727_v46 = vmul.f32 %v1725_v44, %v1725_v44 }
 0xd48   : > { %v1726_v48 = vsub.f32 %v4711_v39, %v1724_v45  ;;  %v1729_v42 = vsel %vm619_vm0, %v1727_v46, 0.0 }
 0xd49   : > { %1730 = vadd.xlane.f32.xlu0 %v1729_v42  ;;  %v4111_v42 = vld [vmem:[%s5211_s5 + $0x18] sm:$0xff]  }
 0xd4a   : > { %v1728_v19 = vmul.f32 %v1726_v48, %v1726_v48 }
 0xd4c   : > { %v1732_v1 = vsel %vm619_vm0, %v1728_v19, 0.0  ;;  %v4112_v19 = vld [vmem:[%s5211_s5 + $0x10] sm:$0xff]  }
 0xd4d   : > { %1733 = vadd.xlane.f32.xlu0 %v1732_v1 }
 0xdd2   : > { %v1731_v55 = vpop.xlane.xlu0 %1730 }
 0xdd3   : > { %v1735_v56 = vmul.f32 0.03125, %v1731_v55  ;;  %v3533_v55 = vld [vmem:[%s5212_s20 + $0x1] ss:$0 sm:$0xff] }
 0xdd5   : > { %v1737_v57 = vadd.f32 1e-05, %v1735_v56 }
 0xdd6   : > { %v1734_v58 = vpop.xlane.xlu0 %1733 }
 0xdd7   : > { %4163 = vrsqrt.f32 %v1737_v57  ;;  %v1736_v59 = vmul.f32 0.03125, %v1734_v58 }
 0xdd9   : > { %v1738_v38 = vadd.f32 1e-05, %v1736_v59  ;;  %v3534_v59 = vld [vmem:[%s5213_s4 + $0x1] ss:$0 sm:$0xff] }
 0xddb   : > { %4165 = vrsqrt.f32 %v1738_v38 }
 0xde4   : > { %v4164_v60 = vpop.eup %4163 }
 0xde5   : > { %v1741_v61 = vmul.f32 %v4164_v60, %v1725_v44 }
 0xde7   : > { %v1749_v3 = vmul.f32 %v3516_v62, %v1741_v61 }
 0xde8   : > { %v4166_v63 = vpop.eup %4165 }
 0xde9   : > { %v1742_v2 = vmul.f32 %v4166_v63, %v1726_v48  ;;  %v1757_v6 = vadd.f32 %v3517_v4, %v1749_v3  ;;  %v3540_v63 = vld [vmem:[%s5151_s6 + $0x1] ss:$0 sm:$0xff] }
 0xdeb   : > { %v1750_v5 = vmul.f32 %v3516_v62, %v1742_v2 }
 0xded   : > { %v1758_v7 = vadd.f32 %v3517_v4, %v1750_v5 }
 0xdef   : > { %v1759_v8 = vpack.c.bf16 %v1758_v7, %v1757_v6 }
 0xdf1   : > { %3840 = vmatmul.mubr.msk.bf16.vlgmr.msra.gmra.mxu0 %vm619_vm0, %v1759_v8 }
 0xdf2   : > { %3867 = vmatprep.mubr.msk.bf16.mxu0 %vm4285_vm1, %v4284_v15  ;;  %3864 = vmatpush3.bf16.msra.mxu0 %v4111_v42 }
 0xdf3   : > { %3865 = vmatprep.subr.bf16.mxu0 %v4284_v15 }
 0xdf6   : > { %3866 = vmatpush3.bf16.msra.mxu0 %v4112_v19 }
 0xdf7   : > { %3871 = vmatprep.subr.bf16.mxu0 %v4284_v15 }
 0xeb1   : > { %v1820_v13 = vpop.f32.mrf.mxu0 }
 0xeb2   : > { %v1821_v16 = vadd.f32 %v3518_v12, %v1820_v13 }
 0xeb3   : > { %v3841_v14 = vpop.f32.mrf.mxu0 }
 0xeb4   : > { %v1827_v21 = vmax.f32 %v1821_v16, 0.0 }
 0xeb5   : > { %v1823_v17 = vpop.f32.mrf.mxu0 }
 0xeb6   : > { %v1824_v18 = vadd.f32 %v3518_v12, %v1823_v17 }
 0xeb7   : > { %v3842_v20 = vpop.f32.mrf.mxu0 }
 0xeb8   : > { %v1828_v24 = vmax.f32 %v1824_v18, 0.0 }
 0xeba   : > { %v1829_v25 = vpack.c.bf16 %v1828_v24, %v1827_v21 }
 0xebc   : > { %3860 = vmatmul.mubr.bf16.vlgmr.msra.gmra.mxu1 %v1829_v25 }
 0xebd   : > { %3891 = vmatprep.mubr.msk.bf16.mxu1 %vm4285_vm1, %v4284_v15 }
 0xf7c   : > { %v1928_v26 = vpop.f32.mrf.mxu1 }
 0xf7d   : > { %v1935_v29 = vadd.f32 %v1928_v26, %v4706_v33 }
 0xf7e   : > { %v3861_v28 = vpop.f32.mrf.mxu1 }
 0xf7f   : > { %v4777_v31 = vadd.f32 %v3530_v27, %v1935_v29 }
 0xf80   : > { %v1931_v30 = vpop.f32.mrf.mxu1 }
 0xf81   : > { %v1936_v32 = vadd.f32 %v1931_v30, %v4711_v39  ;;  %v1950_v34 = vsel %vm619_vm0, %v4777_v31, 0.0 }
 0xf82   : > { %1951 = vadd.xlane.f32.xlu1 %v1950_v34  ;;  %v3862_v35 = vpop.f32.mrf.mxu1 }
 0xf83   : > { %v4782_v36 = vadd.f32 %v3530_v27, %v1936_v32 }
 0xf85   : > { %v1953_v37 = vsel %vm619_vm0, %v4782_v36, 0.0 }
 0xf86   : > { %1954 = vadd.xlane.f32.xlu0 %v1953_v37 }
0x100b   : > { %v1952_v40 = vpop.xlane.xlu1 %1951 }
0x100c   : > { %v1956_v41 = vmul.f32 0.03125, %v1952_v40 }
0x100e   : > { %v1958_v33 = vsub.f32 %v4777_v31, %v1956_v41 }
0x100f   : > { %v1955_v43 = vpop.xlane.xlu0 %1954 }
0x1010   : > { %v1957_v44 = vmul.f32 0.03125, %v1955_v43  ;;  %v1960_v0 = vmul.f32 %v1958_v33, %v1958_v33 }
0x1012   : > { %v1959_v39 = vsub.f32 %v4782_v36, %v1957_v44  ;;  %v1962_v45 = vsel %vm619_vm0, %v1960_v0, 0.0 }
0x1013   : > { %1963 = vadd.xlane.f32.xlu1 %v1962_v45 }
0x1014   : > { %v1961_v46 = vmul.f32 %v1959_v39, %v1959_v39 }
0x1016   : > { %v1965_v48 = vsel %vm619_vm0, %v1961_v46, 0.0 }
0x1017   : > { %1966 = vadd.xlane.f32.xlu0 %v1965_v48 }
0x109c   : > { %v1964_v1 = vpop.xlane.xlu1 %1963 }
0x109d   : > { %v1968_v22 = vmul.f32 0.03125, %v1964_v1 }
0x109f   : > { %v1970_v23 = vadd.f32 1e-05, %v1968_v22 }
0x10a0   : > { %v1967_v49 = vpop.xlane.xlu0 %1966 }
0x10a1   : > { %4167 = vrsqrt.f32 %v1970_v23  ;;  %v1969_v51 = vmul.f32 0.03125, %v1967_v49 }
0x10a3   : > { %v1971_v52 = vadd.f32 1e-05, %v1969_v51 }
0x10a5   : > { %4169 = vrsqrt.f32 %v1971_v52 }
0x10ae   : > { %v4168_v53 = vpop.eup %4167 }
0x10af   : > { %v1974_v54 = vmul.f32 %v4168_v53, %v1958_v33 }
0x10b1   : > { %v1982_v58 = vmul.f32 %v3533_v55, %v1974_v54 }
0x10b2   : > { %v4170_v56 = vpop.eup %4169 }
0x10b3   : > { %v1975_v57 = vmul.f32 %v4170_v56, %v1959_v39  ;;  %v1990_v60 = vadd.f32 %v3534_v59, %v1982_v58 }
0x10b5   : > { %v1983_v38 = vmul.f32 %v3533_v55, %v1975_v57 }
0x10b7   : > { %v1991_v61 = vadd.f32 %v3534_v59, %v1983_v38 }
0x10b9   : > { %v1992_v62 = vpack.c.bf16 %v1991_v61, %v1990_v60  ;;  %v4873_v61 = vld [vmem:[%s4525_s23] ss:$0 sm:$0xff] }
0x10bb   : > { %3868 = vmatmul.mubr.msk.bf16.vlgmr.msra.gmra.mxu0 %vm619_vm0, %v1992_v62 }
0x10bc   : > { %3873 = vmatprep.mubr.msk.bf16.mxu0 %vm4285_vm1, %v4284_v15 }
0x117b   : > { %v2055_v2 = vpop.f32.mrf.mxu0 }
0x117c   : > { %v2056_v3 = vadd.f32 %v3540_v63, %v2055_v2 }
0x117d   : > { %v3869_v4 = vpop.f32.mrf.mxu0 }
0x117e   : > { %v4810_v5 = vpack.c.bf16 %v2056_v3, %v2056_v3 }
0x117f   : > { %v2058_v6 = vpop.f32.mrf.mxu0 }
0x1180   : > { %v2059_v7 = vadd.f32 %v3540_v63, %v2058_v6  ;;  %2065 = vrot.lane.b32.xlu1 %v4810_v5, %s5216_s26 }
0x1181   : > { %v3870_v8 = vpop.f32.mrf.mxu0 }
0x1182   : > { %v4814_v9 = vpack.c.bf16 %v2059_v7, %v2059_v7 }
0x1184   : > { %2114 = vrot.lane.b32.xlu0 %v4814_v9, %s5216_s26  ;;  %s5224_s26 = smov 72  }
0x11f2   : > { %v2066_v10 = vpop.permute.xlu1 %2065 }
0x11f3   : > { %v2071_v11 = vsel %vm736_vm2, %v2066_v10, 0 }
0x11f4   : > { %3872 = vmatpush3.bf16.xpose.msra.mxu0 %v2071_v11  ;;  %v4878_v11 = vld [vmem:[%s4525_s23 + $0x1] ss:$0 sm:$0xff]  ;;  %s5223_s23 = smov 48  }
0x11f5   : > { %3877 = vmatprep.subr.bf16.mxu0 %v4284_v15 }
0x11f6   : > { %v2115_v12 = vpop.permute.xlu0 %2114 }
0x11f7   : > { %v2120_v13 = vsel %vm736_vm2, %v2115_v12, 0 }
0x11fb   : > { %3874 = vmatmul.mubr.msk.bf16.vlgmr.msra.gmra.mxu0 %vm736_vm2, %v4810_v5 }
0x11fc   : > { %3878 = vmatpush3.bf16.xpose.msra.mxu0 %v2120_v13  ;;  %3879 = vmatprep.mubr.msk.bf16.mxu0 %vm4285_vm1, %v4284_v15 }
0x11fd   : > { %3883 = vmatprep.subr.bf16.mxu0 %v4284_v15 }
0x1203   : > { %3880 = vmatmul.mubr.msk.bf16.vlgmr.msra.gmra.mxu0 %vm736_vm2, %v4814_v9 }
0x1204   : > { %3885 = vmatprep.mubr.msk.bf16.mxu0 %vm4285_vm1, %v4284_v15 }
0x12bb   : > { %v2107_v14 = vpop.f32.mrf.mxu0 }
0x12bc   : > { %v2108_v16 = vadd.f32 %v4528_v47, %v2107_v14 }
0x12bd   : > { %v3875_v17 = vpop.f32.mrf.mxu0 }
0x12be   : > { %v2162_v18 = vsel %vm736_vm2, %v2108_v16, -inf }
0x12bf   : > { %2163 = vmax.xlane.f32.xlu1 %v2162_v18  ;;  %v2110_v20 = vpop.f32.mrf.mxu0 }
0x12c1   : > { %v3876_v21 = vpop.f32.mrf.mxu0 }
0x12c3   : > { %v2156_v24 = vpop.f32.mrf.mxu0 }
0x12c4   : > { %v2157_v25 = vadd.f32 %v4532_v50, %v2156_v24 }
0x12c5   : > { %v3881_v26 = vpop.f32.mrf.mxu0 }
0x12c6   : > { %v2165_v27 = vsel %vm736_vm2, %v2157_v25, -inf }
0x12c7   : > { %2166 = vmax.xlane.f32.xlu0 %v2165_v27  ;;  %v2159_v29 = vpop.f32.mrf.mxu0 }
0x12c9   : > { %v3882_v28 = vpop.f32.mrf.mxu0 }
0x12d0   : > { %2186 = vrot.lane.b32.xlu1 %v4810_v5, %s5217_s30 }
0x1348   : > { %v2164_v30 = vpop.xlane.xlu1 %2163 }
0x1349   : > { %v2168_v47 = vsub.f32 %v2108_v16, %v2164_v30 }
0x134b   : > { %v2170_v32 = vmul.f32 1.442695, %v2168_v47 }
0x134c   : > { %v2187_v34 = vpop.permute.xlu1 %2186 }
0x134d   : > { %4171 = vpow2.f32 %v2170_v32  ;;  %v2192_v35 = vsel %vm861_vm3, %v2187_v34, 0 }
0x134e   : > { %3884 = vmatpush3.bf16.msra.mxu0 %v2192_v35 }
0x134f   : > { %3895 = vmatprep.subr.bf16.mxu0 %v4284_v15 }
0x1350   : > { %v2167_v50 = vpop.xlane.xlu0 %2166 }
0x1351   : > { %v2169_v37 = vsub.f32 %v2157_v25, %v2167_v50 }
0x1353   : > { %v2172_v40 = vmul.f32 1.442695, %v2169_v37 }
0x1355   : > { %4173 = vpow2.f32 %v2172_v40 }
0x135a   : > { %v4172_v41 = vpop.eup %4171 }
0x135b   : > { %v2174_v33 = vsel %vm736_vm2, %v4172_v41, 0.0 }
0x135c   : > { %2175 = vadd.xlane.f32.xlu1 %v2174_v33 }
0x1362   : > { %v4174_v43 = vpop.eup %4173 }
0x1363   : > { %v2177_v44 = vsel %vm736_vm2, %v4174_v43, 0.0 }
0x1364   : > { %2178 = vadd.xlane.f32.xlu0 %v2177_v44 }
0x136d   : > { %2284 = vrot.lane.b32.xlu1 %v4810_v5, %s5218_s22 }
0x1371   : > { %2334 = vrot.lane.b32.xlu1 %v4814_v9, %s5218_s22  ;;  %s5226_s22 = smov 40  }
0x1375   : > { %2282 = vrot.lane.b32.xlu1 %v4810_v5, %s5219_s3 }
0x137a   : > { %2234 = vrot.lane.b32.xlu0 %v4814_v9, %s5217_s30  ;;  %s5225_s30 = smov 104  }
0x137e   : > { %2332 = vrot.lane.b32.xlu0 %v4814_v9, %s5219_s3  ;;  %s5227_s3 = smov 8  }
0x13e5   : > { %v2176_v0 = vpop.xlane.xlu1 %2175 }
0x13e6   : > { %4175 = vrcp.f32 %v2176_v0 }
0x13e9   : > { %v2285_v42 = vpop.permute.xlu1 %2284 }
0x13ea   : > { %v2290_v22 = vsel %vm736_vm2, %v2285_v42, 0 }
0x13ed   : > { %v2179_v39 = vpop.xlane.xlu0 %2178  ;;  %v2335_v23 = vpop.permute.xlu1 %2334 }
0x13ee   : > { %4177 = vrcp.f32 %v2179_v39  ;;  %v2340_v54 = vsel %vm736_vm2, %v2335_v23, 0 }
0x13f1   : > { %v2235_v45 = vpop.permute.xlu0 %2234  ;;  %v2283_v53 = vpop.permute.xlu1 %2282 }
0x13f2   : > { %v2240_v46 = vsel %vm861_vm3, %v2235_v45, 0 }
0x13f3   : > { %v4176_v48 = vpop.eup %4175  ;;  %3890 = vmatpush3.bf16.msra.mxu1 %v2240_v46 }
0x13f4   : > { %v2182_v19 = vmul.f32 %v4176_v48, %v4172_v41  ;;  %3901 = vmatprep.subr.bf16.mxu1 %v4284_v15 }
0x13f5   : > { %v2333_v55 = vpop.permute.xlu0 %2332 }
0x13f6   : > { %v2184_v1 = vpack.c.bf16 %v2182_v19, %v2182_v19 }
0x13f8   : > { %3886 = vmatmul.mubr.msk.bf16.vlgmr.msra.gmra.mxu0 %vm736_vm2, %v2184_v1 }
0x13f9   : > { %3896 = vmatpush3.bf16.xpose.msra.mxu0 %v2290_v22  ;;  %3897 = vmatprep.mubr.msk.bf16.mxu0 %vm4285_vm1, %v4284_v15 }
0x13fa   : > { %3907 = vmatprep.subr.bf16.mxu0 %v4284_v15 }
0x13fb   : > { %v4178_v49 = vpop.eup %4177 }
0x13fc   : > { %v2183_v51 = vmul.f32 %v4178_v49, %v4174_v43 }
0x13fe   : > { %v2185_v52 = vpack.c.bf16 %v2183_v51, %v2183_v51 }
0x1400   : > { %3892 = vmatmul.mubr.msk.bf16.vlgmr.msra.gmra.mxu1 %vm736_vm2, %v2185_v52  ;;  %3898 = vmatmul.mubr.msk.bf16.vlgmr.msra.gmra.mxu0 %vm736_vm2, %v2283_v53 }
0x1401   : > { %3902 = vmatpush3.bf16.xpose.msra.mxu1 %v2340_v54  ;;  %3903 = vmatprep.mubr.msk.bf16.mxu1 %vm4285_vm1, %v4284_v15 }
0x1402   : > { %3913 = vmatprep.subr.bf16.mxu1 %v4284_v15  ;;  %3909 = vmatprep.mubr.msk.bf16.mxu0 %vm4285_vm1, %v4284_v15 }
0x1408   : > { %3904 = vmatmul.mubr.msk.bf16.vlgmr.msra.gmra.mxu1 %vm736_vm2, %v2333_v55 }
0x1409   : > { %3915 = vmatprep.mubr.msk.bf16.mxu1 %vm4285_vm1, %v4284_v15 }
0x14b8   : > { %v4868_v56 = vpop.f32.mrf.mxu0 }
0x14ba   : > { %v3887_v57 = vpop.f32.mrf.mxu0 }
0x14bc   : > { %v2231_v58 = vpop.f32.mrf.mxu0 }
0x14be   : > { %v3888_v59 = vpop.f32.mrf.mxu0 }
0x14c0   : > { %v4870_v38 = vpop.f32.mrf.mxu1  ;;  %v2326_v60 = vpop.f32.mrf.mxu0 }
0x14c1   : > { %v2327_v62 = vadd.f32 %v4873_v61, %v2326_v60 }
0x14c2   : > { %v3893_v63 = vpop.f32.mrf.mxu1  ;;  %v3899_v2 = vpop.f32.mrf.mxu0 }
0x14c3   : > { %v2382_v3 = vsel %vm736_vm2, %v2327_v62, -inf }
0x14c4   : > { %v2279_v4 = vpop.f32.mrf.mxu1  ;;  %2383 = vmax.xlane.f32.xlu1 %v2382_v3  ;;  %v2329_v6 = vpop.f32.mrf.mxu0 }
0x14c6   : > { %v3894_v7 = vpop.f32.mrf.mxu1  ;;  %v3900_v8 = vpop.f32.mrf.mxu0 }
0x14c8   : > { %v2376_v10 = vpop.f32.mrf.mxu1 }
0x14c9   : > { %v2377_v12 = vadd.f32 %v4878_v11, %v2376_v10 }
0x14ca   : > { %v3905_v13 = vpop.f32.mrf.mxu1 }
0x14cb   : > { %v2385_v14 = vsel %vm736_vm2, %v2377_v12, -inf }
0x14cc   : > { %2386 = vmax.xlane.f32.xlu0 %v2385_v14  ;;  %v2379_v16 = vpop.f32.mrf.mxu1 }
0x14ce   : > { %v3906_v17 = vpop.f32.mrf.mxu1 }
0x14d5   : > { %2406 = vrot.lane.b32.xlu1 %v4810_v5, %s5220_s24 }
0x14d9   : > { %2504 = vrot.lane.b32.xlu1 %v4810_v5, %s5221_s28 }
0x14dd   : > { %2554 = vrot.lane.b32.xlu1 %v4814_v9, %s5221_s28 }
0x14e1   : > { %2502 = vrot.lane.b32.xlu1 %v4810_v5, %s5222_s0 }
0x154d   : > { %v2384_v18 = vpop.xlane.xlu1 %2383 }
0x154e   : > { %v2388_v20 = vsub.f32 %v2327_v62, %v2384_v18 }
0x1550   : > { %v2390_v21 = vmul.f32 1.442695, %v2388_v20 }
0x1551   : > { %v2407_v24 = vpop.permute.xlu1 %2406 }
0x1552   : > { %4179 = vpow2.f32 %v2390_v21  ;;  %v2412_v25 = vsel %vm861_vm3, %v2407_v24, 0 }
0x1553   : > { %3908 = vmatpush3.bf16.msra.mxu0 %v2412_v25 }
0x1554   : > { %3919 = vmatprep.subr.bf16.mxu0 %v4284_v15 }
0x1555   : > { %v2387_v26 = vpop.xlane.xlu0 %2386  ;;  %v2505_v41 = vpop.permute.xlu1 %2504 }
0x1556   : > { %v2389_v27 = vsub.f32 %v2377_v12, %v2387_v26  ;;  %v2510_v44 = vsel %vm736_vm2, %v2505_v41, 0 }
0x1558   : > { %v2392_v29 = vmul.f32 1.442695, %v2389_v27 }
0x1559   : > { %v2555_v0 = vpop.permute.xlu1 %2554 }
0x155a   : > { %4181 = vpow2.f32 %v2392_v29  ;;  %v2560_v42 = vsel %vm736_vm2, %v2555_v0, 0 }
0x155d   : > { %v2503_v48 = vpop.permute.xlu1 %2502 }
0x155f   : > { %v4180_v28 = vpop.eup %4179 }
0x1560   : > { %v2394_v30 = vsel %vm736_vm2, %v4180_v28, 0.0 }
0x1561   : > { %2395 = vadd.xlane.f32.xlu0 %v2394_v30 }
0x1567   : > { %v4182_v47 = vpop.eup %4181 }
0x1568   : > { %v2397_v32 = vsel %vm736_vm2, %v4182_v47, 0.0 }
0x1569   : > { %2398 = vadd.xlane.f32.xlu0 %v2397_v32 }
0x157f   : > { %2454 = vrot.lane.b32.xlu0 %v4814_v9, %s5220_s24  ;;  %s5228_s24 = smov 16  }
0x1583   : > { %2552 = vrot.lane.b32.xlu0 %v4814_v9, %s5222_s0 }
0x15ea   : > { %v2396_v34 = vpop.xlane.xlu0 %2395 }
0x15eb   : > { %4183 = vrcp.f32 %v2396_v34 }
0x15f2   : > { %v2399_v35 = vpop.xlane.xlu0 %2398 }
0x15f3   : > { %4185 = vrcp.f32 %v2399_v35 }
0x15f6   : > { %v2455_v50 = vpop.permute.xlu0 %2454 }
0x15f7   : > { %v2460_v37 = vsel %vm861_vm3, %v2455_v50, 0 }
0x15f8   : > { %v4184_v40 = vpop.eup %4183  ;;  %3914 = vmatpush3.bf16.msra.mxu1 %v2460_v37 }
0x15f9   : > { %v2402_v33 = vmul.f32 %v4184_v40, %v4180_v28  ;;  %3925 = vmatprep.subr.bf16.mxu1 %v4284_v15 }
0x15fa   : > { %v2553_v19 = vpop.permute.xlu0 %2552 }
0x15fb   : > { %v2404_v43 = vpack.c.bf16 %v2402_v33, %v2402_v33 }
0x15fd   : > { %3910 = vmatmul.mubr.msk.bf16.vlgmr.msra.gmra.mxu0 %vm736_vm2, %v2404_v43 }
0x15fe   : > { %3920 = vmatpush3.bf16.xpose.msra.mxu0 %v2510_v44  ;;  %3921 = vmatprep.mubr.msk.bf16.mxu0 %vm4285_vm1, %v4284_v15 }
0x15ff   : > { %3931 = vmatprep.subr.bf16.mxu0 %v4284_v15 }
0x1600   : > { %v4186_v39 = vpop.eup %4185 }
0x1601   : > { %v2403_v45 = vmul.f32 %v4186_v39, %v4182_v47 }
0x1603   : > { %v2405_v46 = vpack.c.bf16 %v2403_v45, %v2403_v45 }
0x1605   : > { %3916 = vmatmul.mubr.msk.bf16.vlgmr.msra.gmra.mxu1 %vm736_vm2, %v2405_v46  ;;  %3922 = vmatmul.mubr.msk.bf16.vlgmr.msra.gmra.mxu0 %vm736_vm2, %v2503_v48 }
0x1606   : > { %3926 = vmatpush3.bf16.xpose.msra.mxu1 %v2560_v42  ;;  %3927 = vmatprep.mubr.msk.bf16.mxu1 %vm4285_vm1, %v4284_v15 }
0x1607   : > { %3937 = vmatprep.subr.bf16.mxu1 %v4284_v15  ;;  %3933 = vmatprep.mubr.msk.bf16.mxu0 %vm4285_vm1, %v4284_v15 }
0x160d   : > { %3928 = vmatmul.mubr.msk.bf16.vlgmr.msra.gmra.mxu1 %vm736_vm2, %v2553_v19 }
0x160e   : > { %3939 = vmatprep.mubr.msk.bf16.mxu1 %vm4285_vm1, %v4284_v15 }
0x16bd   : > { %v4916_v1 = vpop.f32.mrf.mxu0 }
0x16bf   : > { %v3911_v22 = vpop.f32.mrf.mxu0 }
0x16c1   : > { %v2451_v23 = vpop.f32.mrf.mxu0 }
0x16c3   : > { %v3912_v49 = vpop.f32.mrf.mxu0 }
0x16c5   : > { %v4918_v51 = vpop.f32.mrf.mxu1  ;;  %v2546_v52 = vpop.f32.mrf.mxu0 }
0x16c6   : > { %v4082_v53 = vpack.i.bf16 %v4918_v51, %v4916_v1  ;;  %v2547_v54 = vadd.f32 %v4873_v61, %v2546_v52 }
0x16c7   : > { %v3917_v55 = vpop.f32.mrf.mxu1  ;;  %v3923_v57 = vpop.f32.mrf.mxu0 }
0x16c8   : > { %v2602_v58 = vsel %vm736_vm2, %v2547_v54, -inf }
0x16c9   : > { %v2499_v59 = vpop.f32.mrf.mxu1  ;;  %2603 = vmax.xlane.f32.xlu1 %v2602_v58  ;;  %v2549_v60 = vpop.f32.mrf.mxu0 }
0x16cb   : > { %v3918_v62 = vpop.f32.mrf.mxu1  ;;  %v3924_v63 = vpop.f32.mrf.mxu0 }
0x16cd   : > { %v2596_v2 = vpop.f32.mrf.mxu1 }
0x16ce   : > { %v2597_v3 = vadd.f32 %v4878_v11, %v2596_v2 }
0x16cf   : > { %v3929_v4 = vpop.f32.mrf.mxu1 }
0x16d0   : > { %v2605_v6 = vsel %vm736_vm2, %v2597_v3, -inf }
0x16d1   : > { %2606 = vmax.xlane.f32.xlu0 %v2605_v6  ;;  %v2599_v7 = vpop.f32.mrf.mxu1 }
0x16d3   : > { %v3930_v8 = vpop.f32.mrf.mxu1 }
0x16da   : > { %2626 = vrot.lane.b32.xlu1 %v4810_v5, %s5223_s23 }
0x16de   : > { %2724 = vrot.lane.b32.xlu1 %v4810_v5, %s5224_s26 }
0x16e2   : > { %2774 = vrot.lane.b32.xlu1 %v4814_v9, %s5224_s26  ;;  %s3287_s26 = sadd.s32 1, %s4453_s29 }
0x16e6   : > { %2722 = vrot.lane.b32.xlu1 %v4810_v5, %s5225_s30 }
0x1752   : > { %v2604_v10 = vpop.xlane.xlu1 %2603 }
0x1753   : > { %v2608_v12 = vsub.f32 %v2547_v54, %v2604_v10 }
0x1755   : > { %v2610_v13 = vmul.f32 1.442695, %v2608_v12 }
0x1756   : > { %v2627_v14 = vpop.permute.xlu1 %2626 }
0x1757   : > { %4187 = vpow2.f32 %v2610_v13  ;;  %v2632_v16 = vsel %vm861_vm3, %v2627_v14, 0 }
0x1758   : > { %3932 = vmatpush3.bf16.msra.mxu0 %v2632_v16 }
0x1759   : > { %3943 = vmatprep.subr.bf16.mxu0 %v4284_v15 }
0x175a   : > { %v2607_v17 = vpop.xlane.xlu0 %2606  ;;  %v2725_v32 = vpop.permute.xlu1 %2724 }
0x175b   : > { %v2609_v18 = vsub.f32 %v2597_v3, %v2607_v17  ;;  %v2730_v50 = vsel %vm736_vm2, %v2725_v32, 0 }
0x175d   : > { %v2612_v20 = vmul.f32 1.442695, %v2609_v18 }
0x175e   : > { %v2775_v37 = vpop.permute.xlu1 %2774 }
0x175f   : > { %4189 = vpow2.f32 %v2612_v20  ;;  %v2780_v44 = vsel %vm736_vm2, %v2775_v37, 0 }
0x1762   : > { %v2723_v43 = vpop.permute.xlu1 %2722 }
0x1764   : > { %v4188_v21 = vpop.eup %4187 }
0x1765   : > { %v2614_v24 = vsel %vm736_vm2, %v4188_v21, 0.0 }
0x1766   : > { %2615 = vadd.xlane.f32.xlu0 %v2614_v24 }
0x176c   : > { %v4190_v25 = vpop.eup %4189 }
0x176d   : > { %v2617_v26 = vsel %vm736_vm2, %v4190_v25, 0.0 }
0x176e   : > { %2618 = vadd.xlane.f32.xlu0 %v2617_v26 }
0x1784   : > { %2674 = vrot.lane.b32.xlu0 %v4814_v9, %s5223_s23  ;;  %s3617_s23 = sshll.u32 %s4425_s12, 5  ;;  %s4300_s12 = smov [#allocation5]  }
0x1788   : > { %2772 = vrot.lane.b32.xlu0 %v4814_v9, %s5225_s30  ;;  %s5229_s30 = smov 24  }
0x17ef   : > { %v2616_v27 = vpop.xlane.xlu0 %2615 }
0x17f0   : > { %4191 = vrcp.f32 %v2616_v27  ;;  %v4113_v27 = vld [vmem:[%s5152_s7 + $0x18] sm:$0xff]  }
0x17f7   : > { %v2619_v29 = vpop.xlane.xlu0 %2618 }
0x17f8   : > { %4193 = vrcp.f32 %v2619_v29  ;;  %v4114_v29 = vld [vmem:[%s5152_s7 + $0x10] sm:$0xff]  }
0x17fb   : > { %v2675_v28 = vpop.permute.xlu0 %2674 }
0x17fc   : > { %v2680_v30 = vsel %vm861_vm3, %v2675_v28, 0 }
0x17fd   : > { %v4192_v47 = vpop.eup %4191  ;;  %3938 = vmatpush3.bf16.msra.mxu1 %v2680_v30 }
0x17fe   : > { %v2622_v34 = vmul.f32 %v4192_v47, %v4188_v21  ;;  %3949 = vmatprep.subr.bf16.mxu1 %v4284_v15 }
0x17ff   : > { %v2773_v0 = vpop.permute.xlu0 %2772 }
0x1800   : > { %v2624_v35 = vpack.c.bf16 %v2622_v34, %v2622_v34 }
0x1802   : > { %3934 = vmatmul.mubr.msk.bf16.vlgmr.msra.gmra.mxu0 %vm736_vm2, %v2624_v35 }
0x1803   : > { %3944 = vmatpush3.bf16.xpose.msra.mxu0 %v2730_v50  ;;  %3945 = vmatprep.mubr.msk.bf16.mxu0 %vm4285_vm1, %v4284_v15 }
0x1804   : > { %3955 = vmatprep.subr.bf16.mxu0 %v4284_v15 }
0x1805   : > { %v4194_v40 = vpop.eup %4193 }
0x1806   : > { %v2623_v41 = vmul.f32 %v4194_v40, %v4190_v25 }
0x1808   : > { %v2625_v33 = vpack.c.bf16 %v2623_v41, %v2623_v41 }
0x180a   : > { %3940 = vmatmul.mubr.msk.bf16.vlgmr.msra.gmra.mxu1 %vm736_vm2, %v2625_v33  ;;  %3946 = vmatmul.mubr.msk.bf16.vlgmr.msra.gmra.mxu0 %vm736_vm2, %v2723_v43 }
0x180b   : > { %3950 = vmatpush3.bf16.xpose.msra.mxu1 %v2780_v44  ;;  %3951 = vmatprep.mubr.msk.bf16.mxu1 %vm4285_vm1, %v4284_v15 }
0x180c   : > { %3961 = vmatprep.subr.bf16.mxu1 %v4284_v15  ;;  %3957 = vmatprep.mubr.msk.bf16.mxu0 %vm4285_vm1, %v4284_v15 }
0x1812   : > { %3952 = vmatmul.mubr.msk.bf16.vlgmr.msra.gmra.mxu1 %vm736_vm2, %v2773_v0 }
0x1813   : > { %3963 = vmatprep.mubr.msk.bf16.mxu1 %vm4285_vm1, %v4284_v15 }
0x18c2   : > { %v2668_v39 = vpop.f32.mrf.mxu0 }
0x18c4   : > { %v3935_v45 = vpop.f32.mrf.mxu0 }
0x18c6   : > { %v2671_v46 = vpop.f32.mrf.mxu0 }
0x18c8   : > { %v3936_v48 = vpop.f32.mrf.mxu0 }
0x18ca   : > { %v2716_v42 = vpop.f32.mrf.mxu1  ;;  %v2766_v19 = vpop.f32.mrf.mxu0 }
0x18cb   : > { %v2767_v22 = vadd.f32 %v4873_v61, %v2766_v19  ;;  %v4087_v61 = vpack.i.bf16 %v2716_v42, %v2668_v39 }
0x18cc   : > { %v3941_v23 = vpop.f32.mrf.mxu1  ;;  %v3947_v49 = vpop.f32.mrf.mxu0 }
0x18cd   : > { %v2822_v52 = vsel %vm736_vm2, %v2767_v22, -inf }
0x18ce   : > { %v2719_v54 = vpop.f32.mrf.mxu1  ;;  %2823 = vmax.xlane.f32.xlu1 %v2822_v52  ;;  %v2769_v55 = vpop.f32.mrf.mxu0 }
0x18d0   : > { %v3942_v57 = vpop.f32.mrf.mxu1  ;;  %v3948_v58 = vpop.f32.mrf.mxu0 }
0x18d2   : > { %v2816_v59 = vpop.f32.mrf.mxu1 }
0x18d3   : > { %v2817_v60 = vadd.f32 %v4878_v11, %v2816_v59 }
0x18d4   : > { %v3953_v62 = vpop.f32.mrf.mxu1 }
0x18d5   : > { %v2825_v63 = vsel %vm736_vm2, %v2817_v60, -inf }
0x18d6   : > { %2826 = vmax.xlane.f32.xlu0 %v2825_v63  ;;  %v2819_v2 = vpop.f32.mrf.mxu1 }
0x18d8   : > { %v3954_v3 = vpop.f32.mrf.mxu1 }
0x18df   : > { %2846 = vrot.lane.b32.xlu1 %v4810_v5, %s5226_s22 }
0x18e3   : > { %4083 = vrot.lane.b32.xlu1 %v4082_v53, %s5227_s3 }
0x18e7   : > { %4088 = vrot.lane.b32.xlu1 %v4087_v61, %s5228_s24 }
0x1957   : > { %v2824_v4 = vpop.xlane.xlu1 %2823 }
0x1958   : > { %v2828_v6 = vsub.f32 %v2767_v22, %v2824_v4 }
0x195a   : > { %v2830_v11 = vmul.f32 1.442695, %v2828_v6 }
0x195b   : > { %v2847_v7 = vpop.permute.xlu1 %2846 }
0x195c   : > { %4195 = vpow2.f32 %v2830_v11  ;;  %v2852_v8 = vsel %vm861_vm3, %v2847_v7, 0 }
0x195d   : > { %3956 = vmatpush3.bf16.msra.mxu0 %v2852_v8 }
0x195e   : > { %3967 = vmatprep.subr.bf16.mxu0 %v4284_v15 }
0x195f   : > { %v2827_v10 = vpop.xlane.xlu0 %2826  ;;  %v4084_v41 = vpop.permute.xlu1 %4083 }
0x1960   : > { %v2829_v5 = vsub.f32 %v2817_v60, %v2827_v10  ;;  %v4086_v43 = vunpack.i.h.bf16 %v4084_v41  ;;  %v4085_v44 = vunpack.i.l.bf16 %v4084_v41  ;;  %v4124_v41 = vld [vmem:[%s5158_s13 + $0x40] sm:$0xff]  }
0x1962   : > { %v2832_v12 = vmul.f32 1.442695, %v2829_v5  ;;  %v2967_v46 = vsel %vm736_vm2, %v4870_v38, %v4086_v43  ;;  %v2966_v48 = vsel %vm736_vm2, %v4868_v56, %v4085_v44  ;;  %v3565_v56 = vld [vmem:[%s5153_s8 + $0x1] ss:$0 sm:$0xff] }
0x1963   : > { %v4089_v33 = vpop.permute.xlu1 %4088 }
0x1964   : > { %4197 = vpow2.f32 %v2832_v12  ;;  %v4091_v0 = vunpack.i.h.bf16 %v4089_v33  ;;  %v4090_v39 = vunpack.i.l.bf16 %v4089_v33  ;;  %v4115_v12 = vld [vmem:[%s5156_s11 + $0x18] sm:$0xff]   ;;  %v3578_v33 = vld [vmem:[%s5215_s25 + $0x1] ss:$0 sm:$0xff] }
0x1966   : > { %v2968_v22 = vsel %vm1639_vm4, %v2966_v48, %v4090_v39  ;;  %v2969_v23 = vsel %vm1639_vm4, %v2967_v46, %v4091_v0 }
0x1969   : > { %v4196_v13 = vpop.eup %4195 }
0x196a   : > { %v2834_v1 = vsel %vm736_vm2, %v4196_v13, 0.0 }
0x196b   : > { %2835 = vadd.xlane.f32.xlu0 %v2834_v1  ;;  %v4117_v1 = vld [vmem:[%s5158_s13 + $0x78] sm:$0xff]  }
0x1971   : > { %v4198_v51 = vpop.eup %4197 }
0x1972   : > { %v2837_v53 = vsel %vm736_vm2, %v4198_v51, 0.0 }
0x1973   : > { %2838 = vadd.xlane.f32.xlu0 %v2837_v53  ;;  %v4119_v53 = vld [vmem:[%s5158_s13 + $0x68] sm:$0xff]  }
0x1989   : > { %2894 = vrot.lane.b32.xlu0 %v4814_v9, %s5226_s22  ;;  %s3284_s22 = sld [smem:[#allocation4 + %s4453_s29]] }
0x198f   : > { %s3285_s24 = scalar_lea.vmem [#allocation2], %s3284_s22 }
0x19f4   : > { %v2836_v14 = vpop.xlane.xlu0 %2835 }
0x19f5   : > { %4199 = vrcp.f32 %v2836_v14  ;;  %v4120_v14 = vld [vmem:[%s5158_s13 + $0x60] sm:$0xff]  }
0x19fc   : > { %v2839_v16 = vpop.xlane.xlu0 %2838 }
0x19fd   : > { %4201 = vrcp.f32 %v2839_v16  ;;  %v4121_v16 = vld [vmem:[%s5158_s13 + $0x58] sm:$0xff]  }
0x1a00   : > { %v2895_v17 = vpop.permute.xlu0 %2894 }
0x1a01   : > { %v2900_v18 = vsel %vm861_vm3, %v2895_v17, 0 }
0x1a02   : > { %v4200_v20 = vpop.eup %4199  ;;  %3962 = vmatpush3.bf16.msra.mxu1 %v2900_v18 }
0x1a03   : > { %v2842_v21 = vmul.f32 %v4200_v20, %v4196_v13  ;;  %3975 = vmatprep.subr.bf16.mxu1 %v4284_v15  ;;  %v4116_v13 = vld [vmem:[%s5156_s11 + $0x10] sm:$0xff]  }
0x1a05   : > { %v2844_v24 = vpack.c.bf16 %v2842_v21, %v2842_v21 }
0x1a07   : > { %3958 = vmatmul.mubr.msk.bf16.vlgmr.msra.gmra.mxu0 %vm736_vm2, %v2844_v24 }
0x1a08   : > { %3971 = vmatprep.mubr.msk.bf16.mxu0 %vm4285_vm1, %v4284_v15  ;;  %3968 = vmatpush3.bf16.msra.mxu0 %v4113_v27  ;;  %v3571_v27 = vld [vmem:[%s5154_s9 + $0x1] ss:$0 sm:$0xff] }
0x1a09   : > { %3969 = vmatprep.subr.bf16.mxu0 %v4284_v15 }
0x1a0a   : > { %v4202_v25 = vpop.eup %4201 }
0x1a0b   : > { %v2843_v9 = vmul.f32 %v4202_v25, %v4198_v51  ;;  %v4118_v51 = vld [vmem:[%s5158_s13 + $0x70] sm:$0xff]  }
0x1a0c   : > { %3970 = vmatpush3.bf16.msra.mxu0 %v4114_v29 }
0x1a0d   : > { %v2845_v26 = vpack.c.bf16 %v2843_v9, %v2843_v9  ;;  %3983 = vmatprep.subr.bf16.mxu0 %v4284_v15 }
0x1a0f   : > { %3964 = vmatmul.mubr.msk.bf16.vlgmr.msra.gmra.mxu1 %vm736_vm2, %v2845_v26 }
0x1a10   : > { %3979 = vmatprep.mubr.msk.bf16.mxu1 %vm4285_vm1, %v4284_v15  ;;  %3976 = vmatpush3.bf16.msra.mxu1 %v4115_v12 }
0x1a11   : > { %3977 = vmatprep.subr.bf16.mxu1 %v4284_v15 }
0x1a14   : > { %3978 = vmatpush3.bf16.msra.mxu1 %v4116_v13  ;;  %v3611_v13 = vld [vmem:[%s5161_s16] ss:$0 sm:$0xff] }
0x1a15   : > { %4003 = vmatprep.subr.bf16.mxu1 %v4284_v15 }
0x1ac7   : > { %v2888_v28 = vpop.f32.mrf.mxu0 }
0x1ac9   : > { %v3959_v30 = vpop.f32.mrf.mxu0 }
0x1acb   : > { %v2891_v47 = vpop.f32.mrf.mxu0 }
0x1acc   : > { %v3572_v47 = vld [vmem:[%s5155_s10 + $0x1] ss:$0 sm:$0xff] }
0x1acd   : > { %v3960_v32 = vpop.f32.mrf.mxu0 }
0x1acf   : > { %v2936_v34 = vpop.f32.mrf.mxu1 }
0x1ad0   : > { %v4092_v35 = vpack.i.bf16 %v2936_v34, %v2888_v28 }
0x1ad1   : > { %v3965_v50 = vpop.f32.mrf.mxu1 }
0x1ad2   : > { %4093 = vrot.lane.b32.xlu1 %v4092_v35, %s5229_s30  ;;  %s3288_s30 = sld [smem:[#allocation4 + %s3287_s26]] }
0x1ad3   : > { %v2939_v37 = vpop.f32.mrf.mxu1 }
0x1ad4   : > { %v4122_v37 = vld [vmem:[%s5158_s13 + $0x50] sm:$0xff]  }
0x1ad5   : > { %v3966_v40 = vpop.f32.mrf.mxu1 }
0x1ad6   : > { %v4123_v40 = vld [vmem:[%s5158_s13 + $0x48] sm:$0xff]  }
0x1ad8   : > { %s3443_s3 = scalar_lea.vmem [#allocation2], %s3288_s30 }
0x1b44   : > { %v4094_v45 = vpop.permute.xlu1 %4093 }
0x1b45   : > { %v4096_v42 = vunpack.i.h.bf16 %v4094_v45  ;;  %v4095_v19 = vunpack.i.l.bf16 %v4094_v45 }
0x1b47   : > { %v2971_v49 = vsel %vm1642_vm5, %v2969_v23, %v4096_v42  ;;  %v2970_v52 = vsel %vm1642_vm5, %v2968_v22, %v4095_v19  ;;  %v3607_v23 = vld [vmem:[%s5159_s14 + $0x1] ss:$0 sm:$0xff] }
0x1b48   : > { %v2972_v54 = vpack.c.bf16 %v2971_v49, %v2970_v52 }
0x1b4a   : > { %3972 = vmatmul.mubr.msk.bf16.vlgmr.msra.gmra.mxu0 %vm619_vm0, %v2972_v54 }
0x1b4b   : > { %3999 = vmatprep.mubr.msk.bf16.mxu0 %vm4285_vm1, %v4284_v15  ;;  %3984 = vmatpush3.bf16.msra.mxu0 %v4117_v1 }
0x1b4c   : > { %3985 = vmatprep.subr.bf16.mxu0 %v4284_v15 }
0x1b4f   : > { %3986 = vmatpush3.bf16.msra.mxu0 %v4118_v51 }
0x1b50   : > { %3987 = vmatprep.subr.bf16.mxu0 %v4284_v15 }
0x1b53   : > { %3988 = vmatpush3.bf16.msra.mxu0 %v4119_v53 }
0x1b54   : > { %3989 = vmatprep.subr.bf16.mxu0 %v4284_v15 }
0x1b57   : > { %3990 = vmatpush3.bf16.msra.mxu0 %v4120_v14 }
0x1b58   : > { %3991 = vmatprep.subr.bf16.mxu0 %v4284_v15 }
0x1b5b   : > { %3992 = vmatpush3.bf16.msra.mxu0 %v4121_v16 }
0x1b5c   : > { %3993 = vmatprep.subr.bf16.mxu0 %v4284_v15 }
0x1b5f   : > { %3994 = vmatpush3.bf16.msra.mxu0 %v4122_v37 }
0x1b60   : > { %3995 = vmatprep.subr.bf16.mxu0 %v4284_v15 }
0x1b63   : > { %3996 = vmatpush3.bf16.msra.mxu0 %v4123_v40 }
0x1b64   : > { %3997 = vmatprep.subr.bf16.mxu0 %v4284_v15 }
0x1b67   : > { %3998 = vmatpush3.bf16.msra.mxu0 %v4124_v41 }
0x1c0a   : > { %v3035_v38 = vpop.f32.mrf.mxu0 }
0x1c0b   : > { %v3036_v55 = vadd.f32 %v3565_v56, %v3035_v38 }
0x1c0c   : > { %v3973_v57 = vpop.f32.mrf.mxu0 }
0x1c0d   : > { %v5009_v58 = vadd.f32 %v3036_v55, %v4777_v31 }
0x1c0e   : > { %v3038_v59 = vpop.f32.mrf.mxu0 }
0x1c0f   : > { %v3039_v60 = vadd.f32 %v3565_v56, %v3038_v59  ;;  %v3048_v62 = vsel %vm619_vm0, %v5009_v58, 0.0 }
0x1c10   : > { %3049 = vadd.xlane.f32.xlu0 %v3048_v62  ;;  %v3974_v63 = vpop.f32.mrf.mxu0 }
0x1c11   : > { %v5014_v2 = vadd.f32 %v3039_v60, %v4782_v36 }
0x1c13   : > { %v3051_v3 = vsel %vm619_vm0, %v5014_v2, 0.0 }
0x1c14   : > { %3052 = vadd.xlane.f32.xlu1 %v3051_v3 }
0x1c99   : > { %v3050_v61 = vpop.xlane.xlu0 %3049 }
0x1c9a   : > { %v3054_v4 = vmul.f32 0.03125, %v3050_v61 }
0x1c9c   : > { %v3056_v6 = vsub.f32 %v5009_v58, %v3054_v4 }
0x1c9d   : > { %v3053_v31 = vpop.xlane.xlu1 %3052 }
0x1c9e   : > { %v3055_v11 = vmul.f32 0.03125, %v3053_v31  ;;  %v3058_v7 = vmul.f32 %v3056_v6, %v3056_v6  ;;  %v4125_v31 = vld [vmem:[%s5162_s17 + $0x8] sm:$0xff]  }
0x1ca0   : > { %v3057_v8 = vsub.f32 %v5014_v2, %v3055_v11  ;;  %v3060_v10 = vsel %vm619_vm0, %v3058_v7, 0.0  ;;  %v4126_v11 = vld [vmem:[%s5162_s17] sm:$0xff]  }
0x1ca1   : > { %3061 = vadd.xlane.f32.xlu0 %v3060_v10 }
0x1ca2   : > { %v3059_v5 = vmul.f32 %v3057_v8, %v3057_v8 }
0x1ca4   : > { %v3063_v36 = vsel %vm619_vm0, %v3059_v5, 0.0 }
0x1ca5   : > { %3064 = vadd.xlane.f32.xlu0 %v3063_v36  ;;  %v3610_v36 = vld [vmem:[%s5160_s15] ss:$0 sm:$0xff] }
0x1d2a   : > { %v3062_v17 = vpop.xlane.xlu0 %3061 }
0x1d2b   : > { %v3066_v18 = vmul.f32 0.03125, %v3062_v17 }
0x1d2d   : > { %v3068_v20 = vadd.f32 1e-05, %v3066_v18 }
0x1d2e   : > { %v3065_v21 = vpop.xlane.xlu0 %3064 }
0x1d2f   : > { %4203 = vrsqrt.f32 %v3068_v20  ;;  %v3067_v24 = vmul.f32 0.03125, %v3065_v21 }
0x1d31   : > { %v3069_v25 = vadd.f32 1e-05, %v3067_v24 }
0x1d33   : > { %4205 = vrsqrt.f32 %v3069_v25 }
0x1d3c   : > { %v4204_v9 = vpop.eup %4203 }
0x1d3d   : > { %v3072_v26 = vmul.f32 %v4204_v9, %v3056_v6 }
0x1d3f   : > { %v3080_v30 = vmul.f32 %v3571_v27, %v3072_v26 }
0x1d40   : > { %v4206_v29 = vpop.eup %4205 }
0x1d41   : > { %v3073_v28 = vmul.f32 %v4206_v29, %v3057_v8  ;;  %v3088_v34 = vadd.f32 %v3572_v47, %v3080_v30 }
0x1d43   : > { %v3081_v32 = vmul.f32 %v3571_v27, %v3073_v28 }
0x1d45   : > { %v3089_v35 = vadd.f32 %v3572_v47, %v3081_v32 }
0x1d47   : > { %v3090_v50 = vpack.c.bf16 %v3089_v35, %v3088_v34 }
0x1d49   : > { %3980 = vmatmul.mubr.msk.bf16.vlgmr.msra.gmra.mxu1 %vm619_vm0, %v3090_v50 }
0x1d4a   : > { %4007 = vmatprep.mubr.msk.bf16.mxu1 %vm4285_vm1, %v4284_v15  ;;  %4004 = vmatpush3.bf16.msra.mxu1 %v4125_v31 }
0x1d4b   : > { %4005 = vmatprep.subr.bf16.mxu1 %v4284_v15  ;;  %v3612_v15 = vld [vmem:[%s5163_s18] ss:$0 sm:$0xff] }
0x1d4e   : > { %4006 = vmatpush3.bf16.msra.mxu1 %v4126_v11 }
0x1e09   : > { %v3153_v43 = vpop.f32.mrf.mxu1 }
0x1e0a   : > { %v3154_v0 = vadd.f32 %v3578_v33, %v3153_v43 }
0x1e0b   : > { %v3981_v44 = vpop.f32.mrf.mxu1 }
0x1e0c   : > { %v3160_v48 = vmax.f32 %v3154_v0, 0.0 }
0x1e0d   : > { %v3156_v39 = vpop.f32.mrf.mxu1 }
0x1e0e   : > { %v3157_v45 = vadd.f32 %v3578_v33, %v3156_v39 }
0x1e0f   : > { %v3982_v46 = vpop.f32.mrf.mxu1 }
0x1e10   : > { %v3161_v42 = vmax.f32 %v3157_v45, 0.0 }
0x1e12   : > { %v3162_v19 = vpack.c.bf16 %v3161_v42, %v3160_v48 }
0x1e14   : > { %4000 = vmatmul.mubr.bf16.vlgmr.msra.gmra.mxu0 %v3162_v19 }
0x1ed4   : > { %v3262_v22 = vpop.f32.mrf.mxu0 }
0x1ed5   : > { %v3269_v49 = vadd.f32 %v3262_v22, %v5009_v58 }
0x1ed6   : > { %v4001_v52 = vpop.f32.mrf.mxu0 }
0x1ed7   : > { %v3279_v54 = vadd.f32 %v3607_v23, %v3269_v49 }
0x1ed8   : > { %v3265_v56 = vpop.f32.mrf.mxu0 }
0x1ed9   : > { %3281 = vst.msk [vmem:[#allocation2] sm:$0xff] %vm619_vm0, %v3279_v54  ;;  %v3270_v38 = vadd.f32 %v3265_v56, %v5014_v2 }
0x1eda   : > { %v4002_v55 = vpop.f32.mrf.mxu0 }
0x1edb   : > { %v3280_v57 = vadd.f32 %v3607_v23, %v3270_v38 }
0x1edd   : > { %3282 = vst.msk [vmem:[#allocation2 + $0x8] sm:$0xff] %vm619_vm0, %v3280_v57 }
0x1ee4   : > { %v3609_v59 = vld [vmem:[%s3443_s3 + $0x8] sm:$0x1]  ;;  %v3286_v58 = vld [vmem:[%s3285_s24] sm:$0x1]  ;;  %s586_s24 = sand.u32 1, %s4273_s1   ;;  %s5104_s3 = scalar_lea.hbm %s5164_s19, %s3617_s23 }
0x1ee5   : > { %v3293_v60 = vrot.slane %v3609_v59, 7  ;;  %s3484_s28 = sshll.u32 %s586_s24, 1  ;;  %s3396_s29 = scalar_lea.sflag [#allocation6], %s586_s24 }
0x1ee6   : > { %s588_s26 = scalar_lea.vmem [#allocation5], %s3484_s28  ;;  %s4223_s28 = sshll.u32 %s4300_s12, 4  ;;  %s4224_s28 = int_to_ptr.vmem [resolvable:$false] %s4223_s28 }
0x1ee7   : > { %v3296_v62 = vsel %vm3295_vm6, %v3286_v58, %v3293_v60  ;;  %s3409_s30 = sshll.u32 %s588_s26, 4  ;;  %s4225_s4 = scalar_lea.vmem %s4224_s28, 64  ;;  %s5106_s30 = int_to_ptr.vmem [resolvable:$true] %s3409_s30 }
0x1ee8   : > { %v3300_v63 = vsel %vm3299_vm7, %v3296_v62, 0.0  ;;  %s4219_s0 = scalar_lea.vmem %s5106_s30, 32  ;;  %p4226_p0 = scmp.lt.s32.totalorder %s5106_s30, %s4224_s28 }
0x1ee9   : > { %3301 = vadd.xlane.f32.xlu0 %v3300_v63  ;;  %p4220_p11 = scmp.ne.s32.totalorder %s5106_s30, %s4219_s0  ;;  %p4227_p1 = scmp.lt.s32.totalorder %s4225_s4, %s4219_s0 }
0x1eeb   : > { %p4221_p12 = pnand %p4220_p11, %p4442_p5  ;;  %p4228_p2 = por %p4227_p1, %p4226_p0 }
0x1eed   : > { %p4222_p13 = pneg %p4221_p12 }
0x1eef   : > { %p4229_p3 = pnand %p4228_p2, %p4222_p13 }
0x1f72   : > { %v3302_v3 = vpop.xlane.xlu0 %3301 }
0x1f73   : > { %v3303_v61 = vmul.f32 0.03125, %v3302_v3 }
0x1f75   : > { %v3304_v4 = vsub.f32 %v3296_v62, %v3303_v61 }
0x1f77   : > { %v3305_v2 = vmul.f32 %v3304_v4, %v3304_v4 }
0x1f79   : > { %v3306_v6 = vsel %vm3299_vm7, %v3305_v2, 0.0 }
0x1f7a   : > { %3307 = vadd.xlane.f32.xlu1 %v3306_v6 }
0x2003   : > { %v3308_v7 = vpop.xlane.xlu1 %3307 }
0x2004   : > { %v3309_v8 = vmul.f32 0.03125, %v3308_v7 }
0x2006   : > { %v3310_v10 = vadd.f32 1e-05, %v3309_v8 }
0x2008   : > { %4207 = vrsqrt.f32 %v3310_v10 }
0x2015   : > { %v4208_v5 = vpop.eup %4207 }
0x2016   : > { %v3312_v12 = vmul.f32 %v4208_v5, %v3304_v4 }
0x2018   : > { %v3319_v1 = vmul.f32 %v3610_v36, %v3312_v12 }
0x201a   : > { %v3326_v51 = vadd.f32 %v3611_v13, %v3319_v1 }
0x201c   : > { %v3327_v53 = vpack.c.bf16 %v3326_v51, %v3326_v51 }
0x201e   : > { %4008 = vmatmul.mubr.msk.bf16.vlgmr.msra.gmra.mxu1 %vm619_vm0, %v3327_v53 }
0x20de   : > { %v3388_v14 = vpop.f32.mrf.mxu1 }
0x20df   : > { %v3389_v16 = vadd.f32 %v3612_v15, %v3388_v14 }
0x20e0   : > { %v4009_v17 = vpop.f32.mrf.mxu1 }
0x20e1   : > { %3394 = vst [vmem:[%s588_s26] sm:$0x3] %v3389_v16 }
0x20e2   : > { %v3391_v18 = vpop.f32.mrf.mxu1 }
0x20e3   : > { %4232 = shalt.err (!%p4229_p3)
}
0x20e4   : > { %s4233_s23 = scalar_lea.hbm %s5104_s3, 32  ;;  %s4237_s22 = scalar_lea.hbm %s5164_s19, 64 }
0x20e5   : > { %p4234_p4 = scmp.ne.s32.totalorder %s5104_s3, %s4233_s23  ;;  %p4238_p9 = scmp.lt.s32.totalorder %s5104_s3, %s5164_s19 }
0x20e6   : > { %p4239_p10 = scmp.lt.s32.totalorder %s4237_s22, %s4233_s23 }
0x20e7   : > { %p4235_p7 = pnand %p4234_p4, %p4442_p5 }
0x20e8   : > { %p4240_p11 = por %p4239_p10, %p4238_p9 }
0x20e9   : > { %p4236_p8 = pneg %p4235_p7 }
0x20eb   : > { %p4241_p12 = pnand %p4240_p11, %p4236_p8 }
0x20ed   : > { %4244 = shalt.err (!%p4241_p12)
}
0x20ee   : > { %4011 = dma.vmem_to_hbm [thread:$0]  (%p4442_p5), %s5106_s30, 32, %s5104_s3, %s3396_s29   ;;  %v4010_v20 = vpop.f32.mrf.mxu1 }
0x20ef PF: > { %p4017_p13 = scmp.ge.s32.totalorder %s4281_s2, 2  ;;  %s3421_s28 = sand.u32 1, %s4269_s21  }
0x20f0   : > { %s3422_s5 = scalar_lea.sflag [#allocation6], %s3421_s28 }
0x20f1   : > { %p4014_p0 = pnand %p4017_p13, %p4446_p6 }
0x20f3   : > { %p4015_p1 = pneg %p4014_p0 }
0x20f5   : > { %4264 = dma.done.wait (%p4015_p1), %s3422_s5, 32  }
0x20f6   : > { %4266 = vsyncadd (%p4015_p1), %s3422_s5, 4294967264  ;;  %s5231_s2 = sld [smem:[#allocation10_spill]]  ;;  %s5234_s21 = smov %s4273_s1 }
0x20f7   : > { %s5232_s4 = sld [smem:[#allocation9_spill]] }
0x20f8   : > { %s5233_s22 = sld [smem:[#allocation11_spill]] }
0x20fc   : > { %p33_p2 = scmp.ge.s32.totalorder %s5231_s2, 4  }
0x20fd   : > { %s5235_s1 = smov %s5232_s4 }
0x20fe   :  { %35 = sbr.rel (!%p33_p2) target bundleno = 21 (0x15), region = 144 }
0x2103   :  { %3427 = vsyncpa [#allocation6], 1 }
0x2104   :  { %3429 = vsyncpa [#allocation6 + $0x1], 1 }

</bundles_post_ra>
